<compile_context>
chip_gen: v6e
topology: v6e:2x2x1
jax: 0.10.0
libtpu: 0.0.40
codegen_flags: <defaults>
</compile_context>

<pallas_src>
import functools

import jax
import jax.numpy as jnp
import numpy as np
from jax.experimental import pallas as pl
from jax.experimental.pallas import tpu as pltpu


# ---------------------------------------------------------------------------
# Pallas kernel
# ---------------------------------------------------------------------------
def _make_kernel(kernel_sizes, dilation_sizes, C, T, batch_tile, P):
    n_blocks = len(kernel_sizes)
    NT = batch_tile * T
    seg = T + 2 * P                     # padded segment width per batch element

    def kernel(alpha_ref, inv_alpha_ref, *refs):
        # refs = (w_ref_0..w_ref_{n-1}, x_ref, o_ref, pad_ref, stk_ref_0..stk_ref_{n-1})
        w_refs = refs[:n_blocks]                 # (n_dil, C, k*C) bf16 each
        x_ref = refs[n_blocks]                   # (C, NT) bf16
        o_ref = refs[n_blocks + 1]               # (C, NT) f32
        pad_ref = refs[n_blocks + 2]             # (C, batch_tile*seg) bf16 scratch
        stk_refs = refs[n_blocks + 3:]           # per block (k*C, NT) bf16 scratch

        # Zero the padded scratch once per grid step; only the centre of each
        # batch segment is ever rewritten, so the halo columns stay zero and
        # implement the 'same'-padding boundary for every tap slice.
        pad_ref[...] = jnp.zeros_like(pad_ref)

        x = x_ref[...].astype(jnp.float32)       # Snake / residual math in f32
        acc = jnp.zeros((C, NT), jnp.float32)

        for m in range(n_blocks):
            k = kernel_sizes[m]
            dils = dilation_sizes[m]
            stk = stk_refs[m]

            # --- Snake activation (UpDownSnake1d stand-in) ---
            alpha = alpha_ref[m]                 # (C, 1) broadcasts over lanes
            inv_alpha = inv_alpha_ref[m]         # (C, 1), 1/alpha from host
            s = jnp.sin(alpha * x)
            y = x + s * s * inv_alpha

            # --- stack of dilated residual Conv1d(padding='same', bias=False)
            #     all k taps fused into one (C, k*C) x (k*C, NT) MXU matmul ---
            for di, d in enumerate(dils):
                # 'same' split (symmetric for odd k, as in this config).
                pad_left = (d * (k - 1)) // 2

                # Cast once per dilation; write y into the centre of each
                # zero-padded batch segment.
                y_bf = y.astype(jnp.bfloat16)
                for b in range(batch_tile):
                    dst = b * seg + P
                    pad_ref[:, dst:dst + T] = y_bf[:, b * T:(b + 1) * T]

                # Tap extraction: static slices of the padded scratch stored
                # straight into the stacked matmul operand (no rolls/masks,
                # no f32 temporaries).
                for j in range(k):
                    off = j * d - pad_left       # source index = t + off
                    for b in range(batch_tile):
                        src = b * seg + P + off
                        stk[j * C:(j + 1) * C, b * T:(b + 1) * T] = \
                            pad_ref[:, src:src + T]

                conv = jnp.dot(w_refs[m][di], stk[...],
                               preferred_element_type=jnp.float32)
                y = conv + y                     # residual

            acc = acc + y                        # AmpComplex sum over blocks

        o_ref[...] = acc.astype(o_ref.dtype)

    return kernel


def _pick_batch_tile(B, T, target_lanes=256):
    """Fold enough batch into lanes to reach ~256-wide matmul N while keeping
    >=2 parallel grid steps for v7x's two TensorCores when possible."""
    divisors = [d for d in range(1, B + 1) if B % d == 0]
    for d in divisors:
        if d * T >= target_lanes and B // d >= 2:
            return d
    for d in divisors:
        if d * T >= target_lanes:
            return d
    return B


def amp_complex_pallas(x, alphas, weights, kernel_sizes, dilation_sizes,
                       batch_tile=None):
    """x: (B, C, T) f32.  alphas: (n_blocks, C, 1) f32.
    weights[m]: (n_dil_m, k_m, C_out, C_in) f32 (PyTorch Conv1d weights, tap-major)."""
    B, C, T = x.shape
    n_blocks = len(kernel_sizes)

    if batch_tile is None:
        batch_tile = _pick_batch_tile(B, T)
    assert B % batch_tile == 0
    n_bt = B // batch_tile
    NT = batch_tile * T

    # Halo width: enough for the largest tap offset in either direction.
    P = max((d * (k - 1) + 1) // 2
            for k, ds in zip(kernel_sizes, dilation_sizes) for d in ds)
    seg = T + 2 * P

    # Host-side precompute: 1/alpha (avoids a full (C, NT) divide per block).
    inv_alphas = 1.0 / alphas

    # Host-side weight prep: (n_dil, k, C_out, C_in) -> lane-dense
    # (n_dil, C_out, k*C_in), bf16 for the MXU (accumulation stays f32).
    w_stacked = []
    for m, k in enumerate(kernel_sizes):
        w = weights[m]
        n_dil = w.shape[0]
        w_s = jnp.transpose(w, (0, 2, 1, 3)).reshape(n_dil, C, k * C)
        w_stacked.append(w_s.astype(jnp.bfloat16))

    # Fold batch_tile batch elements into the lane axis (bf16 at the boundary
    # halves the HBM read of x; compute is unaffected since MXU operands are
    # bf16 anyway).
    x_bf = x.astype(jnp.bfloat16)
    x_folded = x_bf.reshape(n_bt, batch_tile, C, T).transpose(0, 2, 1, 3) \
                   .reshape(n_bt, C, NT)

    kernel = _make_kernel(tuple(kernel_sizes),
                          tuple(tuple(d) for d in dilation_sizes),
                          C, T, batch_tile, P)

    in_specs = [
        pl.BlockSpec(alphas.shape, lambda g: (0, 0, 0)),      # alphas
        pl.BlockSpec(inv_alphas.shape, lambda g: (0, 0, 0)),  # 1/alphas
    ]
    for w in w_stacked:
        in_specs.append(pl.BlockSpec(w.shape, lambda g: (0, 0, 0)))
    in_specs.append(pl.BlockSpec((None, C, NT), lambda g: (g, 0, 0)))

    scratch_shapes = [pltpu.VMEM((C, batch_tile * seg), jnp.bfloat16)]
    for k in kernel_sizes:
        scratch_shapes.append(pltpu.VMEM((k * C, NT), jnp.bfloat16))

    # Advisory cost estimate so XLA schedules this small call sensibly.
    matmul_flops = 2 * B * T * C * C * sum(
        k * len(ds) for k, ds in zip(kernel_sizes, dilation_sizes))
    bytes_accessed = (B * C * T * 2 + B * C * T * 4
                      + sum(int(np.prod(w.shape)) * 2 for w in w_stacked)
                      + 2 * int(np.prod(alphas.shape)) * 4)
    cost = pl.CostEstimate(flops=int(matmul_flops),
                           transcendentals=int(n_blocks * B * C * T),
                           bytes_accessed=int(bytes_accessed))

    out_folded = pl.pallas_call(
        kernel,
        out_shape=jax.ShapeDtypeStruct((n_bt, C, NT), jnp.float32),
        grid=(n_bt,),
        in_specs=in_specs,
        out_specs=pl.BlockSpec((None, C, NT), lambda g: (g, 0, 0)),
        scratch_shapes=scratch_shapes,
        compiler_params=pltpu.CompilerParams(dimension_semantics=("parallel",)),
        cost_estimate=cost,
    )(alphas, inv_alphas, *w_stacked, x_folded)

    # Unfold batch from the lane axis back to (B, C, T).
    return out_folded.reshape(n_bt, C, batch_tile, T).transpose(0, 2, 1, 3) \
                     .reshape(B, C, T)


# ---------------------------------------------------------------------------
# Pure-JAX reference (mirrors the PyTorch forward semantics, f32/HIGHEST)
# ---------------------------------------------------------------------------
def amp_complex_ref(x, alphas, weights, kernel_sizes, dilation_sizes):
    out = jnp.zeros_like(x)
    for m, (k, dils) in enumerate(zip(kernel_sizes, dilation_sizes)):
        a = alphas[m][None]                              # (1, C, 1)
        y = x + jnp.sin(a * x) ** 2 / a
        for di, d in enumerate(dils):
            w = jnp.transpose(weights[m][di], (1, 2, 0))  # (C_out, C_in, k)
            pad = (d * (k - 1)) // 2
            conv = jax.lax.conv_general_dilated(
                y, w, window_strides=(1,), padding=[(pad, pad)],
                rhs_dilation=(d,), dimension_numbers=("NCH", "OIH", "NCH"),
                precision=jax.lax.Precision.HIGHEST)
            y = conv + y
        out = out + y
    return out


# ---------------------------------------------------------------------------
if __name__ == "__main__":
    # Module configuration (small, typical AMP config).
    # B=4 so that batch_tile=2 gives both N=256 matmuls AND a 2-step
    # "parallel" grid (keeps both v7x TensorCores busy).
    B, C, T = 4, 8, 128
    width = 2  # sr arg of UpDownSnake1d (unused by the Snake stand-in)
    kernel_sizes = (3, 7, 11)
    dilation_sizes = ([1, 3, 5], [1, 3, 5], [1, 3, 5])

    # Deterministic parameter init.
    key = jax.random.PRNGKey(0)
    key, k_alpha, k_x = jax.random.split(key, 3)
    alphas = jax.random.uniform(
        k_alpha, (len(kernel_sizes), C, 1), jnp.float32, minval=0.5, maxval=1.5)
    weights = []
    for k_sz, dils in zip(kernel_sizes, dilation_sizes):
        key, k_w = jax.random.split(key)
        weights.append(
            0.05 * jax.random.normal(k_w, (len(dils), k_sz, C, C), jnp.float32))

    x = jax.random.normal(k_x, (B, C, T), jnp.float32)

    run = jax.jit(functools.partial(
        amp_complex_pallas,
        kernel_sizes=kernel_sizes, dilation_sizes=dilation_sizes))
    out = run(x, alphas, weights)
    jax.block_until_ready(out)

    # Reference sees the same bf16-rounded input the kernel consumes.
    x_ref_in = x.astype(jnp.bfloat16).astype(jnp.float32)
    ref = amp_complex_ref(x_ref_in, alphas, weights, kernel_sizes, dilation_sizes)
    # Tolerance widened vs. pure-f32: matmul operands are bf16 on the MXU
    # (deliberate perf choice); accumulation and Snake math are f32.
    np.testing.assert_allclose(np.asarray(out), np.asarray(ref),
                               rtol=2e-2, atol=2e-2)

    print("KERNEL_OK")
</pallas_src>

<mosaic_0001>
module attributes {stable_mosaic.version = 11 : i64} {
  func.func @kernel(%arg0: i32, %arg1: memref<3x8x1xf32, #tpu.memory_space<vmem>>, %arg2: memref<3x8x1xf32, #tpu.memory_space<vmem>>, %arg3: memref<3x8x24xbf16, #tpu.memory_space<vmem>>, %arg4: memref<3x8x56xbf16, #tpu.memory_space<vmem>>, %arg5: memref<3x8x88xbf16, #tpu.memory_space<vmem>>, %arg6: memref<1x8x256xbf16, #tpu.memory_space<vmem>>, %arg7: memref<1x8x256xf32, #tpu.memory_space<vmem>>, %arg8: memref<8x356xbf16, #tpu.memory_space<vmem>>, %arg9: memref<24x256xbf16, #tpu.memory_space<vmem>>, %arg10: memref<56x256xbf16, #tpu.memory_space<vmem>>, %arg11: memref<88x256xbf16, #tpu.memory_space<vmem>>) attributes {dimension_semantics = [#tpu.dimension_semantics<parallel>], iteration_bounds = array<i64: 2>, scalar_prefetch = 0 : i64, scratch_operands = 4 : i64, tpu.core_type = #tpu.core_type<tc>, window_params = [{pipeline_mode = #tpu.pipeline_mode<synchronous>, transform_indices = @transform_0, window_bounds = array<i64: 3, 8, 1>}, {pipeline_mode = #tpu.pipeline_mode<synchronous>, transform_indices = @transform_1, window_bounds = array<i64: 3, 8, 1>}, {pipeline_mode = #tpu.pipeline_mode<synchronous>, transform_indices = @transform_2, window_bounds = array<i64: 3, 8, 24>}, {pipeline_mode = #tpu.pipeline_mode<synchronous>, transform_indices = @transform_3, window_bounds = array<i64: 3, 8, 56>}, {pipeline_mode = #tpu.pipeline_mode<synchronous>, transform_indices = @transform_4, window_bounds = array<i64: 3, 8, 88>}, {transform_indices = @transform_5, window_bounds = array<i64: 1, 8, 256>}, {transform_indices = @transform_6, window_bounds = array<i64: 1, 8, 256>}]} {
    %cst = arith.constant 0.000000e+00 : bf16
    %0 = vector.broadcast %cst : bf16 to vector<8x356xbf16>
    %c0 = arith.constant 0 : index
    %c0_0 = arith.constant 0 : index
    %1 = vector.load %arg8[%c0, %c0_0] : memref<8x356xbf16, #tpu.memory_space<vmem>>, vector<8x356xbf16>
    tpu.vector_store %arg8[%c0, %c0_0], %0 {strides = array<i32>} : memref<8x356xbf16, #tpu.memory_space<vmem>>, vector<8x356xbf16>,
    %c0_1 = arith.constant 0 : index
    %c0_2 = arith.constant 0 : index
    %c0_3 = arith.constant 0 : index
    %2 = vector.load %arg6[%c0_1, %c0_2, %c0_3] : memref<1x8x256xbf16, #tpu.memory_space<vmem>>, vector<1x8x256xbf16>
    %3 = vector.shape_cast %2 : vector<1x8x256xbf16> to vector<8x256xbf16>
    %4 = arith.extf %3 : vector<8x256xbf16> to vector<8x256xf32>
    %cst_4 = arith.constant 0.000000e+00 : f32
    %5 = vector.broadcast %cst_4 : f32 to vector<8x256xf32>
    %c0_5 = arith.constant 0 : index
    %c0_6 = arith.constant 0 : index
    %c0_7 = arith.constant 0 : index
    %6 = vector.load %arg1[%c0_5, %c0_6, %c0_7] : memref<3x8x1xf32, #tpu.memory_space<vmem>>, vector<1x8x1xf32>
    %7 = vector.shape_cast %6 : vector<1x8x1xf32> to vector<8x1xf32>
    %c0_8 = arith.constant 0 : index
    %c0_9 = arith.constant 0 : index
    %c0_10 = arith.constant 0 : index
    %8 = vector.load %arg2[%c0_8, %c0_9, %c0_10] : memref<3x8x1xf32, #tpu.memory_space<vmem>>, vector<1x8x1xf32>
    %9 = vector.shape_cast %8 : vector<1x8x1xf32> to vector<8x1xf32>
    %10 = vector.broadcast %7 : vector<8x1xf32> to vector<8x256xf32>
    %11 = arith.mulf %10, %4 : vector<8x256xf32>
    %12 = math.sin %11 : vector<8x256xf32>
    %13 = arith.mulf %12, %12 : vector<8x256xf32>
    %14 = vector.broadcast %9 : vector<8x1xf32> to vector<8x256xf32>
    %15 = arith.mulf %13, %14 : vector<8x256xf32>
    %16 = arith.addf %4, %15 : vector<8x256xf32>
    %17 = arith.truncf %16 : vector<8x256xf32> to vector<8x256xbf16>
    %18 = vector.extract_strided_slice %17 {offsets = [0, 0], sizes = [8, 128], strides = [1, 1]} : vector<8x256xbf16> to vector<8x128xbf16>
    %c0_11 = arith.constant 0 : index
    %c25 = arith.constant 25 : index
    %19 = vector.load %arg8[%c0_11, %c25] : memref<8x356xbf16, #tpu.memory_space<vmem>>, vector<8x128xbf16>
    tpu.vector_store %arg8[%c0_11, %c25], %18 {strides = array<i32>} : memref<8x356xbf16, #tpu.memory_space<vmem>>, vector<8x128xbf16>,
    %20 = vector.extract_strided_slice %17 {offsets = [0, 128], sizes = [8, 128], strides = [1, 1]} : vector<8x256xbf16> to vector<8x128xbf16>
    %c0_12 = arith.constant 0 : index
    %c203 = arith.constant 203 : index
    %21 = vector.load %arg8[%c0_12, %c203] : memref<8x356xbf16, #tpu.memory_space<vmem>>, vector<8x128xbf16>
    tpu.vector_store %arg8[%c0_12, %c203], %20 {strides = array<i32>} : memref<8x356xbf16, #tpu.memory_space<vmem>>, vector<8x128xbf16>,
    %c0_13 = arith.constant 0 : index
    %c24 = arith.constant 24 : index
    %22 = vector.load %arg8[%c0_13, %c24] : memref<8x356xbf16, #tpu.memory_space<vmem>>, vector<8x128xbf16>
    %c0_14 = arith.constant 0 : index
    %c0_15 = arith.constant 0 : index
    %23 = vector.load %arg9[%c0_14, %c0_15] : memref<24x256xbf16, #tpu.memory_space<vmem>>, vector<8x128xbf16>
    tpu.vector_store %arg9[%c0_14, %c0_15], %22 {strides = array<i32>} : memref<24x256xbf16, #tpu.memory_space<vmem>>, vector<8x128xbf16>,
    %c0_16 = arith.constant 0 : index
    %c202 = arith.constant 202 : index
    %24 = vector.load %arg8[%c0_16, %c202] : memref<8x356xbf16, #tpu.memory_space<vmem>>, vector<8x128xbf16>
    %c0_17 = arith.constant 0 : index
    %c128 = arith.constant 128 : index
    %25 = vector.load %arg9[%c0_17, %c128] : memref<24x256xbf16, #tpu.memory_space<vmem>>, vector<8x128xbf16>
    tpu.vector_store %arg9[%c0_17, %c128], %24 {strides = array<i32>} : memref<24x256xbf16, #tpu.memory_space<vmem>>, vector<8x128xbf16>,
    %c0_18 = arith.constant 0 : index
    %c25_19 = arith.constant 25 : index
    %26 = vector.load %arg8[%c0_18, %c25_19] : memref<8x356xbf16, #tpu.memory_space<vmem>>, vector<8x128xbf16>
    %c8 = arith.constant 8 : index
    %c0_20 = arith.constant 0 : index
    %27 = vector.load %arg9[%c8, %c0_20] : memref<24x256xbf16, #tpu.memory_space<vmem>>, vector<8x128xbf16>
    tpu.vector_store %arg9[%c8, %c0_20], %26 {strides = array<i32>} : memref<24x256xbf16, #tpu.memory_space<vmem>>, vector<8x128xbf16>,
    %c0_21 = arith.constant 0 : index
    %c203_22 = arith.constant 203 : index
    %28 = vector.load %arg8[%c0_21, %c203_22] : memref<8x356xbf16, #tpu.memory_space<vmem>>, vector<8x128xbf16>
    %c8_23 = arith.constant 8 : index
    %c128_24 = arith.constant 128 : index
    %29 = vector.load %arg9[%c8_23, %c128_24] : memref<24x256xbf16, #tpu.memory_space<vmem>>, vector<8x128xbf16>
    tpu.vector_store %arg9[%c8_23, %c128_24], %28 {strides = array<i32>} : memref<24x256xbf16, #tpu.memory_space<vmem>>, vector<8x128xbf16>,
    %c0_25 = arith.constant 0 : index
    %c26 = arith.constant 26 : index
    %30 = vector.load %arg8[%c0_25, %c26] : memref<8x356xbf16, #tpu.memory_space<vmem>>, vector<8x128xbf16>
    %c16 = arith.constant 16 : index
    %c0_26 = arith.constant 0 : index
    %31 = vector.load %arg9[%c16, %c0_26] : memref<24x256xbf16, #tpu.memory_space<vmem>>, vector<8x128xbf16>
    tpu.vector_store %arg9[%c16, %c0_26], %30 {strides = array<i32>} : memref<24x256xbf16, #tpu.memory_space<vmem>>, vector<8x128xbf16>,
    %c0_27 = arith.constant 0 : index
    %c204 = arith.constant 204 : index
    %32 = vector.load %arg8[%c0_27, %c204] : memref<8x356xbf16, #tpu.memory_space<vmem>>, vector<8x128xbf16>
    %c16_28 = arith.constant 16 : index
    %c128_29 = arith.constant 128 : index
    %33 = vector.load %arg9[%c16_28, %c128_29] : memref<24x256xbf16, #tpu.memory_space<vmem>>, vector<8x128xbf16>
    tpu.vector_store %arg9[%c16_28, %c128_29], %32 {strides = array<i32>} : memref<24x256xbf16, #tpu.memory_space<vmem>>, vector<8x128xbf16>,
    %c0_30 = arith.constant 0 : index
    %c0_31 = arith.constant 0 : index
    %c0_32 = arith.constant 0 : index
    %34 = vector.load %arg3[%c0_30, %c0_31, %c0_32] : memref<3x8x24xbf16, #tpu.memory_space<vmem>>, vector<1x8x24xbf16>
    %35 = vector.shape_cast %34 : vector<1x8x24xbf16> to vector<8x24xbf16>
    %c0_33 = arith.constant 0 : index
    %c0_34 = arith.constant 0 : index
    %36 = vector.load %arg9[%c0_33, %c0_34] : memref<24x256xbf16, #tpu.memory_space<vmem>>, vector<24x256xbf16>
    %cst_35 = arith.constant dense<0.000000e+00> : vector<8x256xf32>
    %37 = tpu.matmul %35, %36, %cst_35 {dimension_numbers = #tpu.dot_dimension_numbers<[1], [0], [0], [1], [0, 0, 1, 1], [], []>} : vector<8x24xbf16>, vector<24x256xbf16>, vector<8x256xf32> -> vector<8x256xf32>
    %38 = arith.addf %37, %16 : vector<8x256xf32>
    %39 = arith.truncf %38 : vector<8x256xf32> to vector<8x256xbf16>
    %40 = vector.extract_strided_slice %39 {offsets = [0, 0], sizes = [8, 128], strides = [1, 1]} : vector<8x256xbf16> to vector<8x128xbf16>
    %c0_36 = arith.constant 0 : index
    %c25_37 = arith.constant 25 : index
    %41 = vector.load %arg8[%c0_36, %c25_37] : memref<8x356xbf16, #tpu.memory_space<vmem>>, vector<8x128xbf16>
    tpu.vector_store %arg8[%c0_36, %c25_37], %40 {strides = array<i32>} : memref<8x356xbf16, #tpu.memory_space<vmem>>, vector<8x128xbf16>,
    %42 = vector.extract_strided_slice %39 {offsets = [0, 128], sizes = [8, 128], strides = [1, 1]} : vector<8x256xbf16> to vector<8x128xbf16>
    %c0_38 = arith.constant 0 : index
    %c203_39 = arith.constant 203 : index
    %43 = vector.load %arg8[%c0_38, %c203_39] : memref<8x356xbf16, #tpu.memory_space<vmem>>, vector<8x128xbf16>
    tpu.vector_store %arg8[%c0_38, %c203_39], %42 {strides = array<i32>} : memref<8x356xbf16, #tpu.memory_space<vmem>>, vector<8x128xbf16>,
    %c0_40 = arith.constant 0 : index
    %c22 = arith.constant 22 : index
    %44 = vector.load %arg8[%c0_40, %c22] : memref<8x356xbf16, #tpu.memory_space<vmem>>, vector<8x128xbf16>
    %c0_41 = arith.constant 0 : index
    %c0_42 = arith.constant 0 : index
    %45 = vector.load %arg9[%c0_41, %c0_42] : memref<24x256xbf16, #tpu.memory_space<vmem>>, vector<8x128xbf16>
    tpu.vector_store %arg9[%c0_41, %c0_42], %44 {strides = array<i32>} : memref<24x256xbf16, #tpu.memory_space<vmem>>, vector<8x128xbf16>,
    %c0_43 = arith.constant 0 : index
    %c200 = arith.constant 200 : index
    %46 = vector.load %arg8[%c0_43, %c200] : memref<8x356xbf16, #tpu.memory_space<vmem>>, vector<8x128xbf16>
    %c0_44 = arith.constant 0 : index
    %c128_45 = arith.constant 128 : index
    %47 = vector.load %arg9[%c0_44, %c128_45] : memref<24x256xbf16, #tpu.memory_space<vmem>>, vector<8x128xbf16>
    tpu.vector_store %arg9[%c0_44, %c128_45], %46 {strides = array<i32>} : memref<24x256xbf16, #tpu.memory_space<vmem>>, vector<8x128xbf16>,
    %c0_46 = arith.constant 0 : index
    %c25_47 = arith.constant 25 : index
    %48 = vector.load %arg8[%c0_46, %c25_47] : memref<8x356xbf16, #tpu.memory_space<vmem>>, vector<8x128xbf16>
    %c8_48 = arith.constant 8 : index
    %c0_49 = arith.constant 0 : index
    %49 = vector.load %arg9[%c8_48, %c0_49] : memref<24x256xbf16, #tpu.memory_space<vmem>>, vector<8x128xbf16>
    tpu.vector_store %arg9[%c8_48, %c0_49], %48 {strides = array<i32>} : memref<24x256xbf16, #tpu.memory_space<vmem>>, vector<8x128xbf16>,
    %c0_50 = arith.constant 0 : index
    %c203_51 = arith.constant 203 : index
    %50 = vector.load %arg8[%c0_50, %c203_51] : memref<8x356xbf16, #tpu.memory_space<vmem>>, vector<8x128xbf16>
    %c8_52 = arith.constant 8 : index
    %c128_53 = arith.constant 128 : index
    %51 = vector.load %arg9[%c8_52, %c128_53] : memref<24x256xbf16, #tpu.memory_space<vmem>>, vector<8x128xbf16>
    tpu.vector_store %arg9[%c8_52, %c128_53], %50 {strides = array<i32>} : memref<24x256xbf16, #tpu.memory_space<vmem>>, vector<8x128xbf16>,
    %c0_54 = arith.constant 0 : index
    %c28 = arith.constant 28 : index
    %52 = vector.load %arg8[%c0_54, %c28] : memref<8x356xbf16, #tpu.memory_space<vmem>>, vector<8x128xbf16>
    %c16_55 = arith.constant 16 : index
    %c0_56 = arith.constant 0 : index
    %53 = vector.load %arg9[%c16_55, %c0_56] : memref<24x256xbf16, #tpu.memory_space<vmem>>, vector<8x128xbf16>
    tpu.vector_store %arg9[%c16_55, %c0_56], %52 {strides = array<i32>} : memref<24x256xbf16, #tpu.memory_space<vmem>>, vector<8x128xbf16>,
    %c0_57 = arith.constant 0 : index
    %c206 = arith.constant 206 : index
    %54 = vector.load %arg8[%c0_57, %c206] : memref<8x356xbf16, #tpu.memory_space<vmem>>, vector<8x128xbf16>
    %c16_58 = arith.constant 16 : index
    %c128_59 = arith.constant 128 : index
    %55 = vector.load %arg9[%c16_58, %c128_59] : memref<24x256xbf16, #tpu.memory_space<vmem>>, vector<8x128xbf16>
    tpu.vector_store %arg9[%c16_58, %c128_59], %54 {strides = array<i32>} : memref<24x256xbf16, #tpu.memory_space<vmem>>, vector<8x128xbf16>,
    %c1 = arith.constant 1 : index
    %c0_60 = arith.constant 0 : index
    %c0_61 = arith.constant 0 : index
    %56 = vector.load %arg3[%c1, %c0_60, %c0_61] : memref<3x8x24xbf16, #tpu.memory_space<vmem>>, vector<1x8x24xbf16>
    %57 = vector.shape_cast %56 : vector<1x8x24xbf16> to vector<8x24xbf16>
    %c0_62 = arith.constant 0 : index
    %c0_63 = arith.constant 0 : index
    %58 = vector.load %arg9[%c0_62, %c0_63] : memref<24x256xbf16, #tpu.memory_space<vmem>>, vector<24x256xbf16>
    %cst_64 = arith.constant dense<0.000000e+00> : vector<8x256xf32>
    %59 = tpu.matmul %57, %58, %cst_64 {dimension_numbers = #tpu.dot_dimension_numbers<[1], [0], [0], [1], [0, 0, 1, 1], [], []>} : vector<8x24xbf16>, vector<24x256xbf16>, vector<8x256xf32> -> vector<8x256xf32>
    %60 = arith.addf %59, %38 : vector<8x256xf32>
    %61 = arith.truncf %60 : vector<8x256xf32> to vector<8x256xbf16>
    %62 = vector.extract_strided_slice %61 {offsets = [0, 0], sizes = [8, 128], strides = [1, 1]} : vector<8x256xbf16> to vector<8x128xbf16>
    %c0_65 = arith.constant 0 : index
    %c25_66 = arith.constant 25 : index
    %63 = vector.load %arg8[%c0_65, %c25_66] : memref<8x356xbf16, #tpu.memory_space<vmem>>, vector<8x128xbf16>
    tpu.vector_store %arg8[%c0_65, %c25_66], %62 {strides = array<i32>} : memref<8x356xbf16, #tpu.memory_space<vmem>>, vector<8x128xbf16>,
    %64 = vector.extract_strided_slice %61 {offsets = [0, 128], sizes = [8, 128], strides = [1, 1]} : vector<8x256xbf16> to vector<8x128xbf16>
    %c0_67 = arith.constant 0 : index
    %c203_68 = arith.constant 203 : index
    %65 = vector.load %arg8[%c0_67, %c203_68] : memref<8x356xbf16, #tpu.memory_space<vmem>>, vector<8x128xbf16>
    tpu.vector_store %arg8[%c0_67, %c203_68], %64 {strides = array<i32>} : memref<8x356xbf16, #tpu.memory_space<vmem>>, vector<8x128xbf16>,
    %c0_69 = arith.constant 0 : index
    %c20 = arith.constant 20 : index
    %66 = vector.load %arg8[%c0_69, %c20] : memref<8x356xbf16, #tpu.memory_space<vmem>>, vector<8x128xbf16>
    %c0_70 = arith.constant 0 : index
    %c0_71 = arith.constant 0 : index
    %67 = vector.load %arg9[%c0_70, %c0_71] : memref<24x256xbf16, #tpu.memory_space<vmem>>, vector<8x128xbf16>
    tpu.vector_store %arg9[%c0_70, %c0_71], %66 {strides = array<i32>} : memref<24x256xbf16, #tpu.memory_space<vmem>>, vector<8x128xbf16>,
    %c0_72 = arith.constant 0 : index
    %c198 = arith.constant 198 : index
    %68 = vector.load %arg8[%c0_72, %c198] : memref<8x356xbf16, #tpu.memory_space<vmem>>, vector<8x128xbf16>
    %c0_73 = arith.constant 0 : index
    %c128_74 = arith.constant 128 : index
    %69 = vector.load %arg9[%c0_73, %c128_74] : memref<24x256xbf16, #tpu.memory_space<vmem>>, vector<8x128xbf16>
    tpu.vector_store %arg9[%c0_73, %c128_74], %68 {strides = array<i32>} : memref<24x256xbf16, #tpu.memory_space<vmem>>, vector<8x128xbf16>,
    %c0_75 = arith.constant 0 : index
    %c25_76 = arith.constant 25 : index
    %70 = vector.load %arg8[%c0_75, %c25_76] : memref<8x356xbf16, #tpu.memory_space<vmem>>, vector<8x128xbf16>
    %c8_77 = arith.constant 8 : index
    %c0_78 = arith.constant 0 : index
    %71 = vector.load %arg9[%c8_77, %c0_78] : memref<24x256xbf16, #tpu.memory_space<vmem>>, vector<8x128xbf16>
    tpu.vector_store %arg9[%c8_77, %c0_78], %70 {strides = array<i32>} : memref<24x256xbf16, #tpu.memory_space<vmem>>, vector<8x128xbf16>,
    %c0_79 = arith.constant 0 : index
    %c203_80 = arith.constant 203 : index
    %72 = vector.load %arg8[%c0_79, %c203_80] : memref<8x356xbf16, #tpu.memory_space<vmem>>, vector<8x128xbf16>
    %c8_81 = arith.constant 8 : index
    %c128_82 = arith.constant 128 : index
    %73 = vector.load %arg9[%c8_81, %c128_82] : memref<24x256xbf16, #tpu.memory_space<vmem>>, vector<8x128xbf16>
    tpu.vector_store %arg9[%c8_81, %c128_82], %72 {strides = array<i32>} : memref<24x256xbf16, #tpu.memory_space<vmem>>, vector<8x128xbf16>,
    %c0_83 = arith.constant 0 : index
    %c30 = arith.constant 30 : index
    %74 = vector.load %arg8[%c0_83, %c30] : memref<8x356xbf16, #tpu.memory_space<vmem>>, vector<8x128xbf16>
    %c16_84 = arith.constant 16 : index
    %c0_85 = arith.constant 0 : index
    %75 = vector.load %arg9[%c16_84, %c0_85] : memref<24x256xbf16, #tpu.memory_space<vmem>>, vector<8x128xbf16>
    tpu.vector_store %arg9[%c16_84, %c0_85], %74 {strides = array<i32>} : memref<24x256xbf16, #tpu.memory_space<vmem>>, vector<8x128xbf16>,
    %c0_86 = arith.constant 0 : index
    %c208 = arith.constant 208 : index
    %76 = vector.load %arg8[%c0_86, %c208] : memref<8x356xbf16, #tpu.memory_space<vmem>>, vector<8x128xbf16>
    %c16_87 = arith.constant 16 : index
    %c128_88 = arith.constant 128 : index
    %77 = vector.load %arg9[%c16_87, %c128_88] : memref<24x256xbf16, #tpu.memory_space<vmem>>, vector<8x128xbf16>
    tpu.vector_store %arg9[%c16_87, %c128_88], %76 {strides = array<i32>} : memref<24x256xbf16, #tpu.memory_space<vmem>>, vector<8x128xbf16>,
    %c2 = arith.constant 2 : index
    %c0_89 = arith.constant 0 : index
    %c0_90 = arith.constant 0 : index
    %78 = vector.load %arg3[%c2, %c0_89, %c0_90] : memref<3x8x24xbf16, #tpu.memory_space<vmem>>, vector<1x8x24xbf16>
    %79 = vector.shape_cast %78 : vector<1x8x24xbf16> to vector<8x24xbf16>
    %c0_91 = arith.constant 0 : index
    %c0_92 = arith.constant 0 : index
    %80 = vector.load %arg9[%c0_91, %c0_92] : memref<24x256xbf16, #tpu.memory_space<vmem>>, vector<24x256xbf16>
    %cst_93 = arith.constant dense<0.000000e+00> : vector<8x256xf32>
    %81 = tpu.matmul %79, %80, %cst_93 {dimension_numbers = #tpu.dot_dimension_numbers<[1], [0], [0], [1], [0, 0, 1, 1], [], []>} : vector<8x24xbf16>, vector<24x256xbf16>, vector<8x256xf32> -> vector<8x256xf32>
    %82 = arith.addf %81, %60 : vector<8x256xf32>
    %83 = arith.addf %5, %82 : vector<8x256xf32>
    %c1_94 = arith.constant 1 : index
    %c0_95 = arith.constant 0 : index
    %c0_96 = arith.constant 0 : index
    %84 = vector.load %arg1[%c1_94, %c0_95, %c0_96] : memref<3x8x1xf32, #tpu.memory_space<vmem>>, vector<1x8x1xf32>
    %85 = vector.shape_cast %84 : vector<1x8x1xf32> to vector<8x1xf32>
    %c1_97 = arith.constant 1 : index
    %c0_98 = arith.constant 0 : index
    %c0_99 = arith.constant 0 : index
    %86 = vector.load %arg2[%c1_97, %c0_98, %c0_99] : memref<3x8x1xf32, #tpu.memory_space<vmem>>, vector<1x8x1xf32>
    %87 = vector.shape_cast %86 : vector<1x8x1xf32> to vector<8x1xf32>
    %88 = vector.broadcast %85 : vector<8x1xf32> to vector<8x256xf32>
    %89 = arith.mulf %88, %4 : vector<8x256xf32>
    %90 = math.sin %89 : vector<8x256xf32>
    %91 = arith.mulf %90, %90 : vector<8x256xf32>
    %92 = vector.broadcast %87 : vector<8x1xf32> to vector<8x256xf32>
    %93 = arith.mulf %91, %92 : vector<8x256xf32>
    %94 = arith.addf %4, %93 : vector<8x256xf32>
    %95 = arith.truncf %94 : vector<8x256xf32> to vector<8x256xbf16>
    %96 = vector.extract_strided_slice %95 {offsets = [0, 0], sizes = [8, 128], strides = [1, 1]} : vector<8x256xbf16> to vector<8x128xbf16>
    %c0_100 = arith.constant 0 : index
    %c25_101 = arith.constant 25 : index
    %97 = vector.load %arg8[%c0_100, %c25_101] : memref<8x356xbf16, #tpu.memory_space<vmem>>, vector<8x128xbf16>
    tpu.vector_store %arg8[%c0_100, %c25_101], %96 {strides = array<i32>} : memref<8x356xbf16, #tpu.memory_space<vmem>>, vector<8x128xbf16>,
    %98 = vector.extract_strided_slice %95 {offsets = [0, 128], sizes = [8, 128], strides = [1, 1]} : vector<8x256xbf16> to vector<8x128xbf16>
    %c0_102 = arith.constant 0 : index
    %c203_103 = arith.constant 203 : index
    %99 = vector.load %arg8[%c0_102, %c203_103] : memref<8x356xbf16, #tpu.memory_space<vmem>>, vector<8x128xbf16>
    tpu.vector_store %arg8[%c0_102, %c203_103], %98 {strides = array<i32>} : memref<8x356xbf16, #tpu.memory_space<vmem>>, vector<8x128xbf16>,
    %c0_104 = arith.constant 0 : index
    %c22_105 = arith.constant 22 : index
    %100 = vector.load %arg8[%c0_104, %c22_105] : memref<8x356xbf16, #tpu.memory_space<vmem>>, vector<8x128xbf16>
    %c0_106 = arith.constant 0 : index
    %c0_107 = arith.constant 0 : index
    %101 = vector.load %arg10[%c0_106, %c0_107] : memref<56x256xbf16, #tpu.memory_space<vmem>>, vector<8x128xbf16>
    tpu.vector_store %arg10[%c0_106, %c0_107], %100 {strides = array<i32>} : memref<56x256xbf16, #tpu.memory_space<vmem>>, vector<8x128xbf16>,
    %c0_108 = arith.constant 0 : index
    %c200_109 = arith.constant 200 : index
    %102 = vector.load %arg8[%c0_108, %c200_109] : memref<8x356xbf16, #tpu.memory_space<vmem>>, vector<8x128xbf16>
    %c0_110 = arith.constant 0 : index
    %c128_111 = arith.constant 128 : index
    %103 = vector.load %arg10[%c0_110, %c128_111] : memref<56x256xbf16, #tpu.memory_space<vmem>>, vector<8x128xbf16>
    tpu.vector_store %arg10[%c0_110, %c128_111], %102 {strides = array<i32>} : memref<56x256xbf16, #tpu.memory_space<vmem>>, vector<8x128xbf16>,
    %c0_112 = arith.constant 0 : index
    %c23 = arith.constant 23 : index
    %104 = vector.load %arg8[%c0_112, %c23] : memref<8x356xbf16, #tpu.memory_space<vmem>>, vector<8x128xbf16>
    %c8_113 = arith.constant 8 : index
    %c0_114 = arith.constant 0 : index
    %105 = vector.load %arg10[%c8_113, %c0_114] : memref<56x256xbf16, #tpu.memory_space<vmem>>, vector<8x128xbf16>
    tpu.vector_store %arg10[%c8_113, %c0_114], %104 {strides = array<i32>} : memref<56x256xbf16, #tpu.memory_space<vmem>>, vector<8x128xbf16>,
    %c0_115 = arith.constant 0 : index
    %c201 = arith.constant 201 : index
    %106 = vector.load %arg8[%c0_115, %c201] : memref<8x356xbf16, #tpu.memory_space<vmem>>, vector<8x128xbf16>
    %c8_116 = arith.constant 8 : index
    %c128_117 = arith.constant 128 : index
    %107 = vector.load %arg10[%c8_116, %c128_117] : memref<56x256xbf16, #tpu.memory_space<vmem>>, vector<8x128xbf16>
    tpu.vector_store %arg10[%c8_116, %c128_117], %106 {strides = array<i32>} : memref<56x256xbf16, #tpu.memory_space<vmem>>, vector<8x128xbf16>,
    %c0_118 = arith.constant 0 : index
    %c24_119 = arith.constant 24 : index
    %108 = vector.load %arg8[%c0_118, %c24_119] : memref<8x356xbf16, #tpu.memory_space<vmem>>, vector<8x128xbf16>
    %c16_120 = arith.constant 16 : index
    %c0_121 = arith.constant 0 : index
    %109 = vector.load %arg10[%c16_120, %c0_121] : memref<56x256xbf16, #tpu.memory_space<vmem>>, vector<8x128xbf16>
    tpu.vector_store %arg10[%c16_120, %c0_121], %108 {strides = array<i32>} : memref<56x256xbf16, #tpu.memory_space<vmem>>, vector<8x128xbf16>,
    %c0_122 = arith.constant 0 : index
    %c202_123 = arith.constant 202 : index
    %110 = vector.load %arg8[%c0_122, %c202_123] : memref<8x356xbf16, #tpu.memory_space<vmem>>, vector<8x128xbf16>
    %c16_124 = arith.constant 16 : index
    %c128_125 = arith.constant 128 : index
    %111 = vector.load %arg10[%c16_124, %c128_125] : memref<56x256xbf16, #tpu.memory_space<vmem>>, vector<8x128xbf16>
    tpu.vector_store %arg10[%c16_124, %c128_125], %110 {strides = array<i32>} : memref<56x256xbf16, #tpu.memory_space<vmem>>, vector<8x128xbf16>,
    %c0_126 = arith.constant 0 : index
    %c25_127 = arith.constant 25 : index
    %112 = vector.load %arg8[%c0_126, %c25_127] : memref<8x356xbf16, #tpu.memory_space<vmem>>, vector<8x128xbf16>
    %c24_128 = arith.constant 24 : index
    %c0_129 = arith.constant 0 : index
    %113 = vector.load %arg10[%c24_128, %c0_129] : memref<56x256xbf16, #tpu.memory_space<vmem>>, vector<8x128xbf16>
    tpu.vector_store %arg10[%c24_128, %c0_129], %112 {strides = array<i32>} : memref<56x256xbf16, #tpu.memory_space<vmem>>, vector<8x128xbf16>,
    %c0_130 = arith.constant 0 : index
    %c203_131 = arith.constant 203 : index
    %114 = vector.load %arg8[%c0_130, %c203_131] : memref<8x356xbf16, #tpu.memory_space<vmem>>, vector<8x128xbf16>
    %c24_132 = arith.constant 24 : index
    %c128_133 = arith.constant 128 : index
    %115 = vector.load %arg10[%c24_132, %c128_133] : memref<56x256xbf16, #tpu.memory_space<vmem>>, vector<8x128xbf16>
    tpu.vector_store %arg10[%c24_132, %c128_133], %114 {strides = array<i32>} : memref<56x256xbf16, #tpu.memory_space<vmem>>, vector<8x128xbf16>,
    %c0_134 = arith.constant 0 : index
    %c26_135 = arith.constant 26 : index
    %116 = vector.load %arg8[%c0_134, %c26_135] : memref<8x356xbf16, #tpu.memory_space<vmem>>, vector<8x128xbf16>
    %c32 = arith.constant 32 : index
    %c0_136 = arith.constant 0 : index
    %117 = vector.load %arg10[%c32, %c0_136] : memref<56x256xbf16, #tpu.memory_space<vmem>>, vector<8x128xbf16>
    tpu.vector_store %arg10[%c32, %c0_136], %116 {strides = array<i32>} : memref<56x256xbf16, #tpu.memory_space<vmem>>, vector<8x128xbf16>,
    %c0_137 = arith.constant 0 : index
    %c204_138 = arith.constant 204 : index
    %118 = vector.load %arg8[%c0_137, %c204_138] : memref<8x356xbf16, #tpu.memory_space<vmem>>, vector<8x128xbf16>
    %c32_139 = arith.constant 32 : index
    %c128_140 = arith.constant 128 : index
    %119 = vector.load %arg10[%c32_139, %c128_140] : memref<56x256xbf16, #tpu.memory_space<vmem>>, vector<8x128xbf16>
    tpu.vector_store %arg10[%c32_139, %c128_140], %118 {strides = array<i32>} : memref<56x256xbf16, #tpu.memory_space<vmem>>, vector<8x128xbf16>,
    %c0_141 = arith.constant 0 : index
    %c27 = arith.constant 27 : index
    %120 = vector.load %arg8[%c0_141, %c27] : memref<8x356xbf16, #tpu.memory_space<vmem>>, vector<8x128xbf16>
    %c40 = arith.constant 40 : index
    %c0_142 = arith.constant 0 : index
    %121 = vector.load %arg10[%c40, %c0_142] : memref<56x256xbf16, #tpu.memory_space<vmem>>, vector<8x128xbf16>
    tpu.vector_store %arg10[%c40, %c0_142], %120 {strides = array<i32>} : memref<56x256xbf16, #tpu.memory_space<vmem>>, vector<8x128xbf16>,
    %c0_143 = arith.constant 0 : index
    %c205 = arith.constant 205 : index
    %122 = vector.load %arg8[%c0_143, %c205] : memref<8x356xbf16, #tpu.memory_space<vmem>>, vector<8x128xbf16>
    %c40_144 = arith.constant 40 : index
    %c128_145 = arith.constant 128 : index
    %123 = vector.load %arg10[%c40_144, %c128_145] : memref<56x256xbf16, #tpu.memory_space<vmem>>, vector<8x128xbf16>
    tpu.vector_store %arg10[%c40_144, %c128_145], %122 {strides = array<i32>} : memref<56x256xbf16, #tpu.memory_space<vmem>>, vector<8x128xbf16>,
    %c0_146 = arith.constant 0 : index
    %c28_147 = arith.constant 28 : index
    %124 = vector.load %arg8[%c0_146, %c28_147] : memref<8x356xbf16, #tpu.memory_space<vmem>>, vector<8x128xbf16>
    %c48 = arith.constant 48 : index
    %c0_148 = arith.constant 0 : index
    %125 = vector.load %arg10[%c48, %c0_148] : memref<56x256xbf16, #tpu.memory_space<vmem>>, vector<8x128xbf16>
    tpu.vector_store %arg10[%c48, %c0_148], %124 {strides = array<i32>} : memref<56x256xbf16, #tpu.memory_space<vmem>>, vector<8x128xbf16>,
    %c0_149 = arith.constant 0 : index
    %c206_150 = arith.constant 206 : index
    %126 = vector.load %arg8[%c0_149, %c206_150] : memref<8x356xbf16, #tpu.memory_space<vmem>>, vector<8x128xbf16>
    %c48_151 = arith.constant 48 : index
    %c128_152 = arith.constant 128 : index
    %127 = vector.load %arg10[%c48_151, %c128_152] : memref<56x256xbf16, #tpu.memory_space<vmem>>, vector<8x128xbf16>
    tpu.vector_store %arg10[%c48_151, %c128_152], %126 {strides = array<i32>} : memref<56x256xbf16, #tpu.memory_space<vmem>>, vector<8x128xbf16>,
    %c0_153 = arith.constant 0 : index
    %c0_154 = arith.constant 0 : index
    %c0_155 = arith.constant 0 : index
    %128 = vector.load %arg4[%c0_153, %c0_154, %c0_155] : memref<3x8x56xbf16, #tpu.memory_space<vmem>>, vector<1x8x56xbf16>
    %129 = vector.shape_cast %128 : vector<1x8x56xbf16> to vector<8x56xbf16>
    %c0_156 = arith.constant 0 : index
    %c0_157 = arith.constant 0 : index
    %130 = vector.load %arg10[%c0_156, %c0_157] : memref<56x256xbf16, #tpu.memory_space<vmem>>, vector<56x256xbf16>
    %cst_158 = arith.constant dense<0.000000e+00> : vector<8x256xf32>
    %131 = tpu.matmul %129, %130, %cst_158 {dimension_numbers = #tpu.dot_dimension_numbers<[1], [0], [0], [1], [0, 0, 1, 1], [], []>} : vector<8x56xbf16>, vector<56x256xbf16>, vector<8x256xf32> -> vector<8x256xf32>
    %132 = arith.addf %131, %94 : vector<8x256xf32>
    %133 = arith.truncf %132 : vector<8x256xf32> to vector<8x256xbf16>
    %134 = vector.extract_strided_slice %133 {offsets = [0, 0], sizes = [8, 128], strides = [1, 1]} : vector<8x256xbf16> to vector<8x128xbf16>
    %c0_159 = arith.constant 0 : index
    %c25_160 = arith.constant 25 : index
    %135 = vector.load %arg8[%c0_159, %c25_160] : memref<8x356xbf16, #tpu.memory_space<vmem>>, vector<8x128xbf16>
    tpu.vector_store %arg8[%c0_159, %c25_160], %134 {strides = array<i32>} : memref<8x356xbf16, #tpu.memory_space<vmem>>, vector<8x128xbf16>,
    %136 = vector.extract_strided_slice %133 {offsets = [0, 128], sizes = [8, 128], strides = [1, 1]} : vector<8x256xbf16> to vector<8x128xbf16>
    %c0_161 = arith.constant 0 : index
    %c203_162 = arith.constant 203 : index
    %137 = vector.load %arg8[%c0_161, %c203_162] : memref<8x356xbf16, #tpu.memory_space<vmem>>, vector<8x128xbf16>
    tpu.vector_store %arg8[%c0_161, %c203_162], %136 {strides = array<i32>} : memref<8x356xbf16, #tpu.memory_space<vmem>>, vector<8x128xbf16>,
    %c0_163 = arith.constant 0 : index
    %c16_164 = arith.constant 16 : index
    %138 = vector.load %arg8[%c0_163, %c16_164] : memref<8x356xbf16, #tpu.memory_space<vmem>>, vector<8x128xbf16>
    %c0_165 = arith.constant 0 : index
    %c0_166 = arith.constant 0 : index
    %139 = vector.load %arg10[%c0_165, %c0_166] : memref<56x256xbf16, #tpu.memory_space<vmem>>, vector<8x128xbf16>
    tpu.vector_store %arg10[%c0_165, %c0_166], %138 {strides = array<i32>} : memref<56x256xbf16, #tpu.memory_space<vmem>>, vector<8x128xbf16>,
    %c0_167 = arith.constant 0 : index
    %c194 = arith.constant 194 : index
    %140 = vector.load %arg8[%c0_167, %c194] : memref<8x356xbf16, #tpu.memory_space<vmem>>, vector<8x128xbf16>
    %c0_168 = arith.constant 0 : index
    %c128_169 = arith.constant 128 : index
    %141 = vector.load %arg10[%c0_168, %c128_169] : memref<56x256xbf16, #tpu.memory_space<vmem>>, vector<8x128xbf16>
    tpu.vector_store %arg10[%c0_168, %c128_169], %140 {strides = array<i32>} : memref<56x256xbf16, #tpu.memory_space<vmem>>, vector<8x128xbf16>,
    %c0_170 = arith.constant 0 : index
    %c19 = arith.constant 19 : index
    %142 = vector.load %arg8[%c0_170, %c19] : memref<8x356xbf16, #tpu.memory_space<vmem>>, vector<8x128xbf16>
    %c8_171 = arith.constant 8 : index
    %c0_172 = arith.constant 0 : index
    %143 = vector.load %arg10[%c8_171, %c0_172] : memref<56x256xbf16, #tpu.memory_space<vmem>>, vector<8x128xbf16>
    tpu.vector_store %arg10[%c8_171, %c0_172], %142 {strides = array<i32>} : memref<56x256xbf16, #tpu.memory_space<vmem>>, vector<8x128xbf16>,
    %c0_173 = arith.constant 0 : index
    %c197 = arith.constant 197 : index
    %144 = vector.load %arg8[%c0_173, %c197] : memref<8x356xbf16, #tpu.memory_space<vmem>>, vector<8x128xbf16>
    %c8_174 = arith.constant 8 : index
    %c128_175 = arith.constant 128 : index
    %145 = vector.load %arg10[%c8_174, %c128_175] : memref<56x256xbf16, #tpu.memory_space<vmem>>, vector<8x128xbf16>
    tpu.vector_store %arg10[%c8_174, %c128_175], %144 {strides = array<i32>} : memref<56x256xbf16, #tpu.memory_space<vmem>>, vector<8x128xbf16>,
    %c0_176 = arith.constant 0 : index
    %c22_177 = arith.constant 22 : index
    %146 = vector.load %arg8[%c0_176, %c22_177] : memref<8x356xbf16, #tpu.memory_space<vmem>>, vector<8x128xbf16>
    %c16_178 = arith.constant 16 : index
    %c0_179 = arith.constant 0 : index
    %147 = vector.load %arg10[%c16_178, %c0_179] : memref<56x256xbf16, #tpu.memory_space<vmem>>, vector<8x128xbf16>
    tpu.vector_store %arg10[%c16_178, %c0_179], %146 {strides = array<i32>} : memref<56x256xbf16, #tpu.memory_space<vmem>>, vector<8x128xbf16>,
    %c0_180 = arith.constant 0 : index
    %c200_181 = arith.constant 200 : index
    %148 = vector.load %arg8[%c0_180, %c200_181] : memref<8x356xbf16, #tpu.memory_space<vmem>>, vector<8x128xbf16>
    %c16_182 = arith.constant 16 : index
    %c128_183 = arith.constant 128 : index
    %149 = vector.load %arg10[%c16_182, %c128_183] : memref<56x256xbf16, #tpu.memory_space<vmem>>, vector<8x128xbf16>
    tpu.vector_store %arg10[%c16_182, %c128_183], %148 {strides = array<i32>} : memref<56x256xbf16, #tpu.memory_space<vmem>>, vector<8x128xbf16>,
    %c0_184 = arith.constant 0 : index
    %c25_185 = arith.constant 25 : index
    %150 = vector.load %arg8[%c0_184, %c25_185] : memref<8x356xbf16, #tpu.memory_space<vmem>>, vector<8x128xbf16>
    %c24_186 = arith.constant 24 : index
    %c0_187 = arith.constant 0 : index
    %151 = vector.load %arg10[%c24_186, %c0_187] : memref<56x256xbf16, #tpu.memory_space<vmem>>, vector<8x128xbf16>
    tpu.vector_store %arg10[%c24_186, %c0_187], %150 {strides = array<i32>} : memref<56x256xbf16, #tpu.memory_space<vmem>>, vector<8x128xbf16>,
    %c0_188 = arith.constant 0 : index
    %c203_189 = arith.constant 203 : index
    %152 = vector.load %arg8[%c0_188, %c203_189] : memref<8x356xbf16, #tpu.memory_space<vmem>>, vector<8x128xbf16>
    %c24_190 = arith.constant 24 : index
    %c128_191 = arith.constant 128 : index
    %153 = vector.load %arg10[%c24_190, %c128_191] : memref<56x256xbf16, #tpu.memory_space<vmem>>, vector<8x128xbf16>
    tpu.vector_store %arg10[%c24_190, %c128_191], %152 {strides = array<i32>} : memref<56x256xbf16, #tpu.memory_space<vmem>>, vector<8x128xbf16>,
    %c0_192 = arith.constant 0 : index
    %c28_193 = arith.constant 28 : index
    %154 = vector.load %arg8[%c0_192, %c28_193] : memref<8x356xbf16, #tpu.memory_space<vmem>>, vector<8x128xbf16>
    %c32_194 = arith.constant 32 : index
    %c0_195 = arith.constant 0 : index
    %155 = vector.load %arg10[%c32_194, %c0_195] : memref<56x256xbf16, #tpu.memory_space<vmem>>, vector<8x128xbf16>
    tpu.vector_store %arg10[%c32_194, %c0_195], %154 {strides = array<i32>} : memref<56x256xbf16, #tpu.memory_space<vmem>>, vector<8x128xbf16>,
    %c0_196 = arith.constant 0 : index
    %c206_197 = arith.constant 206 : index
    %156 = vector.load %arg8[%c0_196, %c206_197] : memref<8x356xbf16, #tpu.memory_space<vmem>>, vector<8x128xbf16>
    %c32_198 = arith.constant 32 : index
    %c128_199 = arith.constant 128 : index
    %157 = vector.load %arg10[%c32_198, %c128_199] : memref<56x256xbf16, #tpu.memory_space<vmem>>, vector<8x128xbf16>
    tpu.vector_store %arg10[%c32_198, %c128_199], %156 {strides = array<i32>} : memref<56x256xbf16, #tpu.memory_space<vmem>>, vector<8x128xbf16>,
    %c0_200 = arith.constant 0 : index
    %c31 = arith.constant 31 : index
    %158 = vector.load %arg8[%c0_200, %c31] : memref<8x356xbf16, #tpu.memory_space<vmem>>, vector<8x128xbf16>
    %c40_201 = arith.constant 40 : index
    %c0_202 = arith.constant 0 : index
    %159 = vector.load %arg10[%c40_201, %c0_202] : memref<56x256xbf16, #tpu.memory_space<vmem>>, vector<8x128xbf16>
    tpu.vector_store %arg10[%c40_201, %c0_202], %158 {strides = array<i32>} : memref<56x256xbf16, #tpu.memory_space<vmem>>, vector<8x128xbf16>,
    %c0_203 = arith.constant 0 : index
    %c209 = arith.constant 209 : index
    %160 = vector.load %arg8[%c0_203, %c209] : memref<8x356xbf16, #tpu.memory_space<vmem>>, vector<8x128xbf16>
    %c40_204 = arith.constant 40 : index
    %c128_205 = arith.constant 128 : index
    %161 = vector.load %arg10[%c40_204, %c128_205] : memref<56x256xbf16, #tpu.memory_space<vmem>>, vector<8x128xbf16>
    tpu.vector_store %arg10[%c40_204, %c128_205], %160 {strides = array<i32>} : memref<56x256xbf16, #tpu.memory_space<vmem>>, vector<8x128xbf16>,
    %c0_206 = arith.constant 0 : index
    %c34 = arith.constant 34 : index
    %162 = vector.load %arg8[%c0_206, %c34] : memref<8x356xbf16, #tpu.memory_space<vmem>>, vector<8x128xbf16>
    %c48_207 = arith.constant 48 : index
    %c0_208 = arith.constant 0 : index
    %163 = vector.load %arg10[%c48_207, %c0_208] : memref<56x256xbf16, #tpu.memory_space<vmem>>, vector<8x128xbf16>
    tpu.vector_store %arg10[%c48_207, %c0_208], %162 {strides = array<i32>} : memref<56x256xbf16, #tpu.memory_space<vmem>>, vector<8x128xbf16>,
    %c0_209 = arith.constant 0 : index
    %c212 = arith.constant 212 : index
    %164 = vector.load %arg8[%c0_209, %c212] : memref<8x356xbf16, #tpu.memory_space<vmem>>, vector<8x128xbf16>
    %c48_210 = arith.constant 48 : index
    %c128_211 = arith.constant 128 : index
    %165 = vector.load %arg10[%c48_210, %c128_211] : memref<56x256xbf16, #tpu.memory_space<vmem>>, vector<8x128xbf16>
    tpu.vector_store %arg10[%c48_210, %c128_211], %164 {strides = array<i32>} : memref<56x256xbf16, #tpu.memory_space<vmem>>, vector<8x128xbf16>,
    %c1_212 = arith.constant 1 : index
    %c0_213 = arith.constant 0 : index
    %c0_214 = arith.constant 0 : index
    %166 = vector.load %arg4[%c1_212, %c0_213, %c0_214] : memref<3x8x56xbf16, #tpu.memory_space<vmem>>, vector<1x8x56xbf16>
    %167 = vector.shape_cast %166 : vector<1x8x56xbf16> to vector<8x56xbf16>
    %c0_215 = arith.constant 0 : index
    %c0_216 = arith.constant 0 : index
    %168 = vector.load %arg10[%c0_215, %c0_216] : memref<56x256xbf16, #tpu.memory_space<vmem>>, vector<56x256xbf16>
    %cst_217 = arith.constant dense<0.000000e+00> : vector<8x256xf32>
    %169 = tpu.matmul %167, %168, %cst_217 {dimension_numbers = #tpu.dot_dimension_numbers<[1], [0], [0], [1], [0, 0, 1, 1], [], []>} : vector<8x56xbf16>, vector<56x256xbf16>, vector<8x256xf32> -> vector<8x256xf32>
    %170 = arith.addf %169, %132 : vector<8x256xf32>
    %171 = arith.truncf %170 : vector<8x256xf32> to vector<8x256xbf16>
    %172 = vector.extract_strided_slice %171 {offsets = [0, 0], sizes = [8, 128], strides = [1, 1]} : vector<8x256xbf16> to vector<8x128xbf16>
    %c0_218 = arith.constant 0 : index
    %c25_219 = arith.constant 25 : index
    %173 = vector.load %arg8[%c0_218, %c25_219] : memref<8x356xbf16, #tpu.memory_space<vmem>>, vector<8x128xbf16>
    tpu.vector_store %arg8[%c0_218, %c25_219], %172 {strides = array<i32>} : memref<8x356xbf16, #tpu.memory_space<vmem>>, vector<8x128xbf16>,
    %174 = vector.extract_strided_slice %171 {offsets = [0, 128], sizes = [8, 128], strides = [1, 1]} : vector<8x256xbf16> to vector<8x128xbf16>
    %c0_220 = arith.constant 0 : index
    %c203_221 = arith.constant 203 : index
    %175 = vector.load %arg8[%c0_220, %c203_221] : memref<8x356xbf16, #tpu.memory_space<vmem>>, vector<8x128xbf16>
    tpu.vector_store %arg8[%c0_220, %c203_221], %174 {strides = array<i32>} : memref<8x356xbf16, #tpu.memory_space<vmem>>, vector<8x128xbf16>,
    %c0_222 = arith.constant 0 : index
    %c10 = arith.constant 10 : index
    %176 = vector.load %arg8[%c0_222, %c10] : memref<8x356xbf16, #tpu.memory_space<vmem>>, vector<8x128xbf16>
    %c0_223 = arith.constant 0 : index
    %c0_224 = arith.constant 0 : index
    %177 = vector.load %arg10[%c0_223, %c0_224] : memref<56x256xbf16, #tpu.memory_space<vmem>>, vector<8x128xbf16>
    tpu.vector_store %arg10[%c0_223, %c0_224], %176 {strides = array<i32>} : memref<56x256xbf16, #tpu.memory_space<vmem>>, vector<8x128xbf16>,
    %c0_225 = arith.constant 0 : index
    %c188 = arith.constant 188 : index
    %178 = vector.load %arg8[%c0_225, %c188] : memref<8x356xbf16, #tpu.memory_space<vmem>>, vector<8x128xbf16>
    %c0_226 = arith.constant 0 : index
    %c128_227 = arith.constant 128 : index
    %179 = vector.load %arg10[%c0_226, %c128_227] : memref<56x256xbf16, #tpu.memory_space<vmem>>, vector<8x128xbf16>
    tpu.vector_store %arg10[%c0_226, %c128_227], %178 {strides = array<i32>} : memref<56x256xbf16, #tpu.memory_space<vmem>>, vector<8x128xbf16>,
    %c0_228 = arith.constant 0 : index
    %c15 = arith.constant 15 : index
    %180 = vector.load %arg8[%c0_228, %c15] : memref<8x356xbf16, #tpu.memory_space<vmem>>, vector<8x128xbf16>
    %c8_229 = arith.constant 8 : index
    %c0_230 = arith.constant 0 : index
    %181 = vector.load %arg10[%c8_229, %c0_230] : memref<56x256xbf16, #tpu.memory_space<vmem>>, vector<8x128xbf16>
    tpu.vector_store %arg10[%c8_229, %c0_230], %180 {strides = array<i32>} : memref<56x256xbf16, #tpu.memory_space<vmem>>, vector<8x128xbf16>,
    %c0_231 = arith.constant 0 : index
    %c193 = arith.constant 193 : index
    %182 = vector.load %arg8[%c0_231, %c193] : memref<8x356xbf16, #tpu.memory_space<vmem>>, vector<8x128xbf16>
    %c8_232 = arith.constant 8 : index
    %c128_233 = arith.constant 128 : index
    %183 = vector.load %arg10[%c8_232, %c128_233] : memref<56x256xbf16, #tpu.memory_space<vmem>>, vector<8x128xbf16>
    tpu.vector_store %arg10[%c8_232, %c128_233], %182 {strides = array<i32>} : memref<56x256xbf16, #tpu.memory_space<vmem>>, vector<8x128xbf16>,
    %c0_234 = arith.constant 0 : index
    %c20_235 = arith.constant 20 : index
    %184 = vector.load %arg8[%c0_234, %c20_235] : memref<8x356xbf16, #tpu.memory_space<vmem>>, vector<8x128xbf16>
    %c16_236 = arith.constant 16 : index
    %c0_237 = arith.constant 0 : index
    %185 = vector.load %arg10[%c16_236, %c0_237] : memref<56x256xbf16, #tpu.memory_space<vmem>>, vector<8x128xbf16>
    tpu.vector_store %arg10[%c16_236, %c0_237], %184 {strides = array<i32>} : memref<56x256xbf16, #tpu.memory_space<vmem>>, vector<8x128xbf16>,
    %c0_238 = arith.constant 0 : index
    %c198_239 = arith.constant 198 : index
    %186 = vector.load %arg8[%c0_238, %c198_239] : memref<8x356xbf16, #tpu.memory_space<vmem>>, vector<8x128xbf16>
    %c16_240 = arith.constant 16 : index
    %c128_241 = arith.constant 128 : index
    %187 = vector.load %arg10[%c16_240, %c128_241] : memref<56x256xbf16, #tpu.memory_space<vmem>>, vector<8x128xbf16>
    tpu.vector_store %arg10[%c16_240, %c128_241], %186 {strides = array<i32>} : memref<56x256xbf16, #tpu.memory_space<vmem>>, vector<8x128xbf16>,
    %c0_242 = arith.constant 0 : index
    %c25_243 = arith.constant 25 : index
    %188 = vector.load %arg8[%c0_242, %c25_243] : memref<8x356xbf16, #tpu.memory_space<vmem>>, vector<8x128xbf16>
    %c24_244 = arith.constant 24 : index
    %c0_245 = arith.constant 0 : index
    %189 = vector.load %arg10[%c24_244, %c0_245] : memref<56x256xbf16, #tpu.memory_space<vmem>>, vector<8x128xbf16>
    tpu.vector_store %arg10[%c24_244, %c0_245], %188 {strides = array<i32>} : memref<56x256xbf16, #tpu.memory_space<vmem>>, vector<8x128xbf16>,
    %c0_246 = arith.constant 0 : index
    %c203_247 = arith.constant 203 : index
    %190 = vector.load %arg8[%c0_246, %c203_247] : memref<8x356xbf16, #tpu.memory_space<vmem>>, vector<8x128xbf16>
    %c24_248 = arith.constant 24 : index
    %c128_249 = arith.constant 128 : index
    %191 = vector.load %arg10[%c24_248, %c128_249] : memref<56x256xbf16, #tpu.memory_space<vmem>>, vector<8x128xbf16>
    tpu.vector_store %arg10[%c24_248, %c128_249], %190 {strides = array<i32>} : memref<56x256xbf16, #tpu.memory_space<vmem>>, vector<8x128xbf16>,
    %c0_250 = arith.constant 0 : index
    %c30_251 = arith.constant 30 : index
    %192 = vector.load %arg8[%c0_250, %c30_251] : memref<8x356xbf16, #tpu.memory_space<vmem>>, vector<8x128xbf16>
    %c32_252 = arith.constant 32 : index
    %c0_253 = arith.constant 0 : index
    %193 = vector.load %arg10[%c32_252, %c0_253] : memref<56x256xbf16, #tpu.memory_space<vmem>>, vector<8x128xbf16>
    tpu.vector_store %arg10[%c32_252, %c0_253], %192 {strides = array<i32>} : memref<56x256xbf16, #tpu.memory_space<vmem>>, vector<8x128xbf16>,
    %c0_254 = arith.constant 0 : index
    %c208_255 = arith.constant 208 : index
    %194 = vector.load %arg8[%c0_254, %c208_255] : memref<8x356xbf16, #tpu.memory_space<vmem>>, vector<8x128xbf16>
    %c32_256 = arith.constant 32 : index
    %c128_257 = arith.constant 128 : index
    %195 = vector.load %arg10[%c32_256, %c128_257] : memref<56x256xbf16, #tpu.memory_space<vmem>>, vector<8x128xbf16>
    tpu.vector_store %arg10[%c32_256, %c128_257], %194 {strides = array<i32>} : memref<56x256xbf16, #tpu.memory_space<vmem>>, vector<8x128xbf16>,
    %c0_258 = arith.constant 0 : index
    %c35 = arith.constant 35 : index
    %196 = vector.load %arg8[%c0_258, %c35] : memref<8x356xbf16, #tpu.memory_space<vmem>>, vector<8x128xbf16>
    %c40_259 = arith.constant 40 : index
    %c0_260 = arith.constant 0 : index
    %197 = vector.load %arg10[%c40_259, %c0_260] : memref<56x256xbf16, #tpu.memory_space<vmem>>, vector<8x128xbf16>
    tpu.vector_store %arg10[%c40_259, %c0_260], %196 {strides = array<i32>} : memref<56x256xbf16, #tpu.memory_space<vmem>>, vector<8x128xbf16>,
    %c0_261 = arith.constant 0 : index
    %c213 = arith.constant 213 : index
    %198 = vector.load %arg8[%c0_261, %c213] : memref<8x356xbf16, #tpu.memory_space<vmem>>, vector<8x128xbf16>
    %c40_262 = arith.constant 40 : index
    %c128_263 = arith.constant 128 : index
    %199 = vector.load %arg10[%c40_262, %c128_263] : memref<56x256xbf16, #tpu.memory_space<vmem>>, vector<8x128xbf16>
    tpu.vector_store %arg10[%c40_262, %c128_263], %198 {strides = array<i32>} : memref<56x256xbf16, #tpu.memory_space<vmem>>, vector<8x128xbf16>,
    %c0_264 = arith.constant 0 : index
    %c40_265 = arith.constant 40 : index
    %200 = vector.load %arg8[%c0_264, %c40_265] : memref<8x356xbf16, #tpu.memory_space<vmem>>, vector<8x128xbf16>
    %c48_266 = arith.constant 48 : index
    %c0_267 = arith.constant 0 : index
    %201 = vector.load %arg10[%c48_266, %c0_267] : memref<56x256xbf16, #tpu.memory_space<vmem>>, vector<8x128xbf16>
    tpu.vector_store %arg10[%c48_266, %c0_267], %200 {strides = array<i32>} : memref<56x256xbf16, #tpu.memory_space<vmem>>, vector<8x128xbf16>,
    %c0_268 = arith.constant 0 : index
    %c218 = arith.constant 218 : index
    %202 = vector.load %arg8[%c0_268, %c218] : memref<8x356xbf16, #tpu.memory_space<vmem>>, vector<8x128xbf16>
    %c48_269 = arith.constant 48 : index
    %c128_270 = arith.constant 128 : index
    %203 = vector.load %arg10[%c48_269, %c128_270] : memref<56x256xbf16, #tpu.memory_space<vmem>>, vector<8x128xbf16>
    tpu.vector_store %arg10[%c48_269, %c128_270], %202 {strides = array<i32>} : memref<56x256xbf16, #tpu.memory_space<vmem>>, vector<8x128xbf16>,
    %c2_271 = arith.constant 2 : index
    %c0_272 = arith.constant 0 : index
    %c0_273 = arith.constant 0 : index
    %204 = vector.load %arg4[%c2_271, %c0_272, %c0_273] : memref<3x8x56xbf16, #tpu.memory_space<vmem>>, vector<1x8x56xbf16>
    %205 = vector.shape_cast %204 : vector<1x8x56xbf16> to vector<8x56xbf16>
    %c0_274 = arith.constant 0 : index
    %c0_275 = arith.constant 0 : index
    %206 = vector.load %arg10[%c0_274, %c0_275] : memref<56x256xbf16, #tpu.memory_space<vmem>>, vector<56x256xbf16>
    %cst_276 = arith.constant dense<0.000000e+00> : vector<8x256xf32>
    %207 = tpu.matmul %205, %206, %cst_276 {dimension_numbers = #tpu.dot_dimension_numbers<[1], [0], [0], [1], [0, 0, 1, 1], [], []>} : vector<8x56xbf16>, vector<56x256xbf16>, vector<8x256xf32> -> vector<8x256xf32>
    %208 = arith.addf %207, %170 : vector<8x256xf32>
    %209 = arith.addf %83, %208 : vector<8x256xf32>
    %c2_277 = arith.constant 2 : index
    %c0_278 = arith.constant 0 : index
    %c0_279 = arith.constant 0 : index
    %210 = vector.load %arg1[%c2_277, %c0_278, %c0_279] : memref<3x8x1xf32, #tpu.memory_space<vmem>>, vector<1x8x1xf32>
    %211 = vector.shape_cast %210 : vector<1x8x1xf32> to vector<8x1xf32>
    %c2_280 = arith.constant 2 : index
    %c0_281 = arith.constant 0 : index
    %c0_282 = arith.constant 0 : index
    %212 = vector.load %arg2[%c2_280, %c0_281, %c0_282] : memref<3x8x1xf32, #tpu.memory_space<vmem>>, vector<1x8x1xf32>
    %213 = vector.shape_cast %212 : vector<1x8x1xf32> to vector<8x1xf32>
    %214 = vector.broadcast %211 : vector<8x1xf32> to vector<8x256xf32>
    %215 = arith.mulf %214, %4 : vector<8x256xf32>
    %216 = math.sin %215 : vector<8x256xf32>
    %217 = arith.mulf %216, %216 : vector<8x256xf32>
    %218 = vector.broadcast %213 : vector<8x1xf32> to vector<8x256xf32>
    %219 = arith.mulf %217, %218 : vector<8x256xf32>
    %220 = arith.addf %4, %219 : vector<8x256xf32>
    %221 = arith.truncf %220 : vector<8x256xf32> to vector<8x256xbf16>
    %222 = vector.extract_strided_slice %221 {offsets = [0, 0], sizes = [8, 128], strides = [1, 1]} : vector<8x256xbf16> to vector<8x128xbf16>
    %c0_283 = arith.constant 0 : index
    %c25_284 = arith.constant 25 : index
    %223 = vector.load %arg8[%c0_283, %c25_284] : memref<8x356xbf16, #tpu.memory_space<vmem>>, vector<8x128xbf16>
    tpu.vector_store %arg8[%c0_283, %c25_284], %222 {strides = array<i32>} : memref<8x356xbf16, #tpu.memory_space<vmem>>, vector<8x128xbf16>,
    %224 = vector.extract_strided_slice %221 {offsets = [0, 128], sizes = [8, 128], strides = [1, 1]} : vector<8x256xbf16> to vector<8x128xbf16>
    %c0_285 = arith.constant 0 : index
    %c203_286 = arith.constant 203 : index
    %225 = vector.load %arg8[%c0_285, %c203_286] : memref<8x356xbf16, #tpu.memory_space<vmem>>, vector<8x128xbf16>
    tpu.vector_store %arg8[%c0_285, %c203_286], %224 {strides = array<i32>} : memref<8x356xbf16, #tpu.memory_space<vmem>>, vector<8x128xbf16>,
    %c0_287 = arith.constant 0 : index
    %c20_288 = arith.constant 20 : index
    %226 = vector.load %arg8[%c0_287, %c20_288] : memref<8x356xbf16, #tpu.memory_space<vmem>>, vector<8x128xbf16>
    %c0_289 = arith.constant 0 : index
    %c0_290 = arith.constant 0 : index
    %227 = vector.load %arg11[%c0_289, %c0_290] : memref<88x256xbf16, #tpu.memory_space<vmem>>, vector<8x128xbf16>
    tpu.vector_store %arg11[%c0_289, %c0_290], %226 {strides = array<i32>} : memref<88x256xbf16, #tpu.memory_space<vmem>>, vector<8x128xbf16>,
    %c0_291 = arith.constant 0 : index
    %c198_292 = arith.constant 198 : index
    %228 = vector.load %arg8[%c0_291, %c198_292] : memref<8x356xbf16, #tpu.memory_space<vmem>>, vector<8x128xbf16>
    %c0_293 = arith.constant 0 : index
    %c128_294 = arith.constant 128 : index
    %229 = vector.load %arg11[%c0_293, %c128_294] : memref<88x256xbf16, #tpu.memory_space<vmem>>, vector<8x128xbf16>
    tpu.vector_store %arg11[%c0_293, %c128_294], %228 {strides = array<i32>} : memref<88x256xbf16, #tpu.memory_space<vmem>>, vector<8x128xbf16>,
    %c0_295 = arith.constant 0 : index
    %c21 = arith.constant 21 : index
    %230 = vector.load %arg8[%c0_295, %c21] : memref<8x356xbf16, #tpu.memory_space<vmem>>, vector<8x128xbf16>
    %c8_296 = arith.constant 8 : index
    %c0_297 = arith.constant 0 : index
    %231 = vector.load %arg11[%c8_296, %c0_297] : memref<88x256xbf16, #tpu.memory_space<vmem>>, vector<8x128xbf16>
    tpu.vector_store %arg11[%c8_296, %c0_297], %230 {strides = array<i32>} : memref<88x256xbf16, #tpu.memory_space<vmem>>, vector<8x128xbf16>,
    %c0_298 = arith.constant 0 : index
    %c199 = arith.constant 199 : index
    %232 = vector.load %arg8[%c0_298, %c199] : memref<8x356xbf16, #tpu.memory_space<vmem>>, vector<8x128xbf16>
    %c8_299 = arith.constant 8 : index
    %c128_300 = arith.constant 128 : index
    %233 = vector.load %arg11[%c8_299, %c128_300] : memref<88x256xbf16, #tpu.memory_space<vmem>>, vector<8x128xbf16>
    tpu.vector_store %arg11[%c8_299, %c128_300], %232 {strides = array<i32>} : memref<88x256xbf16, #tpu.memory_space<vmem>>, vector<8x128xbf16>,
    %c0_301 = arith.constant 0 : index
    %c22_302 = arith.constant 22 : index
    %234 = vector.load %arg8[%c0_301, %c22_302] : memref<8x356xbf16, #tpu.memory_space<vmem>>, vector<8x128xbf16>
    %c16_303 = arith.constant 16 : index
    %c0_304 = arith.constant 0 : index
    %235 = vector.load %arg11[%c16_303, %c0_304] : memref<88x256xbf16, #tpu.memory_space<vmem>>, vector<8x128xbf16>
    tpu.vector_store %arg11[%c16_303, %c0_304], %234 {strides = array<i32>} : memref<88x256xbf16, #tpu.memory_space<vmem>>, vector<8x128xbf16>,
    %c0_305 = arith.constant 0 : index
    %c200_306 = arith.constant 200 : index
    %236 = vector.load %arg8[%c0_305, %c200_306] : memref<8x356xbf16, #tpu.memory_space<vmem>>, vector<8x128xbf16>
    %c16_307 = arith.constant 16 : index
    %c128_308 = arith.constant 128 : index
    %237 = vector.load %arg11[%c16_307, %c128_308] : memref<88x256xbf16, #tpu.memory_space<vmem>>, vector<8x128xbf16>
    tpu.vector_store %arg11[%c16_307, %c128_308], %236 {strides = array<i32>} : memref<88x256xbf16, #tpu.memory_space<vmem>>, vector<8x128xbf16>,
    %c0_309 = arith.constant 0 : index
    %c23_310 = arith.constant 23 : index
    %238 = vector.load %arg8[%c0_309, %c23_310] : memref<8x356xbf16, #tpu.memory_space<vmem>>, vector<8x128xbf16>
    %c24_311 = arith.constant 24 : index
    %c0_312 = arith.constant 0 : index
    %239 = vector.load %arg11[%c24_311, %c0_312] : memref<88x256xbf16, #tpu.memory_space<vmem>>, vector<8x128xbf16>
    tpu.vector_store %arg11[%c24_311, %c0_312], %238 {strides = array<i32>} : memref<88x256xbf16, #tpu.memory_space<vmem>>, vector<8x128xbf16>,
    %c0_313 = arith.constant 0 : index
    %c201_314 = arith.constant 201 : index
    %240 = vector.load %arg8[%c0_313, %c201_314] : memref<8x356xbf16, #tpu.memory_space<vmem>>, vector<8x128xbf16>
    %c24_315 = arith.constant 24 : index
    %c128_316 = arith.constant 128 : index
    %241 = vector.load %arg11[%c24_315, %c128_316] : memref<88x256xbf16, #tpu.memory_space<vmem>>, vector<8x128xbf16>
    tpu.vector_store %arg11[%c24_315, %c128_316], %240 {strides = array<i32>} : memref<88x256xbf16, #tpu.memory_space<vmem>>, vector<8x128xbf16>,
    %c0_317 = arith.constant 0 : index
    %c24_318 = arith.constant 24 : index
    %242 = vector.load %arg8[%c0_317, %c24_318] : memref<8x356xbf16, #tpu.memory_space<vmem>>, vector<8x128xbf16>
    %c32_319 = arith.constant 32 : index
    %c0_320 = arith.constant 0 : index
    %243 = vector.load %arg11[%c32_319, %c0_320] : memref<88x256xbf16, #tpu.memory_space<vmem>>, vector<8x128xbf16>
    tpu.vector_store %arg11[%c32_319, %c0_320], %242 {strides = array<i32>} : memref<88x256xbf16, #tpu.memory_space<vmem>>, vector<8x128xbf16>,
    %c0_321 = arith.constant 0 : index
    %c202_322 = arith.constant 202 : index
    %244 = vector.load %arg8[%c0_321, %c202_322] : memref<8x356xbf16, #tpu.memory_space<vmem>>, vector<8x128xbf16>
    %c32_323 = arith.constant 32 : index
    %c128_324 = arith.constant 128 : index
    %245 = vector.load %arg11[%c32_323, %c128_324] : memref<88x256xbf16, #tpu.memory_space<vmem>>, vector<8x128xbf16>
    tpu.vector_store %arg11[%c32_323, %c128_324], %244 {strides = array<i32>} : memref<88x256xbf16, #tpu.memory_space<vmem>>, vector<8x128xbf16>,
    %c0_325 = arith.constant 0 : index
    %c25_326 = arith.constant 25 : index
    %246 = vector.load %arg8[%c0_325, %c25_326] : memref<8x356xbf16, #tpu.memory_space<vmem>>, vector<8x128xbf16>
    %c40_327 = arith.constant 40 : index
    %c0_328 = arith.constant 0 : index
    %247 = vector.load %arg11[%c40_327, %c0_328] : memref<88x256xbf16, #tpu.memory_space<vmem>>, vector<8x128xbf16>
    tpu.vector_store %arg11[%c40_327, %c0_328], %246 {strides = array<i32>} : memref<88x256xbf16, #tpu.memory_space<vmem>>, vector<8x128xbf16>,
    %c0_329 = arith.constant 0 : index
    %c203_330 = arith.constant 203 : index
    %248 = vector.load %arg8[%c0_329, %c203_330] : memref<8x356xbf16, #tpu.memory_space<vmem>>, vector<8x128xbf16>
    %c40_331 = arith.constant 40 : index
    %c128_332 = arith.constant 128 : index
    %249 = vector.load %arg11[%c40_331, %c128_332] : memref<88x256xbf16, #tpu.memory_space<vmem>>, vector<8x128xbf16>
    tpu.vector_store %arg11[%c40_331, %c128_332], %248 {strides = array<i32>} : memref<88x256xbf16, #tpu.memory_space<vmem>>, vector<8x128xbf16>,
    %c0_333 = arith.constant 0 : index
    %c26_334 = arith.constant 26 : index
    %250 = vector.load %arg8[%c0_333, %c26_334] : memref<8x356xbf16, #tpu.memory_space<vmem>>, vector<8x128xbf16>
    %c48_335 = arith.constant 48 : index
    %c0_336 = arith.constant 0 : index
    %251 = vector.load %arg11[%c48_335, %c0_336] : memref<88x256xbf16, #tpu.memory_space<vmem>>, vector<8x128xbf16>
    tpu.vector_store %arg11[%c48_335, %c0_336], %250 {strides = array<i32>} : memref<88x256xbf16, #tpu.memory_space<vmem>>, vector<8x128xbf16>,
    %c0_337 = arith.constant 0 : index
    %c204_338 = arith.constant 204 : index
    %252 = vector.load %arg8[%c0_337, %c204_338] : memref<8x356xbf16, #tpu.memory_space<vmem>>, vector<8x128xbf16>
    %c48_339 = arith.constant 48 : index
    %c128_340 = arith.constant 128 : index
    %253 = vector.load %arg11[%c48_339, %c128_340] : memref<88x256xbf16, #tpu.memory_space<vmem>>, vector<8x128xbf16>
    tpu.vector_store %arg11[%c48_339, %c128_340], %252 {strides = array<i32>} : memref<88x256xbf16, #tpu.memory_space<vmem>>, vector<8x128xbf16>,
    %c0_341 = arith.constant 0 : index
    %c27_342 = arith.constant 27 : index
    %254 = vector.load %arg8[%c0_341, %c27_342] : memref<8x356xbf16, #tpu.memory_space<vmem>>, vector<8x128xbf16>
    %c56 = arith.constant 56 : index
    %c0_343 = arith.constant 0 : index
    %255 = vector.load %arg11[%c56, %c0_343] : memref<88x256xbf16, #tpu.memory_space<vmem>>, vector<8x128xbf16>
    tpu.vector_store %arg11[%c56, %c0_343], %254 {strides = array<i32>} : memref<88x256xbf16, #tpu.memory_space<vmem>>, vector<8x128xbf16>,
    %c0_344 = arith.constant 0 : index
    %c205_345 = arith.constant 205 : index
    %256 = vector.load %arg8[%c0_344, %c205_345] : memref<8x356xbf16, #tpu.memory_space<vmem>>, vector<8x128xbf16>
    %c56_346 = arith.constant 56 : index
    %c128_347 = arith.constant 128 : index
    %257 = vector.load %arg11[%c56_346, %c128_347] : memref<88x256xbf16, #tpu.memory_space<vmem>>, vector<8x128xbf16>
    tpu.vector_store %arg11[%c56_346, %c128_347], %256 {strides = array<i32>} : memref<88x256xbf16, #tpu.memory_space<vmem>>, vector<8x128xbf16>,
    %c0_348 = arith.constant 0 : index
    %c28_349 = arith.constant 28 : index
    %258 = vector.load %arg8[%c0_348, %c28_349] : memref<8x356xbf16, #tpu.memory_space<vmem>>, vector<8x128xbf16>
    %c64 = arith.constant 64 : index
    %c0_350 = arith.constant 0 : index
    %259 = vector.load %arg11[%c64, %c0_350] : memref<88x256xbf16, #tpu.memory_space<vmem>>, vector<8x128xbf16>
    tpu.vector_store %arg11[%c64, %c0_350], %258 {strides = array<i32>} : memref<88x256xbf16, #tpu.memory_space<vmem>>, vector<8x128xbf16>,
    %c0_351 = arith.constant 0 : index
    %c206_352 = arith.constant 206 : index
    %260 = vector.load %arg8[%c0_351, %c206_352] : memref<8x356xbf16, #tpu.memory_space<vmem>>, vector<8x128xbf16>
    %c64_353 = arith.constant 64 : index
    %c128_354 = arith.constant 128 : index
    %261 = vector.load %arg11[%c64_353, %c128_354] : memref<88x256xbf16, #tpu.memory_space<vmem>>, vector<8x128xbf16>
    tpu.vector_store %arg11[%c64_353, %c128_354], %260 {strides = array<i32>} : memref<88x256xbf16, #tpu.memory_space<vmem>>, vector<8x128xbf16>,
    %c0_355 = arith.constant 0 : index
    %c29 = arith.constant 29 : index
    %262 = vector.load %arg8[%c0_355, %c29] : memref<8x356xbf16, #tpu.memory_space<vmem>>, vector<8x128xbf16>
    %c72 = arith.constant 72 : index
    %c0_356 = arith.constant 0 : index
    %263 = vector.load %arg11[%c72, %c0_356] : memref<88x256xbf16, #tpu.memory_space<vmem>>, vector<8x128xbf16>
    tpu.vector_store %arg11[%c72, %c0_356], %262 {strides = array<i32>} : memref<88x256xbf16, #tpu.memory_space<vmem>>, vector<8x128xbf16>,
    %c0_357 = arith.constant 0 : index
    %c207 = arith.constant 207 : index
    %264 = vector.load %arg8[%c0_357, %c207] : memref<8x356xbf16, #tpu.memory_space<vmem>>, vector<8x128xbf16>
    %c72_358 = arith.constant 72 : index
    %c128_359 = arith.constant 128 : index
    %265 = vector.load %arg11[%c72_358, %c128_359] : memref<88x256xbf16, #tpu.memory_space<vmem>>, vector<8x128xbf16>
    tpu.vector_store %arg11[%c72_358, %c128_359], %264 {strides = array<i32>} : memref<88x256xbf16, #tpu.memory_space<vmem>>, vector<8x128xbf16>,
    %c0_360 = arith.constant 0 : index
    %c30_361 = arith.constant 30 : index
    %266 = vector.load %arg8[%c0_360, %c30_361] : memref<8x356xbf16, #tpu.memory_space<vmem>>, vector<8x128xbf16>
    %c80 = arith.constant 80 : index
    %c0_362 = arith.constant 0 : index
    %267 = vector.load %arg11[%c80, %c0_362] : memref<88x256xbf16, #tpu.memory_space<vmem>>, vector<8x128xbf16>
    tpu.vector_store %arg11[%c80, %c0_362], %266 {strides = array<i32>} : memref<88x256xbf16, #tpu.memory_space<vmem>>, vector<8x128xbf16>,
    %c0_363 = arith.constant 0 : index
    %c208_364 = arith.constant 208 : index
    %268 = vector.load %arg8[%c0_363, %c208_364] : memref<8x356xbf16, #tpu.memory_space<vmem>>, vector<8x128xbf16>
    %c80_365 = arith.constant 80 : index
    %c128_366 = arith.constant 128 : index
    %269 = vector.load %arg11[%c80_365, %c128_366] : memref<88x256xbf16, #tpu.memory_space<vmem>>, vector<8x128xbf16>
    tpu.vector_store %arg11[%c80_365, %c128_366], %268 {strides = array<i32>} : memref<88x256xbf16, #tpu.memory_space<vmem>>, vector<8x128xbf16>,
    %c0_367 = arith.constant 0 : index
    %c0_368 = arith.constant 0 : index
    %c0_369 = arith.constant 0 : index
    %270 = vector.load %arg5[%c0_367, %c0_368, %c0_369] : memref<3x8x88xbf16, #tpu.memory_space<vmem>>, vector<1x8x88xbf16>
    %271 = vector.shape_cast %270 : vector<1x8x88xbf16> to vector<8x88xbf16>
    %c0_370 = arith.constant 0 : index
    %c0_371 = arith.constant 0 : index
    %272 = vector.load %arg11[%c0_370, %c0_371] : memref<88x256xbf16, #tpu.memory_space<vmem>>, vector<88x256xbf16>
    %cst_372 = arith.constant dense<0.000000e+00> : vector<8x256xf32>
    %273 = tpu.matmul %271, %272, %cst_372 {dimension_numbers = #tpu.dot_dimension_numbers<[1], [0], [0], [1], [0, 0, 1, 1], [], []>} : vector<8x88xbf16>, vector<88x256xbf16>, vector<8x256xf32> -> vector<8x256xf32>
    %274 = arith.addf %273, %220 : vector<8x256xf32>
    %275 = arith.truncf %274 : vector<8x256xf32> to vector<8x256xbf16>
    %276 = vector.extract_strided_slice %275 {offsets = [0, 0], sizes = [8, 128], strides = [1, 1]} : vector<8x256xbf16> to vector<8x128xbf16>
    %c0_373 = arith.constant 0 : index
    %c25_374 = arith.constant 25 : index
    %277 = vector.load %arg8[%c0_373, %c25_374] : memref<8x356xbf16, #tpu.memory_space<vmem>>, vector<8x128xbf16>
    tpu.vector_store %arg8[%c0_373, %c25_374], %276 {strides = array<i32>} : memref<8x356xbf16, #tpu.memory_space<vmem>>, vector<8x128xbf16>,
    %278 = vector.extract_strided_slice %275 {offsets = [0, 128], sizes = [8, 128], strides = [1, 1]} : vector<8x256xbf16> to vector<8x128xbf16>
    %c0_375 = arith.constant 0 : index
    %c203_376 = arith.constant 203 : index
    %279 = vector.load %arg8[%c0_375, %c203_376] : memref<8x356xbf16, #tpu.memory_space<vmem>>, vector<8x128xbf16>
    tpu.vector_store %arg8[%c0_375, %c203_376], %278 {strides = array<i32>} : memref<8x356xbf16, #tpu.memory_space<vmem>>, vector<8x128xbf16>,
    %c0_377 = arith.constant 0 : index
    %c10_378 = arith.constant 10 : index
    %280 = vector.load %arg8[%c0_377, %c10_378] : memref<8x356xbf16, #tpu.memory_space<vmem>>, vector<8x128xbf16>
    %c0_379 = arith.constant 0 : index
    %c0_380 = arith.constant 0 : index
    %281 = vector.load %arg11[%c0_379, %c0_380] : memref<88x256xbf16, #tpu.memory_space<vmem>>, vector<8x128xbf16>
    tpu.vector_store %arg11[%c0_379, %c0_380], %280 {strides = array<i32>} : memref<88x256xbf16, #tpu.memory_space<vmem>>, vector<8x128xbf16>,
    %c0_381 = arith.constant 0 : index
    %c188_382 = arith.constant 188 : index
    %282 = vector.load %arg8[%c0_381, %c188_382] : memref<8x356xbf16, #tpu.memory_space<vmem>>, vector<8x128xbf16>
    %c0_383 = arith.constant 0 : index
    %c128_384 = arith.constant 128 : index
    %283 = vector.load %arg11[%c0_383, %c128_384] : memref<88x256xbf16, #tpu.memory_space<vmem>>, vector<8x128xbf16>
    tpu.vector_store %arg11[%c0_383, %c128_384], %282 {strides = array<i32>} : memref<88x256xbf16, #tpu.memory_space<vmem>>, vector<8x128xbf16>,
    %c0_385 = arith.constant 0 : index
    %c13 = arith.constant 13 : index
    %284 = vector.load %arg8[%c0_385, %c13] : memref<8x356xbf16, #tpu.memory_space<vmem>>, vector<8x128xbf16>
    %c8_386 = arith.constant 8 : index
    %c0_387 = arith.constant 0 : index
    %285 = vector.load %arg11[%c8_386, %c0_387] : memref<88x256xbf16, #tpu.memory_space<vmem>>, vector<8x128xbf16>
    tpu.vector_store %arg11[%c8_386, %c0_387], %284 {strides = array<i32>} : memref<88x256xbf16, #tpu.memory_space<vmem>>, vector<8x128xbf16>,
    %c0_388 = arith.constant 0 : index
    %c191 = arith.constant 191 : index
    %286 = vector.load %arg8[%c0_388, %c191] : memref<8x356xbf16, #tpu.memory_space<vmem>>, vector<8x128xbf16>
    %c8_389 = arith.constant 8 : index
    %c128_390 = arith.constant 128 : index
    %287 = vector.load %arg11[%c8_389, %c128_390] : memref<88x256xbf16, #tpu.memory_space<vmem>>, vector<8x128xbf16>
    tpu.vector_store %arg11[%c8_389, %c128_390], %286 {strides = array<i32>} : memref<88x256xbf16, #tpu.memory_space<vmem>>, vector<8x128xbf16>,
    %c0_391 = arith.constant 0 : index
    %c16_392 = arith.constant 16 : index
    %288 = vector.load %arg8[%c0_391, %c16_392] : memref<8x356xbf16, #tpu.memory_space<vmem>>, vector<8x128xbf16>
    %c16_393 = arith.constant 16 : index
    %c0_394 = arith.constant 0 : index
    %289 = vector.load %arg11[%c16_393, %c0_394] : memref<88x256xbf16, #tpu.memory_space<vmem>>, vector<8x128xbf16>
    tpu.vector_store %arg11[%c16_393, %c0_394], %288 {strides = array<i32>} : memref<88x256xbf16, #tpu.memory_space<vmem>>, vector<8x128xbf16>,
    %c0_395 = arith.constant 0 : index
    %c194_396 = arith.constant 194 : index
    %290 = vector.load %arg8[%c0_395, %c194_396] : memref<8x356xbf16, #tpu.memory_space<vmem>>, vector<8x128xbf16>
    %c16_397 = arith.constant 16 : index
    %c128_398 = arith.constant 128 : index
    %291 = vector.load %arg11[%c16_397, %c128_398] : memref<88x256xbf16, #tpu.memory_space<vmem>>, vector<8x128xbf16>
    tpu.vector_store %arg11[%c16_397, %c128_398], %290 {strides = array<i32>} : memref<88x256xbf16, #tpu.memory_space<vmem>>, vector<8x128xbf16>,
    %c0_399 = arith.constant 0 : index
    %c19_400 = arith.constant 19 : index
    %292 = vector.load %arg8[%c0_399, %c19_400] : memref<8x356xbf16, #tpu.memory_space<vmem>>, vector<8x128xbf16>
    %c24_401 = arith.constant 24 : index
    %c0_402 = arith.constant 0 : index
    %293 = vector.load %arg11[%c24_401, %c0_402] : memref<88x256xbf16, #tpu.memory_space<vmem>>, vector<8x128xbf16>
    tpu.vector_store %arg11[%c24_401, %c0_402], %292 {strides = array<i32>} : memref<88x256xbf16, #tpu.memory_space<vmem>>, vector<8x128xbf16>,
    %c0_403 = arith.constant 0 : index
    %c197_404 = arith.constant 197 : index
    %294 = vector.load %arg8[%c0_403, %c197_404] : memref<8x356xbf16, #tpu.memory_space<vmem>>, vector<8x128xbf16>
    %c24_405 = arith.constant 24 : index
    %c128_406 = arith.constant 128 : index
    %295 = vector.load %arg11[%c24_405, %c128_406] : memref<88x256xbf16, #tpu.memory_space<vmem>>, vector<8x128xbf16>
    tpu.vector_store %arg11[%c24_405, %c128_406], %294 {strides = array<i32>} : memref<88x256xbf16, #tpu.memory_space<vmem>>, vector<8x128xbf16>,
    %c0_407 = arith.constant 0 : index
    %c22_408 = arith.constant 22 : index
    %296 = vector.load %arg8[%c0_407, %c22_408] : memref<8x356xbf16, #tpu.memory_space<vmem>>, vector<8x128xbf16>
    %c32_409 = arith.constant 32 : index
    %c0_410 = arith.constant 0 : index
    %297 = vector.load %arg11[%c32_409, %c0_410] : memref<88x256xbf16, #tpu.memory_space<vmem>>, vector<8x128xbf16>
    tpu.vector_store %arg11[%c32_409, %c0_410], %296 {strides = array<i32>} : memref<88x256xbf16, #tpu.memory_space<vmem>>, vector<8x128xbf16>,
    %c0_411 = arith.constant 0 : index
    %c200_412 = arith.constant 200 : index
    %298 = vector.load %arg8[%c0_411, %c200_412] : memref<8x356xbf16, #tpu.memory_space<vmem>>, vector<8x128xbf16>
    %c32_413 = arith.constant 32 : index
    %c128_414 = arith.constant 128 : index
    %299 = vector.load %arg11[%c32_413, %c128_414] : memref<88x256xbf16, #tpu.memory_space<vmem>>, vector<8x128xbf16>
    tpu.vector_store %arg11[%c32_413, %c128_414], %298 {strides = array<i32>} : memref<88x256xbf16, #tpu.memory_space<vmem>>, vector<8x128xbf16>,
    %c0_415 = arith.constant 0 : index
    %c25_416 = arith.constant 25 : index
    %300 = vector.load %arg8[%c0_415, %c25_416] : memref<8x356xbf16, #tpu.memory_space<vmem>>, vector<8x128xbf16>
    %c40_417 = arith.constant 40 : index
    %c0_418 = arith.constant 0 : index
    %301 = vector.load %arg11[%c40_417, %c0_418] : memref<88x256xbf16, #tpu.memory_space<vmem>>, vector<8x128xbf16>
    tpu.vector_store %arg11[%c40_417, %c0_418], %300 {strides = array<i32>} : memref<88x256xbf16, #tpu.memory_space<vmem>>, vector<8x128xbf16>,
    %c0_419 = arith.constant 0 : index
    %c203_420 = arith.constant 203 : index
    %302 = vector.load %arg8[%c0_419, %c203_420] : memref<8x356xbf16, #tpu.memory_space<vmem>>, vector<8x128xbf16>
    %c40_421 = arith.constant 40 : index
    %c128_422 = arith.constant 128 : index
    %303 = vector.load %arg11[%c40_421, %c128_422] : memref<88x256xbf16, #tpu.memory_space<vmem>>, vector<8x128xbf16>
    tpu.vector_store %arg11[%c40_421, %c128_422], %302 {strides = array<i32>} : memref<88x256xbf16, #tpu.memory_space<vmem>>, vector<8x128xbf16>,
    %c0_423 = arith.constant 0 : index
    %c28_424 = arith.constant 28 : index
    %304 = vector.load %arg8[%c0_423, %c28_424] : memref<8x356xbf16, #tpu.memory_space<vmem>>, vector<8x128xbf16>
    %c48_425 = arith.constant 48 : index
    %c0_426 = arith.constant 0 : index
    %305 = vector.load %arg11[%c48_425, %c0_426] : memref<88x256xbf16, #tpu.memory_space<vmem>>, vector<8x128xbf16>
    tpu.vector_store %arg11[%c48_425, %c0_426], %304 {strides = array<i32>} : memref<88x256xbf16, #tpu.memory_space<vmem>>, vector<8x128xbf16>,
    %c0_427 = arith.constant 0 : index
    %c206_428 = arith.constant 206 : index
    %306 = vector.load %arg8[%c0_427, %c206_428] : memref<8x356xbf16, #tpu.memory_space<vmem>>, vector<8x128xbf16>
    %c48_429 = arith.constant 48 : index
    %c128_430 = arith.constant 128 : index
    %307 = vector.load %arg11[%c48_429, %c128_430] : memref<88x256xbf16, #tpu.memory_space<vmem>>, vector<8x128xbf16>
    tpu.vector_store %arg11[%c48_429, %c128_430], %306 {strides = array<i32>} : memref<88x256xbf16, #tpu.memory_space<vmem>>, vector<8x128xbf16>,
    %c0_431 = arith.constant 0 : index
    %c31_432 = arith.constant 31 : index
    %308 = vector.load %arg8[%c0_431, %c31_432] : memref<8x356xbf16, #tpu.memory_space<vmem>>, vector<8x128xbf16>
    %c56_433 = arith.constant 56 : index
    %c0_434 = arith.constant 0 : index
    %309 = vector.load %arg11[%c56_433, %c0_434] : memref<88x256xbf16, #tpu.memory_space<vmem>>, vector<8x128xbf16>
    tpu.vector_store %arg11[%c56_433, %c0_434], %308 {strides = array<i32>} : memref<88x256xbf16, #tpu.memory_space<vmem>>, vector<8x128xbf16>,
    %c0_435 = arith.constant 0 : index
    %c209_436 = arith.constant 209 : index
    %310 = vector.load %arg8[%c0_435, %c209_436] : memref<8x356xbf16, #tpu.memory_space<vmem>>, vector<8x128xbf16>
    %c56_437 = arith.constant 56 : index
    %c128_438 = arith.constant 128 : index
    %311 = vector.load %arg11[%c56_437, %c128_438] : memref<88x256xbf16, #tpu.memory_space<vmem>>, vector<8x128xbf16>
    tpu.vector_store %arg11[%c56_437, %c128_438], %310 {strides = array<i32>} : memref<88x256xbf16, #tpu.memory_space<vmem>>, vector<8x128xbf16>,
    %c0_439 = arith.constant 0 : index
    %c34_440 = arith.constant 34 : index
    %312 = vector.load %arg8[%c0_439, %c34_440] : memref<8x356xbf16, #tpu.memory_space<vmem>>, vector<8x128xbf16>
    %c64_441 = arith.constant 64 : index
    %c0_442 = arith.constant 0 : index
    %313 = vector.load %arg11[%c64_441, %c0_442] : memref<88x256xbf16, #tpu.memory_space<vmem>>, vector<8x128xbf16>
    tpu.vector_store %arg11[%c64_441, %c0_442], %312 {strides = array<i32>} : memref<88x256xbf16, #tpu.memory_space<vmem>>, vector<8x128xbf16>,
    %c0_443 = arith.constant 0 : index
    %c212_444 = arith.constant 212 : index
    %314 = vector.load %arg8[%c0_443, %c212_444] : memref<8x356xbf16, #tpu.memory_space<vmem>>, vector<8x128xbf16>
    %c64_445 = arith.constant 64 : index
    %c128_446 = arith.constant 128 : index
    %315 = vector.load %arg11[%c64_445, %c128_446] : memref<88x256xbf16, #tpu.memory_space<vmem>>, vector<8x128xbf16>
    tpu.vector_store %arg11[%c64_445, %c128_446], %314 {strides = array<i32>} : memref<88x256xbf16, #tpu.memory_space<vmem>>, vector<8x128xbf16>,
    %c0_447 = arith.constant 0 : index
    %c37 = arith.constant 37 : index
    %316 = vector.load %arg8[%c0_447, %c37] : memref<8x356xbf16, #tpu.memory_space<vmem>>, vector<8x128xbf16>
    %c72_448 = arith.constant 72 : index
    %c0_449 = arith.constant 0 : index
    %317 = vector.load %arg11[%c72_448, %c0_449] : memref<88x256xbf16, #tpu.memory_space<vmem>>, vector<8x128xbf16>
    tpu.vector_store %arg11[%c72_448, %c0_449], %316 {strides = array<i32>} : memref<88x256xbf16, #tpu.memory_space<vmem>>, vector<8x128xbf16>,
    %c0_450 = arith.constant 0 : index
    %c215 = arith.constant 215 : index
    %318 = vector.load %arg8[%c0_450, %c215] : memref<8x356xbf16, #tpu.memory_space<vmem>>, vector<8x128xbf16>
    %c72_451 = arith.constant 72 : index
    %c128_452 = arith.constant 128 : index
    %319 = vector.load %arg11[%c72_451, %c128_452] : memref<88x256xbf16, #tpu.memory_space<vmem>>, vector<8x128xbf16>
    tpu.vector_store %arg11[%c72_451, %c128_452], %318 {strides = array<i32>} : memref<88x256xbf16, #tpu.memory_space<vmem>>, vector<8x128xbf16>,
    %c0_453 = arith.constant 0 : index
    %c40_454 = arith.constant 40 : index
    %320 = vector.load %arg8[%c0_453, %c40_454] : memref<8x356xbf16, #tpu.memory_space<vmem>>, vector<8x128xbf16>
    %c80_455 = arith.constant 80 : index
    %c0_456 = arith.constant 0 : index
    %321 = vector.load %arg11[%c80_455, %c0_456] : memref<88x256xbf16, #tpu.memory_space<vmem>>, vector<8x128xbf16>
    tpu.vector_store %arg11[%c80_455, %c0_456], %320 {strides = array<i32>} : memref<88x256xbf16, #tpu.memory_space<vmem>>, vector<8x128xbf16>,
    %c0_457 = arith.constant 0 : index
    %c218_458 = arith.constant 218 : index
    %322 = vector.load %arg8[%c0_457, %c218_458] : memref<8x356xbf16, #tpu.memory_space<vmem>>, vector<8x128xbf16>
    %c80_459 = arith.constant 80 : index
    %c128_460 = arith.constant 128 : index
    %323 = vector.load %arg11[%c80_459, %c128_460] : memref<88x256xbf16, #tpu.memory_space<vmem>>, vector<8x128xbf16>
    tpu.vector_store %arg11[%c80_459, %c128_460], %322 {strides = array<i32>} : memref<88x256xbf16, #tpu.memory_space<vmem>>, vector<8x128xbf16>,
    %c1_461 = arith.constant 1 : index
    %c0_462 = arith.constant 0 : index
    %c0_463 = arith.constant 0 : index
    %324 = vector.load %arg5[%c1_461, %c0_462, %c0_463] : memref<3x8x88xbf16, #tpu.memory_space<vmem>>, vector<1x8x88xbf16>
    %325 = vector.shape_cast %324 : vector<1x8x88xbf16> to vector<8x88xbf16>
    %c0_464 = arith.constant 0 : index
    %c0_465 = arith.constant 0 : index
    %326 = vector.load %arg11[%c0_464, %c0_465] : memref<88x256xbf16, #tpu.memory_space<vmem>>, vector<88x256xbf16>
    %cst_466 = arith.constant dense<0.000000e+00> : vector<8x256xf32>
    %327 = tpu.matmul %325, %326, %cst_466 {dimension_numbers = #tpu.dot_dimension_numbers<[1], [0], [0], [1], [0, 0, 1, 1], [], []>} : vector<8x88xbf16>, vector<88x256xbf16>, vector<8x256xf32> -> vector<8x256xf32>
    %328 = arith.addf %327, %274 : vector<8x256xf32>
    %329 = arith.truncf %328 : vector<8x256xf32> to vector<8x256xbf16>
    %330 = vector.extract_strided_slice %329 {offsets = [0, 0], sizes = [8, 128], strides = [1, 1]} : vector<8x256xbf16> to vector<8x128xbf16>
    %c0_467 = arith.constant 0 : index
    %c25_468 = arith.constant 25 : index
    %331 = vector.load %arg8[%c0_467, %c25_468] : memref<8x356xbf16, #tpu.memory_space<vmem>>, vector<8x128xbf16>
    tpu.vector_store %arg8[%c0_467, %c25_468], %330 {strides = array<i32>} : memref<8x356xbf16, #tpu.memory_space<vmem>>, vector<8x128xbf16>,
    %332 = vector.extract_strided_slice %329 {offsets = [0, 128], sizes = [8, 128], strides = [1, 1]} : vector<8x256xbf16> to vector<8x128xbf16>
    %c0_469 = arith.constant 0 : index
    %c203_470 = arith.constant 203 : index
    %333 = vector.load %arg8[%c0_469, %c203_470] : memref<8x356xbf16, #tpu.memory_space<vmem>>, vector<8x128xbf16>
    tpu.vector_store %arg8[%c0_469, %c203_470], %332 {strides = array<i32>} : memref<8x356xbf16, #tpu.memory_space<vmem>>, vector<8x128xbf16>,
    %c0_471 = arith.constant 0 : index
    %c0_472 = arith.constant 0 : index
    %334 = vector.load %arg8[%c0_471, %c0_472] : memref<8x356xbf16, #tpu.memory_space<vmem>>, vector<8x128xbf16>
    %c0_473 = arith.constant 0 : index
    %c0_474 = arith.constant 0 : index
    %335 = vector.load %arg11[%c0_473, %c0_474] : memref<88x256xbf16, #tpu.memory_space<vmem>>, vector<8x128xbf16>
    tpu.vector_store %arg11[%c0_473, %c0_474], %334 {strides = array<i32>} : memref<88x256xbf16, #tpu.memory_space<vmem>>, vector<8x128xbf16>,
    %c0_475 = arith.constant 0 : index
    %c178 = arith.constant 178 : index
    %336 = vector.load %arg8[%c0_475, %c178] : memref<8x356xbf16, #tpu.memory_space<vmem>>, vector<8x128xbf16>
    %c0_476 = arith.constant 0 : index
    %c128_477 = arith.constant 128 : index
    %337 = vector.load %arg11[%c0_476, %c128_477] : memref<88x256xbf16, #tpu.memory_space<vmem>>, vector<8x128xbf16>
    tpu.vector_store %arg11[%c0_476, %c128_477], %336 {strides = array<i32>} : memref<88x256xbf16, #tpu.memory_space<vmem>>, vector<8x128xbf16>,
    %c0_478 = arith.constant 0 : index
    %c5 = arith.constant 5 : index
    %338 = vector.load %arg8[%c0_478, %c5] : memref<8x356xbf16, #tpu.memory_space<vmem>>, vector<8x128xbf16>
    %c8_479 = arith.constant 8 : index
    %c0_480 = arith.constant 0 : index
    %339 = vector.load %arg11[%c8_479, %c0_480] : memref<88x256xbf16, #tpu.memory_space<vmem>>, vector<8x128xbf16>
    tpu.vector_store %arg11[%c8_479, %c0_480], %338 {strides = array<i32>} : memref<88x256xbf16, #tpu.memory_space<vmem>>, vector<8x128xbf16>,
    %c0_481 = arith.constant 0 : index
    %c183 = arith.constant 183 : index
    %340 = vector.load %arg8[%c0_481, %c183] : memref<8x356xbf16, #tpu.memory_space<vmem>>, vector<8x128xbf16>
    %c8_482 = arith.constant 8 : index
    %c128_483 = arith.constant 128 : index
    %341 = vector.load %arg11[%c8_482, %c128_483] : memref<88x256xbf16, #tpu.memory_space<vmem>>, vector<8x128xbf16>
    tpu.vector_store %arg11[%c8_482, %c128_483], %340 {strides = array<i32>} : memref<88x256xbf16, #tpu.memory_space<vmem>>, vector<8x128xbf16>,
    %c0_484 = arith.constant 0 : index
    %c10_485 = arith.constant 10 : index
    %342 = vector.load %arg8[%c0_484, %c10_485] : memref<8x356xbf16, #tpu.memory_space<vmem>>, vector<8x128xbf16>
    %c16_486 = arith.constant 16 : index
    %c0_487 = arith.constant 0 : index
    %343 = vector.load %arg11[%c16_486, %c0_487] : memref<88x256xbf16, #tpu.memory_space<vmem>>, vector<8x128xbf16>
    tpu.vector_store %arg11[%c16_486, %c0_487], %342 {strides = array<i32>} : memref<88x256xbf16, #tpu.memory_space<vmem>>, vector<8x128xbf16>,
    %c0_488 = arith.constant 0 : index
    %c188_489 = arith.constant 188 : index
    %344 = vector.load %arg8[%c0_488, %c188_489] : memref<8x356xbf16, #tpu.memory_space<vmem>>, vector<8x128xbf16>
    %c16_490 = arith.constant 16 : index
    %c128_491 = arith.constant 128 : index
    %345 = vector.load %arg11[%c16_490, %c128_491] : memref<88x256xbf16, #tpu.memory_space<vmem>>, vector<8x128xbf16>
    tpu.vector_store %arg11[%c16_490, %c128_491], %344 {strides = array<i32>} : memref<88x256xbf16, #tpu.memory_space<vmem>>, vector<8x128xbf16>,
    %c0_492 = arith.constant 0 : index
    %c15_493 = arith.constant 15 : index
    %346 = vector.load %arg8[%c0_492, %c15_493] : memref<8x356xbf16, #tpu.memory_space<vmem>>, vector<8x128xbf16>
    %c24_494 = arith.constant 24 : index
    %c0_495 = arith.constant 0 : index
    %347 = vector.load %arg11[%c24_494, %c0_495] : memref<88x256xbf16, #tpu.memory_space<vmem>>, vector<8x128xbf16>
    tpu.vector_store %arg11[%c24_494, %c0_495], %346 {strides = array<i32>} : memref<88x256xbf16, #tpu.memory_space<vmem>>, vector<8x128xbf16>,
    %c0_496 = arith.constant 0 : index
    %c193_497 = arith.constant 193 : index
    %348 = vector.load %arg8[%c0_496, %c193_497] : memref<8x356xbf16, #tpu.memory_space<vmem>>, vector<8x128xbf16>
    %c24_498 = arith.constant 24 : index
    %c128_499 = arith.constant 128 : index
    %349 = vector.load %arg11[%c24_498, %c128_499] : memref<88x256xbf16, #tpu.memory_space<vmem>>, vector<8x128xbf16>
    tpu.vector_store %arg11[%c24_498, %c128_499], %348 {strides = array<i32>} : memref<88x256xbf16, #tpu.memory_space<vmem>>, vector<8x128xbf16>,
    %c0_500 = arith.constant 0 : index
    %c20_501 = arith.constant 20 : index
    %350 = vector.load %arg8[%c0_500, %c20_501] : memref<8x356xbf16, #tpu.memory_space<vmem>>, vector<8x128xbf16>
    %c32_502 = arith.constant 32 : index
    %c0_503 = arith.constant 0 : index
    %351 = vector.load %arg11[%c32_502, %c0_503] : memref<88x256xbf16, #tpu.memory_space<vmem>>, vector<8x128xbf16>
    tpu.vector_store %arg11[%c32_502, %c0_503], %350 {strides = array<i32>} : memref<88x256xbf16, #tpu.memory_space<vmem>>, vector<8x128xbf16>,
    %c0_504 = arith.constant 0 : index
    %c198_505 = arith.constant 198 : index
    %352 = vector.load %arg8[%c0_504, %c198_505] : memref<8x356xbf16, #tpu.memory_space<vmem>>, vector<8x128xbf16>
    %c32_506 = arith.constant 32 : index
    %c128_507 = arith.constant 128 : index
    %353 = vector.load %arg11[%c32_506, %c128_507] : memref<88x256xbf16, #tpu.memory_space<vmem>>, vector<8x128xbf16>
    tpu.vector_store %arg11[%c32_506, %c128_507], %352 {strides = array<i32>} : memref<88x256xbf16, #tpu.memory_space<vmem>>, vector<8x128xbf16>,
    %c0_508 = arith.constant 0 : index
    %c25_509 = arith.constant 25 : index
    %354 = vector.load %arg8[%c0_508, %c25_509] : memref<8x356xbf16, #tpu.memory_space<vmem>>, vector<8x128xbf16>
    %c40_510 = arith.constant 40 : index
    %c0_511 = arith.constant 0 : index
    %355 = vector.load %arg11[%c40_510, %c0_511] : memref<88x256xbf16, #tpu.memory_space<vmem>>, vector<8x128xbf16>
    tpu.vector_store %arg11[%c40_510, %c0_511], %354 {strides = array<i32>} : memref<88x256xbf16, #tpu.memory_space<vmem>>, vector<8x128xbf16>,
    %c0_512 = arith.constant 0 : index
    %c203_513 = arith.constant 203 : index
    %356 = vector.load %arg8[%c0_512, %c203_513] : memref<8x356xbf16, #tpu.memory_space<vmem>>, vector<8x128xbf16>
    %c40_514 = arith.constant 40 : index
    %c128_515 = arith.constant 128 : index
    %357 = vector.load %arg11[%c40_514, %c128_515] : memref<88x256xbf16, #tpu.memory_space<vmem>>, vector<8x128xbf16>
    tpu.vector_store %arg11[%c40_514, %c128_515], %356 {strides = array<i32>} : memref<88x256xbf16, #tpu.memory_space<vmem>>, vector<8x128xbf16>,
    %c0_516 = arith.constant 0 : index
    %c30_517 = arith.constant 30 : index
    %358 = vector.load %arg8[%c0_516, %c30_517] : memref<8x356xbf16, #tpu.memory_space<vmem>>, vector<8x128xbf16>
    %c48_518 = arith.constant 48 : index
    %c0_519 = arith.constant 0 : index
    %359 = vector.load %arg11[%c48_518, %c0_519] : memref<88x256xbf16, #tpu.memory_space<vmem>>, vector<8x128xbf16>
    tpu.vector_store %arg11[%c48_518, %c0_519], %358 {strides = array<i32>} : memref<88x256xbf16, #tpu.memory_space<vmem>>, vector<8x128xbf16>,
    %c0_520 = arith.constant 0 : index
    %c208_521 = arith.constant 208 : index
    %360 = vector.load %arg8[%c0_520, %c208_521] : memref<8x356xbf16, #tpu.memory_space<vmem>>, vector<8x128xbf16>
    %c48_522 = arith.constant 48 : index
    %c128_523 = arith.constant 128 : index
    %361 = vector.load %arg11[%c48_522, %c128_523] : memref<88x256xbf16, #tpu.memory_space<vmem>>, vector<8x128xbf16>
    tpu.vector_store %arg11[%c48_522, %c128_523], %360 {strides = array<i32>} : memref<88x256xbf16, #tpu.memory_space<vmem>>, vector<8x128xbf16>,
    %c0_524 = arith.constant 0 : index
    %c35_525 = arith.constant 35 : index
    %362 = vector.load %arg8[%c0_524, %c35_525] : memref<8x356xbf16, #tpu.memory_space<vmem>>, vector<8x128xbf16>
    %c56_526 = arith.constant 56 : index
    %c0_527 = arith.constant 0 : index
    %363 = vector.load %arg11[%c56_526, %c0_527] : memref<88x256xbf16, #tpu.memory_space<vmem>>, vector<8x128xbf16>
    tpu.vector_store %arg11[%c56_526, %c0_527], %362 {strides = array<i32>} : memref<88x256xbf16, #tpu.memory_space<vmem>>, vector<8x128xbf16>,
    %c0_528 = arith.constant 0 : index
    %c213_529 = arith.constant 213 : index
    %364 = vector.load %arg8[%c0_528, %c213_529] : memref<8x356xbf16, #tpu.memory_space<vmem>>, vector<8x128xbf16>
    %c56_530 = arith.constant 56 : index
    %c128_531 = arith.constant 128 : index
    %365 = vector.load %arg11[%c56_530, %c128_531] : memref<88x256xbf16, #tpu.memory_space<vmem>>, vector<8x128xbf16>
    tpu.vector_store %arg11[%c56_530, %c128_531], %364 {strides = array<i32>} : memref<88x256xbf16, #tpu.memory_space<vmem>>, vector<8x128xbf16>,
    %c0_532 = arith.constant 0 : index
    %c40_533 = arith.constant 40 : index
    %366 = vector.load %arg8[%c0_532, %c40_533] : memref<8x356xbf16, #tpu.memory_space<vmem>>, vector<8x128xbf16>
    %c64_534 = arith.constant 64 : index
    %c0_535 = arith.constant 0 : index
    %367 = vector.load %arg11[%c64_534, %c0_535] : memref<88x256xbf16, #tpu.memory_space<vmem>>, vector<8x128xbf16>
    tpu.vector_store %arg11[%c64_534, %c0_535], %366 {strides = array<i32>} : memref<88x256xbf16, #tpu.memory_space<vmem>>, vector<8x128xbf16>,
    %c0_536 = arith.constant 0 : index
    %c218_537 = arith.constant 218 : index
    %368 = vector.load %arg8[%c0_536, %c218_537] : memref<8x356xbf16, #tpu.memory_space<vmem>>, vector<8x128xbf16>
    %c64_538 = arith.constant 64 : index
    %c128_539 = arith.constant 128 : index
    %369 = vector.load %arg11[%c64_538, %c128_539] : memref<88x256xbf16, #tpu.memory_space<vmem>>, vector<8x128xbf16>
    tpu.vector_store %arg11[%c64_538, %c128_539], %368 {strides = array<i32>} : memref<88x256xbf16, #tpu.memory_space<vmem>>, vector<8x128xbf16>,
    %c0_540 = arith.constant 0 : index
    %c45 = arith.constant 45 : index
    %370 = vector.load %arg8[%c0_540, %c45] : memref<8x356xbf16, #tpu.memory_space<vmem>>, vector<8x128xbf16>
    %c72_541 = arith.constant 72 : index
    %c0_542 = arith.constant 0 : index
    %371 = vector.load %arg11[%c72_541, %c0_542] : memref<88x256xbf16, #tpu.memory_space<vmem>>, vector<8x128xbf16>
    tpu.vector_store %arg11[%c72_541, %c0_542], %370 {strides = array<i32>} : memref<88x256xbf16, #tpu.memory_space<vmem>>, vector<8x128xbf16>,
    %c0_543 = arith.constant 0 : index
    %c223 = arith.constant 223 : index
    %372 = vector.load %arg8[%c0_543, %c223] : memref<8x356xbf16, #tpu.memory_space<vmem>>, vector<8x128xbf16>
    %c72_544 = arith.constant 72 : index
    %c128_545 = arith.constant 128 : index
    %373 = vector.load %arg11[%c72_544, %c128_545] : memref<88x256xbf16, #tpu.memory_space<vmem>>, vector<8x128xbf16>
    tpu.vector_store %arg11[%c72_544, %c128_545], %372 {strides = array<i32>} : memref<88x256xbf16, #tpu.memory_space<vmem>>, vector<8x128xbf16>,
    %c0_546 = arith.constant 0 : index
    %c50 = arith.constant 50 : index
    %374 = vector.load %arg8[%c0_546, %c50] : memref<8x356xbf16, #tpu.memory_space<vmem>>, vector<8x128xbf16>
    %c80_547 = arith.constant 80 : index
    %c0_548 = arith.constant 0 : index
    %375 = vector.load %arg11[%c80_547, %c0_548] : memref<88x256xbf16, #tpu.memory_space<vmem>>, vector<8x128xbf16>
    tpu.vector_store %arg11[%c80_547, %c0_548], %374 {strides = array<i32>} : memref<88x256xbf16, #tpu.memory_space<vmem>>, vector<8x128xbf16>,
    %c0_549 = arith.constant 0 : index
    %c228 = arith.constant 228 : index
    %376 = vector.load %arg8[%c0_549, %c228] : memref<8x356xbf16, #tpu.memory_space<vmem>>, vector<8x128xbf16>
    %c80_550 = arith.constant 80 : index
    %c128_551 = arith.constant 128 : index
    %377 = vector.load %arg11[%c80_550, %c128_551] : memref<88x256xbf16, #tpu.memory_space<vmem>>, vector<8x128xbf16>
    tpu.vector_store %arg11[%c80_550, %c128_551], %376 {strides = array<i32>} : memref<88x256xbf16, #tpu.memory_space<vmem>>, vector<8x128xbf16>,
    %c2_552 = arith.constant 2 : index
    %c0_553 = arith.constant 0 : index
    %c0_554 = arith.constant 0 : index
    %378 = vector.load %arg5[%c2_552, %c0_553, %c0_554] : memref<3x8x88xbf16, #tpu.memory_space<vmem>>, vector<1x8x88xbf16>
    %379 = vector.shape_cast %378 : vector<1x8x88xbf16> to vector<8x88xbf16>
    %c0_555 = arith.constant 0 : index
    %c0_556 = arith.constant 0 : index
    %380 = vector.load %arg11[%c0_555, %c0_556] : memref<88x256xbf16, #tpu.memory_space<vmem>>, vector<88x256xbf16>
    %cst_557 = arith.constant dense<0.000000e+00> : vector<8x256xf32>
    %381 = tpu.matmul %379, %380, %cst_557 {dimension_numbers = #tpu.dot_dimension_numbers<[1], [0], [0], [1], [0, 0, 1, 1], [], []>} : vector<8x88xbf16>, vector<88x256xbf16>, vector<8x256xf32> -> vector<8x256xf32>
    %382 = arith.addf %381, %328 : vector<8x256xf32>
    %383 = arith.addf %209, %382 : vector<8x256xf32>
    %c0_558 = arith.constant 0 : index
    %c0_559 = arith.constant 0 : index
    %c0_560 = arith.constant 0 : index
    %384 = vector.load %arg7[%c0_558, %c0_559, %c0_560] : memref<1x8x256xf32, #tpu.memory_space<vmem>>, vector<1x8x256xf32>
    %385 = vector.shape_cast %384 : vector<1x8x256xf32> to vector<8x256xf32>
    %386 = vector.shape_cast %383 : vector<8x256xf32> to vector<1x8x256xf32>
    tpu.vector_store %arg7[%c0_558, %c0_559, %c0_560], %386 {strides = array<i32>} : memref<1x8x256xf32, #tpu.memory_space<vmem>>, vector<1x8x256xf32>,
    return
  }
  func.func @transform_0(%arg0: i32) -> (i32, i32, i32) {
    %c0_i32 = arith.constant 0 : i32
    %c0_i32_0 = arith.constant 0 : i32
    %c0_i32_1 = arith.constant 0 : i32
    %c0_i32_2 = arith.constant 0 : i32
    return %c0_i32, %c0_i32_0, %c0_i32_1 : i32, i32, i32
  }
  func.func @transform_1(%arg0: i32) -> (i32, i32, i32) {
    %c0_i32 = arith.constant 0 : i32
    %c0_i32_0 = arith.constant 0 : i32
    %c0_i32_1 = arith.constant 0 : i32
    %c0_i32_2 = arith.constant 0 : i32
    return %c0_i32, %c0_i32_0, %c0_i32_1 : i32, i32, i32
  }
  func.func @transform_2(%arg0: i32) -> (i32, i32, i32) {
    %c0_i32 = arith.constant 0 : i32
    %c0_i32_0 = arith.constant 0 : i32
    %c0_i32_1 = arith.constant 0 : i32
    %c0_i32_2 = arith.constant 0 : i32
    return %c0_i32, %c0_i32_0, %c0_i32_1 : i32, i32, i32
  }
  func.func @transform_3(%arg0: i32) -> (i32, i32, i32) {
    %c0_i32 = arith.constant 0 : i32
    %c0_i32_0 = arith.constant 0 : i32
    %c0_i32_1 = arith.constant 0 : i32
    %c0_i32_2 = arith.constant 0 : i32
    return %c0_i32, %c0_i32_0, %c0_i32_1 : i32, i32, i32
  }
  func.func @transform_4(%arg0: i32) -> (i32, i32, i32) {
    %c0_i32 = arith.constant 0 : i32
    %c0_i32_0 = arith.constant 0 : i32
    %c0_i32_1 = arith.constant 0 : i32
    %c0_i32_2 = arith.constant 0 : i32
    return %c0_i32, %c0_i32_0, %c0_i32_1 : i32, i32, i32
  }
  func.func @transform_5(%arg0: i32) -> (i32, i32, i32) {
    %c0_i32 = arith.constant 0 : i32
    %c0_i32_0 = arith.constant 0 : i32
    %c0_i32_1 = arith.constant 0 : i32
    return %arg0, %c0_i32, %c0_i32_0 : i32, i32, i32
  }
  func.func @transform_6(%arg0: i32) -> (i32, i32, i32) {
    %c0_i32 = arith.constant 0 : i32
    %c0_i32_0 = arith.constant 0 : i32
    %c0_i32_1 = arith.constant 0 : i32
    return %arg0, %c0_i32, %c0_i32_0 : i32, i32, i32
  }
}

</mosaic_0001>

<bundles_post_ra>
// kernel: amp_complex_pallas.1
= control target key start
LH: loop header
LB: loop body
LE: loop exit
PB: predicated region body
PF: predicated region fallthrough
CT: control target
= control target key end

     0   :  { %s3582_s21 = smov 0   ;;  %s4526_s0 = inlined_call_operand.vmem [shape: f32[3,8,1], index: 0, kind: input, shape index: {}]   ;;  %s4527_s1 = inlined_call_operand.vmem [shape: f32[3,8,1], index: 1, kind: input, shape index: {}]   ;;  %s4528_s2 = inlined_call_operand.vmem [shape: bf16[3,8,24], index: 2, kind: input, shape index: {}]   ;;  %s4529_s3 = inlined_call_operand.vmem [shape: bf16[3,8,56], index: 3, kind: input, shape index: {}]   ;;  %s4530_s4 = inlined_call_operand.vmem [shape: bf16[3,8,88], index: 4, kind: input, shape index: {}]   ;;  %s4531_s5 = inlined_call_operand.vmem [shape: bf16[2,8,256], index: 5, kind: input, shape index: {}]   ;;  %s4532_s6 = inlined_call_operand.vmem [shape: f32[2,8,256], index: 6, kind: output, shape index: {}]  }
   0x1 LB: > { %s3095_s22 = sadd.s32 4294967295, %s3488_s21   ;;  %p3099_p0 = scmp.ge.s32.totalorder %s3488_s21, 1  ;;  %s3488_s21 = sphi %s3582_s21, %s16_s21  }
   0x2   : > { %p212_p1 = scmp.lt.s32.totalorder %s3488_s21, 3 }
   0x4   : > { %p213_p2 = pnand %p3099_p0, %p212_p1 }
   0x5   : > { %p242_p3 = scmp.lt.s32.totalorder (!%p213_p2), %s3095_s22, 1  ;;  %s3497_s7 = smov (!%p213_p2), 25  }
   0x6   : > { %216 = sbr.rel (%p213_p2) target bundleno = 3630 (0xe2e), region = 44  ;;  %s3498_s8 = smov (!%p213_p2), 75  }
   0x7   : > { %s3499_s9 = smov (!%p213_p2), 52   ;;  %s3500_s10 = smov (!%p213_p2), 102  }
   0x8   : > { %s3501_s11 = smov (!%p213_p2), 54   ;;  %s3502_s12 = smov (!%p213_p2), 104  }
   0x9   : > { %s3503_s13 = smov (!%p213_p2), 53   ;;  %s3504_s14 = smov (!%p213_p2), 103  }
   0xa   : > { %s3505_s17 = smov (!%p213_p2), 50   ;;  %s3506_s18 = smov (!%p213_p2), 100  }
   0xb   : > { %v259_v0 = vld [vmem:[%s4526_s0] sm:$0xff]  ;;  %v3490_v1 = vmov 0   ;;  %s4670_s22 = smov (!%p242_p3, %s3095_s22), 1  ;;  %v3491_v29 = vmov 683565275   ;;  %s4557_s19 = smov 56  }
   0xc   : > { %3357 = vset.pattern.permute.xlu0 %v3490_v1  ;;  %253 = vst [vmem:[#allocation2] sm:$0xff] %v3490_v1  ;;  %631 = vmatprep.mubr.bf16.mxu1 %v3490_v1  ;;  %v260_v2 = vld [vmem:[%s4527_s1] sm:$0xff]  ;;  %s3248_s27 = sshll.u32 %s4670_s22, 3  ;;  %v3492_v33 = vmov 2475754826   ;;  %s4555_s20 = smov 106  }
   0xd   : > { %263 = vperm.xlu0 %3357, %v259_v0   ;;  %3358 = vset.pattern.permute.xlu1 %v3490_v1  ;;  %s246_s30 = scalar_lea.vmem %s4531_s5, %s3248_s27  ;;  %v3493_v35 = vmov 2131351028   ;;  %v3494_v37 = vmov 2102212464   ;;  %v3495_v39 = vmov 920167782  }
   0xe   : > { %915 = vmatprep.mubr.bf16.mxu0 %v3490_v1  ;;  %v256_v3 = vld [vmem:[%s246_s30] sm:$0xff]  ;;  %v3496_v46 = vmov 1326507024   ;;  %s3509_s29 = smov 51   ;;  %s3510_s30 = smov 101  }
   0xf   : > { %v3607_v4 = vunpack.c.l.bf16 %v256_v3  ;;  %v3609_v5 = vunpack.c.h.bf16 %v256_v3  ;;  %s4554_s15 = smov 55   ;;  %s4553_s16 = smov 105  }
  0x10   : > { %s3513_s25 = smov 98   ;;  %s3514_s26 = smov 48  }
  0x11   : > { %480 = vperm.xlu0 %3357, %v260_v2   ;;  %s4547_s27 = smov 108   ;;  %s4549_s28 = smov 58  }
  0x12   : > { %s4546_s23 = smov 44   ;;  %s4545_s24 = smov 94  }
  0x88   : > { %v264_v6 = vpop.permute.xlu0 %263 }
  0x89   : > { %v3612_v7 = vmul.f32 %v264_v6, %v3607_v4  ;;  %v3615_v8 = vmul.f32 %v264_v6, %v3609_v5 }
  0x8b   : > { %v268_v9 = vand.u32 2147483647, %v3612_v7  ;;  %v271_v10 = vand.u32 2139095040, %v3612_v7  ;;  %v375_v11 = vand.u32 2139095040, %v3615_v8  ;;  %v372_v14 = vand.u32 2147483647, %v3615_v8 }
  0x8c   : > { %vm270_vm14 = vcmp.lt.s32.totalorder %v3612_v7, 0 }
  0x8d   : > { %v272_v12 = vshrl.u32 %v271_v10, 23  ;;  %v275_v13 = vand.u32 8388607, %v268_v9  ;;  %v376_v15 = vshrl.u32 %v375_v11, 23  ;;  %v3625_v20 = vand.u32 8388607, %v372_v14 }
  0x8e   : > { %vm269_vm15 = vcmp.le.f32.partialorder %v268_v9, 0.7853982 }
  0x8f   : > { %v3104_v16 = vadd.s32 4294967169, %v272_v12  ;;  %v3108_v17 = vadd.s32 4294967169, %v376_v15  ;;  %v276_v19 = vor.u32 8388608, %v275_v13  ;;  %v380_v27 = vor.u32 8388608, %v3625_v20 }
  0x91   : > { %v278_v18 = vadd.s32 1, %v3104_v16  ;;  %v382_v21 = vadd.s32 1, %v3108_v17  ;;  %v3627_v26 = vshll.u32 %v276_v19, 8 }
  0x93   : > { %vm279_vm0 = vcmp.gt.s32.totalorder %v278_v18, 0  ;;  %vm383_vm1 = vcmp.gt.s32.totalorder %v382_v21, 0 }
  0x94   : > { %v280_v22 = vsel %vm279_vm0, %v278_v18, 0  ;;  %v384_v25 = vsel %vm383_vm1, %v382_v21, 0  ;;  %vm374_vm0 = vcmp.lt.s32.totalorder %v3615_v8, 0  ;;  %vm373_vm1 = vcmp.le.f32.partialorder %v372_v14, 0.7853982 }
  0x95   : > { %v281_v23 = vshrl.u32 %v280_v22, 5  ;;  %v282_v24 = vand.u32 31, %v280_v22  ;;  %v3631_v31 = vshrl.u32 %v384_v25, 5  ;;  %v386_v32 = vand.u32 31, %v384_v25 }
  0x97   : > { %v283_v28 = vsub.s32 32, %v282_v24  ;;  %v285_v30 = vshll.u32 %v3491_v29, %v282_v24  ;;  %v288_v34 = vshll.u32 %v3492_v33, %v282_v24  ;;  %v291_v36 = vshll.u32 %v3493_v35, %v282_v24 }
  0x98   : > { %v294_v38 = vshll.u32 %v3494_v37, %v282_v24  ;;  %v297_v40 = vshll.u32 %v3495_v39, %v282_v24  ;;  %vm300_vm2 = vcmp.lt.s32.totalorder %v281_v23, 1  ;;  %vm301_vm3 = vcmp.lt.s32.totalorder %v281_v23, 2 }
  0x99   : > { %v286_v41 = vshrl.u32 %v3492_v33, %v283_v28  ;;  %v289_v42 = vshrl.u32 %v3493_v35, %v283_v28  ;;  %v292_v43 = vshrl.u32 %v3494_v37, %v283_v28  ;;  %v284_v44 = vshrl.u32 %v3491_v29, %v283_v28 }
  0x9a   : > { %v295_v45 = vshrl.u32 %v3495_v39, %v283_v28  ;;  %v298_v47 = vshrl.u32 %v3496_v46, %v283_v28  ;;  %v387_v51 = vsub.s32 32, %v386_v32  ;;  %vm302_vm4 = vcmp.lt.s32.totalorder %v281_v23, 3 }
  0x9b   : > { %v287_v48 = vor.u32 %v286_v41, %v285_v30  ;;  %v290_v49 = vor.u32 %v289_v42, %v288_v34  ;;  %v293_v50 = vor.u32 %v292_v43, %v291_v36  ;;  %vm303_vm5 = vcmp.lt.s32.totalorder %v281_v23, 4 }
  0x9c   : > { %v296_v52 = vor.u32 %v295_v45, %v294_v38  ;;  %v299_v53 = vor.u32 %v298_v47, %v297_v40  ;;  %v389_v61 = vshll.u32 %v3491_v29, %v386_v32  ;;  %v390_v0 = vshrl.u32 %v3492_v33, %v387_v51 }
  0x9d   : > { %v304_v54 = vsel %vm300_vm2, %v284_v44, %v287_v48  ;;  %v305_v55 = vsel %vm303_vm5, %v293_v50, 2102212464  ;;  %v308_v56 = vsel %vm300_vm2, %v287_v48, %v290_v49  ;;  %v312_v57 = vsel %vm300_vm2, %v290_v49, %v293_v50 }
  0x9e   : > { %v306_v58 = vsel %vm302_vm4, %v290_v49, %v305_v55  ;;  %v309_v59 = vsel %vm303_vm5, %v296_v52, 920167782  ;;  %v313_v60 = vsel %vm303_vm5, %v299_v53, 1326507024  ;;  %v392_v2 = vshll.u32 %v3492_v33, %v386_v32 }
  0x9f   : > { %v310_v62 = vsel %vm302_vm4, %v293_v50, %v309_v59  ;;  %v314_v63 = vsel %vm302_vm4, %v296_v52, %v313_v60  ;;  %v307_v3 = vsel %vm301_vm3, %v304_v54, %v306_v58  ;;  %v393_v11 = vshrl.u32 %v3493_v35, %v387_v51 }
  0xa0   : > { %v311_v6 = vsel %vm301_vm3, %v308_v56, %v310_v62  ;;  %v315_v10 = vsel %vm301_vm3, %v312_v57, %v314_v63  ;;  %v391_v17 = vor.u32 %v390_v0, %v389_v61  ;;  %v395_v19 = vshll.u32 %v3493_v35, %v386_v32 }
  0xa1   : > { %v3654_v12 = vmul.u32.u64.low %v3627_v26, %v315_v10  ;;  %v3655_v13 = vmul.u32.u64.high %v3627_v26, %v315_v10, %v3654_v12  ;;  %v3658_v15 = vmul.u32.u64.low %v3627_v26, %v311_v6  ;;  %v3659_v16 = vmul.u32.u64.high %v3627_v26, %v311_v6, %v3658_v15 }
  0xa2   : > { %v394_v18 = vor.u32 %v393_v11, %v392_v2  ;;  %v396_v20 = vshrl.u32 %v3494_v37, %v387_v51  ;;  %v398_v21 = vshll.u32 %v3494_v37, %v386_v32  ;;  %v399_v22 = vshrl.u32 %v3495_v39, %v387_v51 }
  0xa3   : > { %v402_v23 = vshrl.u32 %v3496_v46, %v387_v51  ;;  %v420_v24 = vshll.u32 %v380_v27, 8  ;;  %v323_v25 = vmul.u32 %v3627_v26, %v307_v3  ;;  %v388_v28 = vshrl.u32 %v3491_v29, %v387_v51 }
  0xa4   : > { %v397_v30 = vor.u32 %v396_v20, %v395_v19  ;;  %v401_v34 = vshll.u32 %v3495_v39, %v386_v32  ;;  %vm325_vm6 = vc.u32 %v3655_v13, %v3658_v15  ;;  %v326_v36 = vadd.s32 1, %v3659_v16 }
  0xa5   : > { %v400_v38 = vor.u32 %v399_v22, %v398_v21  ;;  %vm404_vm7 = vcmp.lt.s32.totalorder %v3631_v31, 1  ;;  %vm406_vm8 = vcmp.lt.s32.totalorder %v3631_v31, 3  ;;  %vm407_vm9 = vcmp.lt.s32.totalorder %v3631_v31, 4 }
  0xa6   : > { %v403_v40 = vor.u32 %v402_v23, %v401_v34  ;;  %v412_v27 = vsel %vm404_vm7, %v391_v17, %v394_v18  ;;  %v327_v26 = vsel %vm325_vm6, %v326_v36, %v3659_v16  ;;  %v409_v41 = vsel %vm407_vm9, %v397_v30, 2102212464 }
  0xa7   : > { %v413_v42 = vsel %vm407_vm9, %v400_v38, 920167782  ;;  %v416_v43 = vsel %vm404_vm7, %v394_v18, %v397_v30  ;;  %v328_v44 = vadd.s32 %v327_v26, %v323_v25  ;;  %vm405_vm10 = vcmp.lt.s32.totalorder %v3631_v31, 2 }
  0xa8   : > { %v414_v32 = vsel %vm406_vm8, %v397_v30, %v413_v42  ;;  %v417_v45 = vsel %vm407_vm9, %v403_v40, 1326507024  ;;  %v408_v47 = vsel %vm404_vm7, %v388_v28, %v391_v17  ;;  %v410_v48 = vsel %vm406_vm8, %v394_v18, %v409_v41 }
  0xa9   : > { %v415_v49 = vsel %vm405_vm10, %v412_v27, %v414_v32  ;;  %v418_v50 = vsel %vm406_vm8, %v400_v38, %v417_v45  ;;  %v329_v51 = vadd.s32 536870912, %v328_v44  ;;  %v411_v58 = vsel %vm405_vm10, %v408_v47, %v410_v48 }
  0xaa   : > { %v419_v52 = vsel %vm405_vm10, %v416_v43, %v418_v50  ;;  %v3676_v53 = vmul.u32.u64.low %v420_v24, %v415_v49  ;;  %v3677_v54 = vmul.u32.u64.high %v420_v24, %v415_v49, %v3676_v53  ;;  %v427_v31 = vmul.u32 %v420_v24, %v411_v58 }
  0xab   : > { %v3679_v55 = vmul.u32.u64.low %v420_v24, %v419_v52  ;;  %v3680_v56 = vmul.u32.u64.high %v420_v24, %v419_v52, %v3679_v55  ;;  %v330_v57 = vshrl.u32 %v329_v51, 30  ;;  %v324_v19 = vadd.s32 %v3658_v15, %v3655_v13 }
  0xac   : > { %v430_v60 = vadd.s32 1, %v3677_v54  ;;  %vm360_vm5 = vweird.f32 %v3612_v7  ;;  %vm254_vm6 = vcmask 814080   ;;  %vm464_vm10 = vweird.f32 %v3615_v8 }
  0xad   : > { %v331_v59 = vshll.u32 %v330_v57, 30  ;;  %vm429_vm11 = vc.u32 %v3680_v56, %v3676_v53  ;;  %v428_v41 = vadd.s32 %v3676_v53, %v3680_v56  ;;  %v354_v49 = vsub.s32 4, %v330_v57  ;;  %255 = vst.msk [vmem:[#allocation2 + $0x8] sm:$0xf] %vm254_vm6, %v3490_v1 }
  0xae   : > { %v431_v62 = vsel %vm429_vm11, %v430_v60, %v3677_v54  ;;  %vm498_vm11 = vcmask 1043656   ;;  %vm4538_vm6 = vcmask 850944  }
  0xaf   : > { %v332_v61 = vsub.s32 %v328_v44, %v331_v59  ;;  %v432_v63 = vadd.s32 %v431_v62, %v427_v31  ;;  %v355_v55 = vsel %vm270_vm14, %v354_v49, %v330_v57 }
  0xb0   : > { %v357_v58 = vsel %vm269_vm15, 0, %v355_v55 }
  0xb1   : > { %v334_v0 = vsub.s32 0, %v332_v61  ;;  %v433_v2 = vadd.s32 536870912, %v432_v63 }
  0xb3   : > { %v3105_v3 = vmin.u32 %v334_v0, %v332_v61  ;;  %v434_v6 = vshrl.u32 %v433_v2, 30 }
  0xb5   : > { %v336_v10 = vclz %v3105_v3  ;;  %v435_v11 = vshll.u32 %v434_v6, 30  ;;  %v458_v60 = vsub.s32 4, %v434_v6 }
  0xb7   : > { %v3106_v12 = vadd.s32 4294967294, %v336_v10  ;;  %v436_v16 = vsub.s32 %v432_v63, %v435_v11  ;;  %v459_v62 = vsel %vm374_vm0, %v458_v60, %v434_v6 }
  0xb8   : > { %v461_v57 = vsel %vm373_vm1, 0, %v459_v62 }
  0xb9   : > { %vm3107_vm12 = vcmp.lt.s32.totalorder %v3106_v12, 0  ;;  %v438_v18 = vsub.s32 0, %v436_v16 }
  0xba   : > { %v339_v17 = vsel %vm3107_vm12, 0, %v3106_v12  ;;  %v465_v12 = vadd.s32 3, %v461_v57  ;;  %vm499_vm12 = vcmask 203780  }
  0xbb   : > { %v340_v20 = vsub.s32 32, %v339_v17  ;;  %v344_v21 = vsub.s32 4294967266, %v339_v17  ;;  %v3109_v22 = vmin.u32 %v438_v18, %v436_v16  ;;  %v341_v23 = vshll.u32 %v332_v61, %v339_v17 }
  0xbc   : > { %v361_v61 = vadd.s32 3, %v357_v58  ;;  %v466_v6 = vand.u32 3, %v465_v12 }
  0xbd   : > { %v342_v24 = vshrl.u32 %v324_v19, %v340_v20  ;;  %v345_v25 = vadd.s32 127, %v344_v21  ;;  %v440_v28 = vclz %v3109_v22  ;;  %v481_v19 = vpop.permute.xlu0 %480 }
  0xbe   : > { %v362_v63 = vand.u32 3, %v361_v61  ;;  %vm471_vm7 = vcmp.eq.s32.totalorder %v466_v6, 2  ;;  %vm468_vm8 = vcmp.eq.s32.totalorder %v466_v6, 0  ;;  %vm467_vm9 = vcmp.lt.s32.totalorder %v466_v6, 2 }
  0xbf   : > { %v343_v30 = vor.u32 %v342_v24, %v341_v23  ;;  %v346_v34 = vshll.u32 %v345_v25, 23  ;;  %v3110_v36 = vadd.s32 4294967294, %v440_v28 }
  0xc0   : > { %vm367_vm2 = vcmp.eq.s32.totalorder %v362_v63, 2  ;;  %vm364_vm3 = vcmp.eq.s32.totalorder %v362_v63, 0  ;;  %vm363_vm4 = vcmp.lt.s32.totalorder %v362_v63, 2 }
  0xc1   : > { %v347_v38 = vor.u32 4788187, %v346_v34  ;;  %vm3111_vm13 = vcmp.lt.s32.totalorder %v3110_v36, 0  ;;  %v350_v27 = vcvt.s32.f32 %v343_v30 }
  0xc2   : > { %v443_v26 = vsel %vm3111_vm13, 0, %v3110_v36  ;;  %vm495_vm13 = vcmask 203776  }
  0xc3   : > { %v348_v40 = vand.u32 2147483647, %v347_v38  ;;  %v444_v42 = vsub.s32 32, %v443_v26  ;;  %v448_v43 = vsub.s32 4294967266, %v443_v26  ;;  %v445_v15 = vshll.u32 %v436_v16, %v443_v26 }
  0xc5   : > { %v351_v13 = vmul.f32 %v350_v27, %v348_v40  ;;  %v446_v44 = vshrl.u32 %v428_v41, %v444_v42  ;;  %v449_v32 = vadd.s32 127, %v448_v43 }
  0xc7   : > { %v352_v45 = vxor.u32 2147483648, %v351_v13  ;;  %v447_v47 = vor.u32 %v446_v44, %v445_v15  ;;  %v450_v48 = vshll.u32 %v449_v32, 23 }
  0xc9   : > { %v353_v50 = vsel %vm270_vm14, %v352_v45, %v351_v13  ;;  %v451_v51 = vor.u32 4788187, %v450_v48  ;;  %v454_v54 = vcvt.s32.f32 %v447_v47  ;;  %vm3710_vm14 = vmor %vm499_vm12, %vm498_vm11  ;;  %vm708_vm11 = vcmask 408576  }
  0xca   : > { %v356_v52 = vsel %vm269_vm15, %v3612_v7, %v353_v50  ;;  %vm511_vm15 = vcmask 1044056   ;;  %vm4571_vm12 = vcmask 818176  }
  0xcb   : > { %3458 = vcosq.f32 %v356_v52  ;;  %v452_v53 = vand.u32 2147483647, %v451_v51 }
  0xcc   : > { %3460 = vsinq.f32 %v356_v52 }
  0xcd   : > { %v455_v56 = vmul.f32 %v454_v54, %v452_v53 }
  0xcf   : > { %v456_v59 = vxor.u32 2147483648, %v455_v56 }
  0xd1   : > { %v457_v31 = vsel %vm374_vm0, %v456_v59, %v455_v56  ;;  %vm512_vm0 = vcmask 613380  }
  0xd2   : > { %v460_v9 = vsel %vm373_vm1, %v3615_v8, %v457_v31  ;;  %vm508_vm1 = vcmask 613376  }
  0xd3   : > { %3462 = vcosq.f32 %v460_v9 }
  0xd4   : > { %3464 = vsinq.f32 %v460_v9 }
  0xd8   : > { %v3459_v0 = vpop.eup %3458 }
  0xd9   : > { %v3461_v2 = vpop.eup %3460  ;;  %v368_v3 = vxor.u32 2147483648, %v3459_v0 }
  0xda   : > { %v365_v10 = vxor.u32 2147483648, %v3461_v2 }
  0xdb   : > { %v369_v11 = vsel %vm367_vm2, %v368_v3, %v3461_v2  ;;  %vm3717_vm2 = vmor %vm512_vm0, %vm511_vm15  ;;  %vm4535_vm15 = vcmask 457728   ;;  %vm4534_vm0 = vcmask 867328  }
  0xdc   : > { %v366_v16 = vsel %vm364_vm3, %v3459_v0, %v365_v10  ;;  %vm4570_vm3 = vcmask 424960  }
  0xdd   : > { %v370_v14 = vsel %vm363_vm4, %v366_v16, %v369_v11  ;;  %vm4541_vm4 = vcmask 834560   ;;  %v569_v16 = vld [vmem:[%s4528_s2] sm:$0xf] }
  0xde   : > { %v371_v17 = vsel %vm360_vm5, nan, %v370_v14  ;;  %vm4539_vm5 = vcmask 441344  }
  0xdf   : > { %v476_v18 = vmul.f32 %v371_v17, %v371_v17 }
  0xe0   : > { %v3463_v20 = vpop.eup %3462 }
  0xe1   : > { %v483_v21 = vmul.f32 %v481_v19, %v476_v18  ;;  %v3465_v22 = vpop.eup %3464  ;;  %v472_v23 = vxor.u32 2147483648, %v3463_v20 }
  0xe2   : > { %v469_v24 = vxor.u32 2147483648, %v3465_v22 }
  0xe3   : > { %v3698_v25 = vadd.f32 %v483_v21, %v3607_v4  ;;  %v473_v28 = vsel %vm471_vm7, %v472_v23, %v3465_v22  ;;  %vm4537_vm7 = vcmask 433152  }
  0xe4   : > { %v470_v7 = vsel %vm468_vm8, %v3463_v20, %v469_v24  ;;  %vm4536_vm8 = vcmask 842752  }
  0xe5   : > { %v3250_v30 = vpack.c.bf16 %v3698_v25, %v3698_v25  ;;  %v474_v34 = vsel %vm467_vm9, %v470_v7, %v473_v28  ;;  %vm4540_vm9 = vcmask 1043456  }
  0xe6   : > { %v475_v36 = vsel %vm464_vm10, nan, %v474_v34  ;;  %vm4533_vm10 = vcmask 195584  }
  0xe7   : > { %492 = vrot.lane.b32.xlu1 %v3250_v30, %s3497_s7  ;;  %v477_v38 = vmul.f32 %v475_v36, %v475_v36 }
  0xe9   : > { %v484_v40 = vmul.f32 %v481_v19, %v477_v38  ;;  %v3138_v38 = vld [vmem:[%s4526_s0 + $0x8] sm:$0xff] }
  0xeb   : > { %v3705_v27 = vadd.f32 %v484_v40, %v3609_v5  ;;  %v3139_v40 = vld [vmem:[%s4527_s1 + $0x8] sm:$0xff] }
  0xed   : > { %v3251_v26 = vpack.c.bf16 %v3705_v27, %v3705_v27 }
  0xef   : > { %505 = vrot.lane.b32.xlu1 %v3251_v26, %s3498_s8 }
 0x159   : > { %v493_v8 = vpop.permute.xlu1 %492 }
 0x15a   : > { %v494_v42 = vrot.slane %v493_v8, 4 }
 0x15c   : > { %v496_v43 = vsel %vm495_vm13, %v494_v42, %v493_v8 }
 0x15d   : > { %501 = vst.msk [vmem:[#allocation2] sm:$0xff] %vm3710_vm14, %v496_v43 }
 0x161   : > { %v506_v13 = vpop.permute.xlu1 %505 }
 0x162   : > { %v507_v44 = vrot.slane %v506_v13, 4 }
 0x164   : > { %v509_v32 = vsel %vm508_vm1, %v507_v44, %v506_v13 }
 0x165   : > { %514 = vst.msk [vmem:[#allocation2 + $0x4] sm:$0xff] %vm3717_vm2, %v509_v32 }
 0x16c   : > { %v560_v45 = vld [vmem:[#allocation2 + $0x4] sm:$0xff] }
 0x16d   : > { %v551_v47 = vld [vmem:[#allocation2] sm:$0xff]  ;;  %562 = vrot.lane.b32.xlu1 %v560_v45, %s3499_s9 }
 0x16e   : > { %553 = vrot.lane.b32.xlu0 %v551_v47, %s3500_s10 }
 0x171   : > { %526 = vrot.lane.b32.xlu1 %v560_v45, %s3501_s11 }
 0x172   : > { %517 = vrot.lane.b32.xlu0 %v551_v47, %s3502_s12 }
 0x175   : > { %544 = vrot.lane.b32.xlu1 %v560_v45, %s3503_s13 }
 0x176   : > { %535 = vrot.lane.b32.xlu0 %v551_v47, %s3504_s14 }
 0x1df   : > { %v563_v48 = vpop.permute.xlu1 %562 }
 0x1e0   : > { %v554_v49 = vpop.permute.xlu0 %553  ;;  %v564_v50 = vrot.slane %v563_v48, 4 }
 0x1e1   : > { %v555_v51 = vrot.slane %v554_v49, 4 }
 0x1e2   : > { %v566_v52 = vsel %vm4570_vm3, %v563_v48, %v564_v50 }
 0x1e3   : > { %v557_v53 = vsel %vm4541_vm4, %v554_v49, %v555_v51  ;;  %568 = vst [vmem:[#allocation3 + $0x14] sm:$0xf] %v566_v52  ;;  %v527_v54 = vpop.permute.xlu1 %526 }
 0x1e4   : > { %559 = vst [vmem:[#allocation3 + $0x10] sm:$0xf] %v557_v53  ;;  %v518_v55 = vpop.permute.xlu0 %517  ;;  %v528_v56 = vrot.slane %v527_v54, 4 }
 0x1e5   : > { %v519_v58 = vrot.slane %v518_v55, 4 }
 0x1e6   : > { %v530_v59 = vsel %vm4539_vm5, %v527_v54, %v528_v56 }
 0x1e7   : > { %v521_v60 = vsel %vm4538_vm6, %v518_v55, %v519_v58  ;;  %532 = vst [vmem:[#allocation3 + $0x4] sm:$0xf] %v530_v59  ;;  %v545_v31 = vpop.permute.xlu1 %544 }
 0x1e8   : > { %523 = vst [vmem:[#allocation3] sm:$0xf] %v521_v60  ;;  %v536_v61 = vpop.permute.xlu0 %535  ;;  %v546_v9 = vrot.slane %v545_v31, 4 }
 0x1e9   : > { %v537_v62 = vrot.slane %v536_v61, 4 }
 0x1ea   : > { %v548_v63 = vsel %vm4537_vm7, %v545_v31, %v546_v9  ;;  %v3122_v9 = vld [vmem:[%s4528_s2 + $0x4] sm:$0xf] }
 0x1eb   : > { %v539_v0 = vsel %vm4536_vm8, %v536_v61, %v537_v62  ;;  %v572_v57 = vld [vmem:[#allocation3 + $0x10] sm:$0xff]  ;;  %550 = vst [vmem:[#allocation3 + $0xc] sm:$0xf] %v548_v63 }
 0x1ec   : > { %541 = vst [vmem:[#allocation3 + $0x8] sm:$0xf] %v539_v0  ;;  %v3117_v2 = vcombine.high %v572_v57, %v572_v57  ;;  %v3116_v3 = vcombine.low %v572_v57, %v572_v57 }
 0x1ee   : > { %3118 = vmatprep.subr.msk.bf16.mxu1 %vm4540_vm9, %v3117_v2  ;;  %v594_v10 = vsel %vm4540_vm9, %v3116_v3, 0 }
 0x1ef   : > { %612 = vmatpush1.bf16.msra.mxu1 %v594_v10 }
 0x1f2   : > { %v3361_v11 = vld [vmem:[#allocation3 + $0x4] ss:$8 sps:$4 sm:$0xff]  }
 0x1f3   : > { %v3363_v12 = vld [vmem:[#allocation3] ss:$8 sps:$4 sm:$0xff]   ;;  %613 = vmatprep.subr.bf16.mxu1 %v3361_v11 }
 0x1f4   : > { %614 = vmatpush1.bf16.msra.mxu1 %v3363_v12 }
 0x1f7   : > { %3119 = vmatmul.mubr.msk.bf16.vlgmr.msra.gmra.mxu1 %vm4533_vm10, %v569_v16 }
 0x1f8   : > { %773 = vmatprep.mubr.bf16.mxu1 %v3490_v1 }
 0x2b7   : > { %v633_v14 = vpop.f32.mrf.mxu1 }
 0x2b8   : > { %v3744_v17 = vadd.f32 %v633_v14, %v3698_v25 }
 0x2b9   : > { %v635_v6 = vpop.f32.mrf.mxu1 }
 0x2ba   : > { %v3252_v18 = vpack.c.bf16 %v3744_v17, %v3744_v17  ;;  %v3749_v19 = vadd.f32 %v635_v6, %v3705_v27 }
 0x2bb   : > { %v637_v20 = vpop.f32.mrf.mxu1 }
 0x2bc   : > { %v3253_v21 = vpack.c.bf16 %v3749_v19, %v3749_v19  ;;  %645 = vrot.lane.b32.xlu0 %v3252_v18, %s3497_s7 }
 0x2bd   : > { %v638_v22 = vpop.f32.mrf.mxu1 }
 0x2be   : > { %654 = vrot.lane.b32.xlu1 %v3253_v21, %s3498_s8 }
 0x32e   : > { %v646_v23 = vpop.permute.xlu0 %645 }
 0x32f   : > { %v647_v24 = vrot.slane %v646_v23, 4 }
 0x330   : > { %v655_v25 = vpop.permute.xlu1 %654 }
 0x331   : > { %v648_v28 = vsel %vm495_vm13, %v647_v24, %v646_v23  ;;  %v656_v7 = vrot.slane %v655_v25, 4 }
 0x332   : > { %650 = vst.msk [vmem:[#allocation2] sm:$0xff] %vm3710_vm14, %v648_v28 }
 0x333   : > { %v657_v30 = vsel %vm508_vm1, %v656_v7, %v655_v25 }
 0x334   : > { %659 = vst.msk [vmem:[#allocation2 + $0x4] sm:$0xff] %vm3717_vm2, %v657_v30 }
 0x33b   : > { %v703_v34 = vld [vmem:[#allocation2 + $0x4] sm:$0xff] }
 0x33c   : > { %v694_v36 = vld [vmem:[#allocation2] sm:$0xff]  ;;  %705 = vrot.lane.b32.xlu1 %v703_v34, %s3505_s17 }
 0x33d   : > { %696 = vrot.lane.b32.xlu0 %v694_v36, %s3506_s18 }
 0x340   : > { %671 = vrot.lane.b32.xlu1 %v703_v34, %s4557_s19 }
 0x341   : > { %662 = vrot.lane.b32.xlu0 %v694_v36, %s4555_s20 }
 0x344   : > { %688 = vrot.lane.b32.xlu1 %v703_v34, %s3503_s13 }
 0x345   : > { %680 = vrot.lane.b32.xlu0 %v694_v36, %s3504_s14 }
 0x348   : > { %1149 = vperm.xlu1 %3358, %v3139_v40  }
 0x349   : > { %932 = vperm.xlu0 %3357, %v3138_v38  }
 0x3ae   : > { %v706_v27 = vpop.permute.xlu1 %705 }
 0x3af   : > { %v697_v26 = vpop.permute.xlu0 %696  ;;  %v707_v8 = vrot.slane %v706_v27, 4 }
 0x3b0   : > { %v698_v42 = vrot.slane %v697_v26, 4 }
 0x3b1   : > { %v709_v43 = vsel %vm708_vm11, %v706_v27, %v707_v8 }
 0x3b2   : > { %v700_v13 = vsel %vm4571_vm12, %v697_v26, %v698_v42  ;;  %711 = vst [vmem:[#allocation3 + $0x14] sm:$0xf] %v709_v43  ;;  %v672_v44 = vpop.permute.xlu1 %671 }
 0x3b3   : > { %702 = vst [vmem:[#allocation3 + $0x10] sm:$0xf] %v700_v13  ;;  %v663_v32 = vpop.permute.xlu0 %662  ;;  %v673_v45 = vrot.slane %v672_v44, 4 }
 0x3b4   : > { %v664_v47 = vrot.slane %v663_v32, 4 }
 0x3b5   : > { %v675_v48 = vsel %vm4535_vm15, %v672_v44, %v673_v45 }
 0x3b6   : > { %v666_v49 = vsel %vm4534_vm0, %v663_v32, %v664_v47  ;;  %677 = vst [vmem:[#allocation3 + $0x4] sm:$0xf] %v675_v48  ;;  %v689_v50 = vpop.permute.xlu1 %688 }
 0x3b7   : > { %668 = vst [vmem:[#allocation3] sm:$0xf] %v666_v49  ;;  %v681_v51 = vpop.permute.xlu0 %680  ;;  %v690_v52 = vrot.slane %v689_v50, 4 }
 0x3b8   : > { %v682_v53 = vrot.slane %v681_v51, 4 }
 0x3b9   : > { %v691_v54 = vsel %vm4537_vm7, %v689_v50, %v690_v52 }
 0x3ba   : > { %v683_v55 = vsel %vm4536_vm8, %v681_v51, %v682_v53  ;;  %v716_v56 = vld [vmem:[#allocation3 + $0x10] sm:$0xff]  ;;  %693 = vst [vmem:[#allocation3 + $0xc] sm:$0xf] %v691_v54 }
 0x3bb   : > { %685 = vst [vmem:[#allocation3 + $0x8] sm:$0xf] %v683_v55  ;;  %v3126_v58 = vcombine.high %v716_v56, %v716_v56  ;;  %v3125_v59 = vcombine.low %v716_v56, %v716_v56 }
 0x3bd   : > { %3127 = vmatprep.subr.msk.bf16.mxu1 %vm4540_vm9, %v3126_v58  ;;  %v736_v60 = vsel %vm4540_vm9, %v3125_v59, 0 }
 0x3be   : > { %754 = vmatpush1.bf16.msra.mxu1 %v736_v60 }
 0x3c1   : > { %v3366_v31 = vld [vmem:[#allocation3 + $0x4] ss:$8 sps:$4 sm:$0xff]  }
 0x3c2   : > { %v3368_v61 = vld [vmem:[#allocation3] ss:$8 sps:$4 sm:$0xff]   ;;  %755 = vmatprep.subr.bf16.mxu1 %v3366_v31 }
 0x3c3   : > { %756 = vmatpush1.bf16.msra.mxu1 %v3368_v61 }
 0x3c4   : > { %v933_v62 = vpop.permute.xlu0 %932 }
 0x3c5   : > { %v3787_v63 = vmul.f32 %v933_v62, %v3607_v4  ;;  %v3790_v0 = vmul.f32 %v933_v62, %v3609_v5 }
 0x3c6   : > { %3128 = vmatmul.mubr.msk.bf16.vlgmr.msra.gmra.mxu1 %vm4533_vm10, %v3122_v9 }
 0x3c7   : > { %1377 = vmatprep.mubr.bf16.mxu1 %v3490_v1  ;;  %v940_v57 = vand.u32 2139095040, %v3787_v63  ;;  %v1044_v2 = vand.u32 2139095040, %v3790_v0  ;;  %v937_v23 = vand.u32 2147483647, %v3787_v63  ;;  %v1041_v30 = vand.u32 2147483647, %v3790_v0 }
 0x3c9   : > { %v941_v3 = vshrl.u32 %v940_v57, 23  ;;  %v1045_v10 = vshrl.u32 %v1044_v2, 23  ;;  %v944_v34 = vand.u32 8388607, %v937_v23  ;;  %v1048_v62 = vand.u32 8388607, %v1041_v30 }
 0x3cb   : > { %v3140_v11 = vadd.s32 4294967169, %v941_v3  ;;  %v3144_v12 = vadd.s32 4294967169, %v1045_v10 }
 0x3cd   : > { %v947_v16 = vadd.s32 1, %v3140_v11  ;;  %v1051_v14 = vadd.s32 1, %v3144_v12  ;;  %v945_v11 = vor.u32 8388608, %v944_v34 }
 0x3cf   : > { %vm948_vm10 = vcmp.gt.s32.totalorder %v947_v16, 0  ;;  %vm1052_vm0 = vcmp.gt.s32.totalorder %v1051_v14, 0 }
 0x3d0   : > { %v949_v6 = vsel %vm948_vm10, %v947_v16, 0  ;;  %v1053_v18 = vsel %vm1052_vm0, %v1051_v14, 0 }
 0x3d1   : > { %v951_v20 = vand.u32 31, %v949_v6  ;;  %v1055_v21 = vand.u32 31, %v1053_v18  ;;  %v3799_v25 = vshrl.u32 %v949_v6, 5  ;;  %v3810_v40 = vshrl.u32 %v1053_v18, 5 }
 0x3d3   : > { %v3794_v22 = vsub.s32 32, %v951_v20  ;;  %v3797_v24 = vsub.s32 32, %v1055_v21  ;;  %v963_v36 = vshll.u32 %v3494_v37, %v951_v20  ;;  %v966_v38 = vshll.u32 %v3495_v39, %v951_v20 }
 0x3d4   : > { %v954_v43 = vshll.u32 %v3491_v29, %v951_v20  ;;  %v957_v13 = vshll.u32 %v3492_v33, %v951_v20  ;;  %v960_v44 = vshll.u32 %v3493_v35, %v951_v20  ;;  %vm972_vm10 = vcmp.lt.s32.totalorder %v3799_v25, 4 }
 0x3d5   : > { %v964_v28 = vshrl.u32 %v3495_v39, %v3794_v22  ;;  %v967_v7 = vshrl.u32 %v3496_v46, %v3794_v22  ;;  %v955_v27 = vshrl.u32 %v3492_v33, %v3794_v22  ;;  %v958_v26 = vshrl.u32 %v3493_v35, %v3794_v22 }
 0x3d6   : > { %v961_v8 = vshrl.u32 %v3494_v37, %v3794_v22  ;;  %v1068_v42 = vshrl.u32 %v3495_v39, %v3797_v24  ;;  %v1071_v32 = vshrl.u32 %v3496_v46, %v3797_v24  ;;  %v1067_v48 = vshll.u32 %v3494_v37, %v1055_v21 }
 0x3d7   : > { %v965_v45 = vor.u32 %v964_v28, %v963_v36  ;;  %v968_v47 = vor.u32 %v967_v7, %v966_v38  ;;  %v1059_v49 = vshrl.u32 %v3492_v33, %v3797_v24  ;;  %v1062_v50 = vshrl.u32 %v3493_v35, %v3797_v24 }
 0x3d8   : > { %v1065_v51 = vshrl.u32 %v3494_v37, %v3797_v24  ;;  %v1070_v52 = vshll.u32 %v3495_v39, %v1055_v21  ;;  %v956_v53 = vor.u32 %v955_v27, %v954_v43  ;;  %v959_v54 = vor.u32 %v958_v26, %v957_v13 }
 0x3d9   : > { %v962_v55 = vor.u32 %v961_v8, %v960_v44  ;;  %v1069_v56 = vor.u32 %v1068_v42, %v1067_v48  ;;  %v1058_v58 = vshll.u32 %v3491_v29, %v1055_v21  ;;  %v1061_v59 = vshll.u32 %v3492_v33, %v1055_v21 }
 0x3da   : > { %v1064_v60 = vshll.u32 %v3493_v35, %v1055_v21  ;;  %v1072_v31 = vor.u32 %v1071_v32, %v1070_v52  ;;  %v978_v61 = vsel %vm972_vm10, %v965_v45, 920167782  ;;  %v982_v9 = vsel %vm972_vm10, %v968_v47, 1326507024 }
 0x3db   : > { %v1060_v57 = vor.u32 %v1059_v49, %v1058_v58  ;;  %v1063_v2 = vor.u32 %v1062_v50, %v1061_v59  ;;  %vm1076_vm0 = vcmp.lt.s32.totalorder %v3810_v40, 4  ;;  %vm969_vm15 = vcmp.lt.s32.totalorder %v3799_v25, 1 }
 0x3dc   : > { %v1066_v3 = vor.u32 %v1065_v51, %v1064_v60  ;;  %vm971_vm8 = vcmp.lt.s32.totalorder %v3799_v25, 3  ;;  %v1082_v10 = vsel %vm1076_vm0, %v1069_v56, 920167782  ;;  %v977_v12 = vsel %vm969_vm15, %v956_v53, %v959_v54 }
 0x3dd   : > { %v979_v16 = vsel %vm971_vm8, %v962_v55, %v978_v61  ;;  %v1086_v14 = vsel %vm1076_vm0, %v1072_v31, 1326507024  ;;  %v981_v6 = vsel %vm969_vm15, %v959_v54, %v962_v55  ;;  %v983_v18 = vsel %vm971_vm8, %v965_v45, %v982_v9 }
 0x3de   : > { %vm1073_vm7 = vcmp.lt.s32.totalorder %v3810_v40, 1  ;;  %vm1075_vm6 = vcmp.lt.s32.totalorder %v3810_v40, 3  ;;  %vm970_vm5 = vcmp.lt.s32.totalorder %v3799_v25, 2  ;;  %v1049_v20 = vor.u32 8388608, %v1048_v62 }
 0x3df   : > { %v1081_v21 = vsel %vm1073_vm7, %v1060_v57, %v1063_v2  ;;  %v1083_v28 = vsel %vm1075_vm6, %v1066_v3, %v1082_v10  ;;  %v980_v7 = vsel %vm970_vm5, %v977_v12, %v979_v16  ;;  %v1085_v34 = vsel %vm1073_vm7, %v1063_v2, %v1066_v3 }
 0x3e0   : > { %v1087_v36 = vsel %vm1075_vm6, %v1069_v56, %v1086_v14  ;;  %v984_v38 = vsel %vm970_vm5, %v981_v6, %v983_v18  ;;  %v985_v27 = vshll.u32 %v945_v11, 8  ;;  %vm1074_vm9 = vcmp.lt.s32.totalorder %v3810_v40, 2 }
 0x3e1   : > { %v1084_v26 = vsel %vm1074_vm9, %v1081_v21, %v1083_v28  ;;  %v1088_v43 = vsel %vm1074_vm9, %v1085_v34, %v1087_v36  ;;  %v1089_v13 = vshll.u32 %v1049_v20, 8  ;;  %v974_v50 = vsel %vm972_vm10, %v962_v55, 2102212464 }
 0x3e2   : > { %v3876_v8 = vmul.u32.u64.low %v985_v27, %v980_v7  ;;  %v3877_v42 = vmul.u32.u64.high %v985_v27, %v980_v7, %v3876_v8  ;;  %v3881_v44 = vmul.u32.u64.low %v985_v27, %v984_v38  ;;  %v3882_v32 = vmul.u32.u64.high %v985_v27, %v984_v38, %v3881_v44 }
 0x3e3   : > { %v3884_v45 = vmul.u32.u64.low %v1089_v13, %v1084_v26  ;;  %v3885_v47 = vmul.u32.u64.high %v1089_v13, %v1084_v26, %v3884_v45  ;;  %v3887_v48 = vmul.u32.u64.low %v1089_v13, %v1088_v43  ;;  %v3888_v49 = vmul.u32.u64.high %v1089_v13, %v1088_v43, %v3887_v48 }
 0x3e4   : > { %v953_v51 = vshrl.u32 %v3491_v29, %v3794_v22  ;;  %v1078_v52 = vsel %vm1076_vm0, %v1066_v3, 2102212464  ;;  %v975_v58 = vsel %vm971_vm8, %v959_v54, %v974_v50  ;;  %v1057_v59 = vshrl.u32 %v3491_v29, %v3797_v24 }
 0x3e5   : > { %v995_v60 = vadd.s32 1, %v3877_v42  ;;  %vm994_vm4 = vc.u32 %v3882_v32, %v3876_v8  ;;  %v1079_v22 = vsel %vm1075_vm6, %v1063_v2, %v1078_v52  ;;  %vm1098_vm8 = vc.u32 %v3888_v49, %v3884_v45 }
 0x3e6   : > { %v973_v56 = vsel %vm969_vm15, %v953_v51, %v956_v53  ;;  %v1077_v55 = vsel %vm1073_vm7, %v1057_v59, %v1060_v57  ;;  %v1099_v53 = vadd.s32 1, %v3885_v47  ;;  %v1097_v52 = vadd.s32 %v3884_v45, %v3888_v49 }
 0x3e7   : > { %v976_v31 = vsel %vm970_vm5, %v973_v56, %v975_v58  ;;  %v996_v54 = vsel %vm994_vm4, %v995_v60, %v3877_v42  ;;  %v1080_v24 = vsel %vm1074_vm9, %v1077_v55, %v1079_v22  ;;  %vm939_vm6 = vcmp.lt.s32.totalorder %v3787_v63, 0 }
 0x3e8   : > { %v992_v61 = vmul.u32 %v985_v27, %v976_v31  ;;  %v1100_v9 = vsel %vm1098_vm8, %v1099_v53, %v3885_v47  ;;  %v1096_v57 = vmul.u32 %v1089_v13, %v1080_v24  ;;  %v993_v47 = vadd.s32 %v3876_v8, %v3882_v32 }
 0x3e9   : > { %vm1043_vm7 = vcmp.lt.s32.totalorder %v3790_v0, 0  ;;  %vm938_vm9 = vcmp.le.f32.partialorder %v937_v23, 0.7853982  ;;  %vm1042_vm15 = vcmp.le.f32.partialorder %v1041_v30, 0.7853982 }
 0x3ea   : > { %v997_v62 = vadd.s32 %v996_v54, %v992_v61  ;;  %v1101_v3 = vadd.s32 %v1100_v9, %v1096_v57 }
 0x3ec   : > { %v998_v10 = vadd.s32 536870912, %v997_v62  ;;  %v1102_v2 = vadd.s32 536870912, %v1101_v3 }
 0x3ee   : > { %v999_v11 = vshrl.u32 %v998_v10, 30  ;;  %v1103_v25 = vshrl.u32 %v1102_v2, 30 }
 0x3f0   : > { %v1000_v12 = vshll.u32 %v999_v11, 30  ;;  %v1104_v16 = vshll.u32 %v1103_v25, 30  ;;  %v1023_v2 = vsub.s32 4, %v999_v11 }
 0x3f2   : > { %v1001_v14 = vsub.s32 %v997_v62, %v1000_v12  ;;  %v1105_v6 = vsub.s32 %v1101_v3, %v1104_v16  ;;  %v1127_v12 = vsub.s32 4, %v1103_v25  ;;  %v1024_v16 = vsel %vm939_vm6, %v1023_v2, %v999_v11 }
 0x3f4   : > { %v1003_v18 = vsub.s32 0, %v1001_v14  ;;  %v1107_v20 = vsub.s32 0, %v1105_v6 }
 0x3f6   : > { %v3141_v21 = vmin.u32 %v1003_v18, %v1001_v14  ;;  %v3145_v28 = vmin.u32 %v1107_v20, %v1105_v6 }
 0x3f8   : > { %v1005_v40 = vclz %v3141_v21  ;;  %v1109_v7 = vclz %v3145_v28 }
 0x3fa   : > { %v3142_v34 = vadd.s32 4294967294, %v1005_v40  ;;  %v3146_v36 = vadd.s32 4294967294, %v1109_v7 }
 0x3fc   : > { %vm3143_vm4 = vcmp.lt.s32.totalorder %v3142_v34, 0  ;;  %vm3147_vm5 = vcmp.lt.s32.totalorder %v3146_v36, 0 }
 0x3fd   : > { %v1008_v38 = vsel %vm3143_vm4, 0, %v3142_v34  ;;  %v1112_v27 = vsel %vm3147_vm5, 0, %v3146_v36 }
 0x3fe   : > { %v1013_v26 = vsub.s32 4294967266, %v1008_v38  ;;  %v1117_v42 = vsub.s32 4294967266, %v1112_v27  ;;  %v1009_v13 = vsub.s32 32, %v1008_v38  ;;  %v1113_v50 = vsub.s32 32, %v1112_v27 }
 0x3ff   : > { %v1010_v58 = vshll.u32 %v1001_v14, %v1008_v38  ;;  %v1114_v22 = vshll.u32 %v1105_v6, %v1112_v27  ;;  %v1128_v14 = vsel %vm1043_vm7, %v1127_v12, %v1103_v25  ;;  %v1026_v6 = vsel %vm938_vm9, 0, %v1024_v16 }
 0x400   : > { %v1014_v43 = vadd.s32 127, %v1013_v26  ;;  %v1118_v44 = vadd.s32 127, %v1117_v42  ;;  %v1011_v51 = vshrl.u32 %v993_v47, %v1009_v13  ;;  %v1115_v60 = vshrl.u32 %v1097_v52, %v1113_v50 }
 0x401   : > { %v1130_v18 = vsel %vm1042_vm15, 0, %v1128_v14  ;;  %v1030_v20 = vadd.s32 3, %v1026_v6 }
 0x402   : > { %v1015_v48 = vshll.u32 %v1014_v43, 23  ;;  %v1119_v56 = vshll.u32 %v1118_v44, 23  ;;  %v1012_v55 = vor.u32 %v1011_v51, %v1010_v58  ;;  %v1116_v54 = vor.u32 %v1115_v60, %v1114_v22  ;;  %v1150_v51 = vpop.permute.xlu1 %1149 }
 0x403   : > { %v1134_v28 = vadd.s32 3, %v1130_v18  ;;  %v1031_v34 = vand.u32 3, %v1030_v20 }
 0x404   : > { %v1016_v59 = vor.u32 4788187, %v1015_v48  ;;  %v1120_v31 = vor.u32 4788187, %v1119_v56  ;;  %v1019_v24 = vcvt.s32.f32 %v1012_v55  ;;  %v1123_v62 = vcvt.s32.f32 %v1116_v54 }
 0x405   : > { %v1135_v38 = vand.u32 3, %v1134_v28  ;;  %vm1033_vm10 = vcmp.eq.s32.totalorder %v1031_v34, 0  ;;  %vm1036_vm0 = vcmp.eq.s32.totalorder %v1031_v34, 2  ;;  %vm1032_vm5 = vcmp.lt.s32.totalorder %v1031_v34, 2 }
 0x406   : > { %v1017_v53 = vand.u32 2147483647, %v1016_v59  ;;  %v1121_v61 = vand.u32 2147483647, %v1120_v31 }
 0x407   : > { %vm1137_vm8 = vcmp.eq.s32.totalorder %v1135_v38, 0  ;;  %vm1140_vm4 = vcmp.eq.s32.totalorder %v1135_v38, 2 }
 0x408   : > { %v1020_v9 = vmul.f32 %v1019_v24, %v1017_v53  ;;  %v1124_v57 = vmul.f32 %v1123_v62, %v1121_v61 }
 0x40a   : > { %v1021_v8 = vxor.u32 2147483648, %v1020_v9  ;;  %v1125_v32 = vxor.u32 2147483648, %v1124_v57 }
 0x40c   : > { %v1022_v3 = vsel %vm939_vm6, %v1021_v8, %v1020_v9  ;;  %v1126_v45 = vsel %vm1043_vm7, %v1125_v32, %v1124_v57  ;;  %vm1136_vm6 = vcmp.lt.s32.totalorder %v1135_v38, 2  ;;  %vm1029_vm7 = vweird.f32 %v3787_v63 }
 0x40d   : > { %v1025_v49 = vsel %vm938_vm9, %v3787_v63, %v1022_v3  ;;  %v1129_v10 = vsel %vm1042_vm15, %v3790_v0, %v1126_v45  ;;  %vm1133_vm9 = vweird.f32 %v3790_v0  ;;  %vm4584_vm15 = vcmask 834560  }
 0x40e   : > { %3466 = vcosq.f32 %v1025_v49 }
 0x40f   : > { %3468 = vsinq.f32 %v1025_v49 }
 0x410   : > { %3470 = vcosq.f32 %v1129_v10 }
 0x411   : > { %3472 = vsinq.f32 %v1129_v10 }
 0x41b   : > { %v3467_v21 = vpop.eup %3466 }
 0x41c   : > { %v3469_v23 = vpop.eup %3468  ;;  %v1037_v36 = vxor.u32 2147483648, %v3467_v21 }
 0x41d   : > { %v3471_v40 = vpop.eup %3470  ;;  %v1034_v30 = vxor.u32 2147483648, %v3469_v23 }
 0x41e   : > { %v3473_v7 = vpop.eup %3472  ;;  %v1141_v26 = vxor.u32 2147483648, %v3471_v40  ;;  %v1038_v43 = vsel %vm1036_vm0, %v1037_v36, %v3469_v23  ;;  %vm4562_vm0 = vcmask 826368  }
 0x41f   : > { %v1138_v27 = vxor.u32 2147483648, %v3473_v7  ;;  %v1035_v42 = vsel %vm1033_vm10, %v3467_v21, %v1034_v30  ;;  %vm4569_vm10 = vcmask 416768  }
 0x420   : > { %v1142_v25 = vsel %vm1140_vm4, %v1141_v26, %v3473_v7  ;;  %v1039_v13 = vsel %vm1032_vm5, %v1035_v42, %v1038_v43  ;;  %vm4587_vm5 = vcmask 441344  }
 0x421   : > { %v1139_v11 = vsel %vm1137_vm8, %v3471_v40, %v1138_v27  ;;  %v1040_v47 = vsel %vm1029_vm7, nan, %v1039_v13  ;;  %vm4585_vm8 = vcmask 1043456   ;;  %vm4589_vm7 = vcmask 433152  }
 0x422   : > { %v1143_v44 = vsel %vm1136_vm6, %v1139_v11, %v1142_v25  ;;  %v1145_v50 = vmul.f32 %v1040_v47, %v1040_v47  ;;  %vm4586_vm4 = vmmov %vm4585_vm8  ;;  %vm4588_vm6 = vcmask 850944  }
 0x423   : > { %v1144_v48 = vsel %vm1133_vm9, nan, %v1143_v44  ;;  %vm4590_vm9 = vcmask 842752  }
 0x424   : > { %v1146_v52 = vmul.f32 %v1144_v48, %v1144_v48  ;;  %v1152_v56 = vmul.f32 %v1150_v51, %v1145_v50 }
 0x426   : > { %v1153_v59 = vmul.f32 %v1150_v51, %v1146_v52  ;;  %v3932_v22 = vadd.f32 %v1152_v56, %v3607_v4 }
 0x428   : > { %v3940_v53 = vadd.f32 %v1153_v59, %v3609_v5  ;;  %v3256_v24 = vpack.c.bf16 %v3932_v22, %v3932_v22 }
 0x486   : > { %v775_v58 = vpop.f32.mrf.mxu1 }
 0x487   : > { %v3929_v60 = vadd.f32 %v775_v58, %v3744_v17 }
 0x488   : > { %v777_v55 = vpop.f32.mrf.mxu1 }
 0x489   : > { %v3254_v63 = vpack.c.bf16 %v3929_v60, %v3929_v60  ;;  %v3937_v31 = vadd.f32 %v777_v55, %v3749_v19  ;;  %v3257_v19 = vpack.c.bf16 %v3940_v53, %v3940_v53 }
 0x48a   : > { %v779_v0 = vpop.f32.mrf.mxu1 }
 0x48b   : > { %v3255_v54 = vpack.c.bf16 %v3937_v31, %v3937_v31  ;;  %787 = vrot.lane.b32.xlu0 %v3254_v63, %s3497_s7 }
 0x48c   : > { %v780_v17 = vpop.f32.mrf.mxu1 }
 0x48d   : > { %796 = vrot.lane.b32.xlu1 %v3255_v54, %s3498_s8 }
 0x48f   : > { %1161 = vrot.lane.b32.xlu0 %v3256_v24, %s3497_s7 }
 0x491   : > { %1170 = vrot.lane.b32.xlu1 %v3257_v19, %s3498_s8 }
 0x4fd   : > { %v788_v61 = vpop.permute.xlu0 %787 }
 0x4fe   : > { %v789_v9 = vrot.slane %v788_v61, 4 }
 0x4ff   : > { %v797_v62 = vpop.permute.xlu1 %796 }
 0x500   : > { %v790_v57 = vsel %vm495_vm13, %v789_v9, %v788_v61  ;;  %v798_v8 = vrot.slane %v797_v62, 4 }
 0x501   : > { %792 = vst.msk [vmem:[#allocation2] sm:$0xff] %vm3710_vm14, %v790_v57  ;;  %v1162_v3 = vpop.permute.xlu0 %1161 }
 0x502   : > { %v799_v32 = vsel %vm508_vm1, %v798_v8, %v797_v62  ;;  %v1163_v49 = vrot.slane %v1162_v3, 4 }
 0x503   : > { %801 = vst.msk [vmem:[#allocation2 + $0x4] sm:$0xff] %vm3717_vm2, %v799_v32  ;;  %v1171_v45 = vpop.permute.xlu1 %1170 }
 0x504   : > { %v1172_v10 = vrot.slane %v1171_v45, 4  ;;  %v1164_v12 = vsel %vm495_vm13, %v1163_v49, %v1162_v3 }
 0x506   : > { %v1173_v14 = vsel %vm508_vm1, %v1172_v10, %v1171_v45 }
 0x50a   : > { %v3958_v2 = vld [vmem:[#allocation2] sm:$0xff] }
 0x50b   : > { %v3961_v16 = vld [vmem:[#allocation2 + $0x4] sm:$0xff] }
 0x50c   : > { %1166 = vst.msk [vmem:[#allocation2] sm:$0xff] %vm3710_vm14, %v1164_v12 }
 0x50d   : > { %1175 = vst.msk [vmem:[#allocation2 + $0x4] sm:$0xff] %vm3717_vm2, %v1173_v14 }
 0x514   : > { %v1284_v6 = vld [vmem:[#allocation2 + $0x4] sm:$0xff] }
 0x515   : > { %v1276_v18 = vld [vmem:[#allocation2] sm:$0xff]  ;;  %1286 = vrot.lane.b32.xlu1 %v1284_v6, %s3505_s17 }
 0x516   : > { %1278 = vrot.lane.b32.xlu0 %v1276_v18, %s3506_s18 }
 0x519   : > { %1252 = vrot.lane.b32.xlu1 %v1284_v6, %s3499_s9 }
 0x51a   : > { %1244 = vrot.lane.b32.xlu0 %v1276_v18, %s3500_s10 }
 0x51d   : > { %1269 = vrot.lane.b32.xlu1 %v1284_v6, %s3509_s29 }
 0x51e   : > { %1260 = vrot.lane.b32.xlu0 %v1276_v18, %s3510_s30 }
 0x521   : > { %1220 = vrot.lane.b32.xlu1 %v1284_v6, %s3501_s11 }
 0x522   : > { %1212 = vrot.lane.b32.xlu0 %v1276_v18, %s3502_s12 }
 0x525   : > { %1236 = vrot.lane.b32.xlu1 %v1284_v6, %s3503_s13 }
 0x526   : > { %1228 = vrot.lane.b32.xlu0 %v1276_v18, %s3504_s14 }
 0x529   : > { %1186 = vrot.lane.b32.xlu1 %v1284_v6, %s4557_s19 }
 0x52a   : > { %1178 = vrot.lane.b32.xlu0 %v1276_v18, %s4555_s20 }
 0x52d   : > { %1203 = vrot.lane.b32.xlu1 %v1284_v6, %s4554_s15  ;;  %s3524_s15 = smov 109  }
 0x52e   : > { %1194 = vrot.lane.b32.xlu0 %v1276_v18, %s4553_s16  ;;  %s3523_s16 = smov 59  }
 0x587   : > { %v1287_v20 = vpop.permute.xlu1 %1286 }
 0x588   : > { %v1279_v21 = vpop.permute.xlu0 %1278  ;;  %v1288_v23 = vrot.slane %v1287_v20, 4 }
 0x589   : > { %v1280_v28 = vrot.slane %v1279_v21, 4 }
 0x58a   : > { %v1289_v40 = vsel %vm708_vm11, %v1287_v20, %v1288_v23 }
 0x58b   : > { %v1281_v7 = vsel %vm4571_vm12, %v1279_v21, %v1280_v28  ;;  %1291 = vst [vmem:[#allocation4 + $0x34] sm:$0xf] %v1289_v40  ;;  %v1253_v34 = vpop.permute.xlu1 %1252 }
 0x58c   : > { %1283 = vst [vmem:[#allocation4 + $0x30] sm:$0xf] %v1281_v7  ;;  %v1245_v30 = vpop.permute.xlu0 %1244  ;;  %v1254_v36 = vrot.slane %v1253_v34, 4  ;;  %v1292_v7 = vld [vmem:[%s4529_s3] sm:$0xf] }
 0x58d   : > { %v1246_v38 = vrot.slane %v1245_v30, 4 }
 0x58e   : > { %v1255_v27 = vsel %vm4570_vm3, %v1253_v34, %v1254_v36 }
 0x58f   : > { %v1247_v26 = vsel %vm4584_vm15, %v1245_v30, %v1246_v38  ;;  %1257 = vst [vmem:[#allocation4 + $0x24] sm:$0xf] %v1255_v27  ;;  %v1270_v42 = vpop.permute.xlu1 %1269  ;;  %vm4591_vm15 = vcmask 457728  }
 0x590   : > { %1249 = vst [vmem:[#allocation4 + $0x20] sm:$0xf] %v1247_v26  ;;  %v1261_v43 = vpop.permute.xlu0 %1260  ;;  %v1271_v11 = vrot.slane %v1270_v42, 4 }
 0x591   : > { %v1262_v25 = vrot.slane %v1261_v43, 4 }
 0x592   : > { %v1273_v13 = vsel %vm4569_vm10, %v1270_v42, %v1271_v11 }
 0x593   : > { %v1264_v44 = vsel %vm4562_vm0, %v1261_v43, %v1262_v25  ;;  %v1299_v47 = vld [vmem:[#allocation4 + $0x30] sm:$0xff]  ;;  %1275 = vst [vmem:[#allocation4 + $0x2c] sm:$0xf] %v1273_v13  ;;  %v1221_v48 = vpop.permute.xlu1 %1220  ;;  %vm4602_vm0 = vcmask 867328  }
 0x594   : > { %1266 = vst [vmem:[#allocation4 + $0x28] sm:$0xf] %v1264_v44  ;;  %v1213_v50 = vpop.permute.xlu0 %1212  ;;  %v3157_v51 = vcombine.high %v1299_v47, %v1299_v47  ;;  %v3156_v52 = vcombine.low %v1299_v47, %v1299_v47  ;;  %v1222_v56 = vrot.slane %v1221_v48, 4 }
 0x595   : > { %v1214_v58 = vrot.slane %v1213_v50, 4 }
 0x596   : > { %3158 = vmatprep.subr.msk.bf16.mxu1 %vm4585_vm8, %v3157_v51  ;;  %v1340_v59 = vsel %vm4586_vm4, %v3156_v52, 0  ;;  %v1223_v55 = vsel %vm4587_vm5, %v1221_v48, %v1222_v56  ;;  %vm4592_vm8 = vcmask 867328   ;;  %vm4561_vm4 = vcmask 449536  }
 0x597   : > { %v1215_v63 = vsel %vm4588_vm6, %v1213_v50, %v1214_v58  ;;  %1354 = vmatpush1.bf16.msra.mxu1 %v1340_v59  ;;  %1225 = vst [vmem:[#allocation4 + $0x14] sm:$0xf] %v1223_v55  ;;  %v1237_v0 = vpop.permute.xlu1 %1236  ;;  %vm4544_vm5 = vcmask 859136   ;;  %vm4593_vm6 = vmmov %vm4591_vm15 }
 0x598   : > { %1217 = vst [vmem:[#allocation4 + $0x10] sm:$0xf] %v1215_v63  ;;  %v1229_v54 = vpop.permute.xlu0 %1228  ;;  %v1238_v17 = vrot.slane %v1237_v0, 4 }
 0x599   : > { %v1230_v24 = vrot.slane %v1229_v54, 4 }
 0x59a   : > { %v1239_v19 = vsel %vm4589_vm7, %v1237_v0, %v1238_v17  ;;  %v3371_v9 = vld [vmem:[#allocation4 + $0x24] ss:$8 sps:$4 sm:$0xff]   ;;  %vm841_vm7 = vcmask 801792  }
 0x59b   : > { %v1231_v61 = vsel %vm4590_vm9, %v1229_v54, %v1230_v24  ;;  %v3373_v62 = vld [vmem:[#allocation4 + $0x20] ss:$8 sps:$4 sm:$0xff]   ;;  %1241 = vst [vmem:[#allocation4 + $0x1c] sm:$0xf] %v1239_v19  ;;  %v1187_v57 = vpop.permute.xlu1 %1186  ;;  %1355 = vmatprep.subr.bf16.mxu1 %v3371_v9  ;;  %vm850_vm9 = vcmask 392192  }
 0x59c   : > { %1233 = vst [vmem:[#allocation4 + $0x18] sm:$0xf] %v1231_v61  ;;  %v1179_v8 = vpop.permute.xlu0 %1178  ;;  %v1188_v32 = vrot.slane %v1187_v57, 4  ;;  %1356 = vmatpush1.bf16.msra.mxu1 %v3373_v62 }
 0x59d   : > { %v1180_v3 = vrot.slane %v1179_v8, 4 }
 0x59e   : > { %v1189_v45 = vsel %vm4591_vm15, %v1187_v57, %v1188_v32  ;;  %vm4542_vm15 = vcmask 883712  }
 0x59f   : > { %v1181_v49 = vsel %vm4592_vm8, %v1179_v8, %v1180_v3  ;;  %1191 = vst [vmem:[#allocation4 + $0x4] sm:$0xf] %v1189_v45  ;;  %v1204_v10 = vpop.permute.xlu1 %1203  ;;  %vm4543_vm8 = vcmask 474112  }
 0x5a0   : > { %1183 = vst [vmem:[#allocation4] sm:$0xf] %v1181_v49  ;;  %v1195_v12 = vpop.permute.xlu0 %1194  ;;  %v1205_v14 = vrot.slane %v1204_v10, 4 }
 0x5a1   : > { %v1196_v6 = vrot.slane %v1195_v12, 4 }
 0x5a2   : > { %v1207_v18 = vsel %vm4561_vm4, %v1204_v10, %v1205_v14  ;;  %v3374_v21 = vld [vmem:[#allocation4 + $0x14] ss:$8 sps:$4 sm:$0xff]   ;;  %v3131_v10 = vld [vmem:[%s4528_s2 + $0x8] sm:$0xf]  ;;  %v3186_v14 = vld [vmem:[%s4526_s0 + $0x10] sm:$0xff]  ;;  %vm4601_vm4 = vcmask 457728  }
 0x5a3   : > { %v1198_v20 = vsel %vm4544_vm5, %v1195_v12, %v1196_v6  ;;  %v3376_v23 = vld [vmem:[#allocation4 + $0x10] ss:$8 sps:$4 sm:$0xff]   ;;  %1209 = vst [vmem:[#allocation4 + $0xc] sm:$0xf] %v1207_v18  ;;  %1357 = vmatprep.subr.bf16.mxu1 %v3374_v21 }
 0x5a4   : > { %1200 = vst [vmem:[#allocation4 + $0x8] sm:$0xf] %v1198_v20  ;;  %1358 = vmatpush1.bf16.msra.mxu1 %v3376_v23  ;;  %v3187_v12 = vld [vmem:[%s4527_s1 + $0x10] sm:$0xff] }
 0x5aa   : > { %v3377_v28 = vld [vmem:[#allocation4 + $0x4] ss:$8 sps:$4 sm:$0xff]  }
 0x5ab   : > { %v3379_v40 = vld [vmem:[#allocation4] ss:$8 sps:$4 sm:$0xff]   ;;  %1359 = vmatprep.subr.bf16.mxu1 %v3377_v28 }
 0x5ac   : > { %1360 = vmatpush1.bf16.msra.mxu1 %v3379_v40 }
 0x5af   : > { %3159 = vmatmul.mubr.msk.bf16.vlgmr.msra.gmra.mxu1 %vm4593_vm6, %v1292_v7  ;;  %vm4594_vm6 = vcmask 842752  }
 0x5b0   : > { %1845 = vmatprep.mubr.bf16.mxu1 %v3490_v1 }
 0x66f   : > { %v1379_v34 = vpop.f32.mrf.mxu1 }
 0x670   : > { %v4004_v30 = vadd.f32 %v1379_v34, %v3932_v22 }
 0x671   : > { %v1381_v36 = vpop.f32.mrf.mxu1 }
 0x672   : > { %v3258_v38 = vpack.c.bf16 %v4004_v30, %v4004_v30  ;;  %v4009_v27 = vadd.f32 %v1381_v36, %v3940_v53 }
 0x673   : > { %v1383_v26 = vpop.f32.mrf.mxu1 }
 0x674   : > { %v3259_v42 = vpack.c.bf16 %v4009_v27, %v4009_v27  ;;  %1391 = vrot.lane.b32.xlu0 %v3258_v38, %s3497_s7 }
 0x675   : > { %v1384_v43 = vpop.f32.mrf.mxu1 }
 0x676   : > { %1400 = vrot.lane.b32.xlu1 %v3259_v42, %s3498_s8 }
 0x678   : > { %838 = vrot.lane.b32.xlu0 %v3958_v2, %s3513_s25 }
 0x67a   : > { %847 = vrot.lane.b32.xlu1 %v3961_v16, %s3514_s26 }
 0x67c   : > { %804 = vrot.lane.b32.xlu0 %v3958_v2, %s4547_s27  ;;  %s3525_s27 = smov 49  }
 0x67e   : > { %813 = vrot.lane.b32.xlu1 %v3961_v16, %s4549_s28  ;;  %s3526_s28 = smov 99  }
 0x680   : > { %822 = vrot.lane.b32.xlu0 %v3958_v2, %s3504_s14 }
 0x682   : > { %830 = vrot.lane.b32.xlu1 %v3961_v16, %s3503_s13 }
 0x6e6   : > { %v1392_v22 = vpop.permute.xlu0 %1391 }
 0x6e7   : > { %v1393_v53 = vrot.slane %v1392_v22, 4 }
 0x6e8   : > { %v1401_v11 = vpop.permute.xlu1 %1400 }
 0x6e9   : > { %v1394_v25 = vsel %vm495_vm13, %v1393_v53, %v1392_v22  ;;  %v1402_v13 = vrot.slane %v1401_v11, 4 }
 0x6ea   : > { %1396 = vst.msk [vmem:[#allocation2] sm:$0xff] %vm3710_vm14, %v1394_v25  ;;  %v839_v44 = vpop.permute.xlu0 %838 }
 0x6eb   : > { %v1403_v47 = vsel %vm508_vm1, %v1402_v13, %v1401_v11  ;;  %v840_v48 = vrot.slane %v839_v44, 4 }
 0x6ec   : > { %1405 = vst.msk [vmem:[#allocation2 + $0x4] sm:$0xff] %vm3717_vm2, %v1403_v47  ;;  %v848_v2 = vpop.permute.xlu1 %847 }
 0x6ed   : > { %v842_v16 = vsel %vm841_vm7, %v839_v44, %v840_v48  ;;  %v849_v50 = vrot.slane %v848_v2, 4 }
 0x6ee   : > { %844 = vst [vmem:[#allocation3 + $0x10] sm:$0xf] %v842_v16  ;;  %v805_v51 = vpop.permute.xlu0 %804 }
 0x6ef   : > { %v851_v52 = vsel %vm850_vm9, %v848_v2, %v849_v50  ;;  %v806_v56 = vrot.slane %v805_v51, 4 }
 0x6f0   : > { %853 = vst [vmem:[#allocation3 + $0x14] sm:$0xf] %v851_v52  ;;  %v814_v58 = vpop.permute.xlu1 %813 }
 0x6f1   : > { %v808_v59 = vsel %vm4542_vm15, %v805_v51, %v806_v56  ;;  %v815_v55 = vrot.slane %v814_v58, 4  ;;  %vm4595_vm15 = vcmask 433152  }
 0x6f2   : > { %810 = vst [vmem:[#allocation3] sm:$0xf] %v808_v59  ;;  %v823_v63 = vpop.permute.xlu0 %822 }
 0x6f3   : > { %v817_v0 = vsel %vm4543_vm8, %v814_v58, %v815_v55  ;;  %v824_v54 = vrot.slane %v823_v63, 4  ;;  %v1517_v17 = vld [vmem:[#allocation2 + $0x4] sm:$0xff]  ;;  %vm4596_vm8 = vcmask 1043456  }
 0x6f4   : > { %v1508_v24 = vld [vmem:[#allocation2] sm:$0xff]  ;;  %819 = vst [vmem:[#allocation3 + $0x4] sm:$0xf] %v817_v0  ;;  %v831_v19 = vpop.permute.xlu1 %830  ;;  %1519 = vrot.lane.b32.xlu1 %v1517_v17, %s4546_s23  ;;  %vm4597_vm5 = vmmov %vm4596_vm8  ;;  %s4551_s23 = smov 97  }
 0x6f5   : > { %1510 = vrot.lane.b32.xlu0 %v1508_v24, %s4545_s24  ;;  %v825_v61 = vsel %vm4594_vm6, %v823_v63, %v824_v54  ;;  %v832_v9 = vrot.slane %v831_v19, 4  ;;  %s4552_s24 = smov 47   ;;  %vm4564_vm6 = vcmask 384000  }
 0x6f6   : > { %827 = vst [vmem:[#allocation3 + $0x8] sm:$0xf] %v825_v61 }
 0x6f7   : > { %v833_v62 = vsel %vm4595_vm15, %v831_v19, %v832_v9  ;;  %v858_v57 = vld [vmem:[#allocation3 + $0x10] sm:$0xff]  ;;  %vm4560_vm15 = vcmask 359424  }
 0x6f8   : > { %835 = vst [vmem:[#allocation3 + $0xc] sm:$0xf] %v833_v62  ;;  %1484 = vrot.lane.b32.xlu1 %v1517_v17, %s3505_s17  ;;  %v3135_v8 = vcombine.high %v858_v57, %v858_v57  ;;  %v3134_v32 = vcombine.low %v858_v57, %v858_v57 }
 0x6f9   : > { %1476 = vrot.lane.b32.xlu0 %v1508_v24, %s3506_s18 }
 0x6fa   : > { %3136 = vmatprep.subr.msk.bf16.mxu0 %vm4596_vm8, %v3135_v8  ;;  %v878_v3 = vsel %vm4597_vm5, %v3134_v32, 0  ;;  %vm4598_vm5 = vcmask 195584   ;;  %vm4559_vm8 = vcmask 769024  }
 0x6fb   : > { %896 = vmatpush1.bf16.msra.mxu0 %v878_v3 }
 0x6fc   : > { %1501 = vrot.lane.b32.xlu1 %v1517_v17, %s4552_s24  ;;  %s3522_s24 = smov 112  }
 0x6fd   : > { %1492 = vrot.lane.b32.xlu0 %v1508_v24, %s4551_s23  ;;  %v3384_v49 = vld [vmem:[#allocation3] ss:$8 sps:$4 sm:$0xff]   ;;  %s3521_s23 = smov 62  }
 0x6ff   : > { %v3382_v45 = vld [vmem:[#allocation3 + $0x4] ss:$8 sps:$4 sm:$0xff]  }
 0x700   : > { %1452 = vrot.lane.b32.xlu1 %v1517_v17, %s4557_s19  ;;  %897 = vmatprep.subr.bf16.mxu0 %v3382_v45  ;;  %s4606_s19 = smov 56  }
 0x701   : > { %1444 = vrot.lane.b32.xlu0 %v1508_v24, %s4555_s20  ;;  %898 = vmatpush1.bf16.msra.mxu0 %v3384_v49  ;;  %s4607_s20 = smov 106  }
 0x704   : > { %1468 = vrot.lane.b32.xlu1 %v1517_v17, %s3503_s13  ;;  %3137 = vmatmul.mubr.msk.bf16.vlgmr.msra.gmra.mxu0 %vm4598_vm5, %v3131_v10  ;;  %vm4563_vm5 = vcmask 793600  }
 0x705   : > { %1460 = vrot.lane.b32.xlu0 %v1508_v24, %s3504_s14  ;;  %1611 = vmatprep.mubr.bf16.mxu0 %v3490_v1 }
 0x708   : > { %1417 = vrot.lane.b32.xlu1 %v1517_v17, %s3521_s23 }
 0x709   : > { %1408 = vrot.lane.b32.xlu0 %v1508_v24, %s3522_s24 }
 0x70c   : > { %1435 = vrot.lane.b32.xlu1 %v1517_v17, %s3523_s16 }
 0x70d   : > { %1426 = vrot.lane.b32.xlu0 %v1508_v24, %s3524_s15 }
 0x710   : > { %2079 = vperm.xlu1 %3358, %v3187_v12  }
 0x711   : > { %1862 = vperm.xlu0 %3357, %v3186_v14  }
 0x766   : > { %v1520_v6 = vpop.permute.xlu1 %1519 }
 0x767   : > { %v1511_v18 = vpop.permute.xlu0 %1510  ;;  %v1521_v20 = vrot.slane %v1520_v6, 4 }
 0x768   : > { %v1512_v21 = vrot.slane %v1511_v18, 4 }
 0x769   : > { %v1523_v23 = vsel %vm4560_vm15, %v1520_v6, %v1521_v20 }
 0x76a   : > { %v1514_v28 = vsel %vm4559_vm8, %v1511_v18, %v1512_v21  ;;  %1525 = vst [vmem:[#allocation4 + $0x34] sm:$0xf] %v1523_v23  ;;  %v1485_v40 = vpop.permute.xlu1 %1484  ;;  %vm4599_vm8 = vcmask 1043456   ;;  %v3162_v21 = vld [vmem:[%s4529_s3 + $0x4] sm:$0xf] }
 0x76b   : > { %1516 = vst [vmem:[#allocation4 + $0x30] sm:$0xf] %v1514_v28  ;;  %v1477_v7 = vpop.permute.xlu0 %1476  ;;  %v1486_v34 = vrot.slane %v1485_v40, 4  ;;  %vm4600_vm15 = vmmov %vm4599_vm8 }
 0x76c   : > { %v1478_v36 = vrot.slane %v1477_v7, 4 }
 0x76d   : > { %v1487_v38 = vsel %vm708_vm11, %v1485_v40, %v1486_v34 }
 0x76e   : > { %v1479_v26 = vsel %vm4571_vm12, %v1477_v7, %v1478_v36  ;;  %1489 = vst [vmem:[#allocation4 + $0x24] sm:$0xf] %v1487_v38  ;;  %v1502_v42 = vpop.permute.xlu1 %1501 }
 0x76f   : > { %1481 = vst [vmem:[#allocation4 + $0x20] sm:$0xf] %v1479_v26  ;;  %v1493_v43 = vpop.permute.xlu0 %1492  ;;  %v1503_v22 = vrot.slane %v1502_v42, 4 }
 0x770   : > { %v1494_v53 = vrot.slane %v1493_v43, 4 }
 0x771   : > { %v1505_v11 = vsel %vm4564_vm6, %v1502_v42, %v1503_v22  ;;  %vm4604_vm6 = vcmask 842752  }
 0x772   : > { %v1496_v25 = vsel %vm4563_vm5, %v1493_v43, %v1494_v53  ;;  %v1534_v13 = vld [vmem:[#allocation4 + $0x30] sm:$0xff]  ;;  %1507 = vst [vmem:[#allocation4 + $0x2c] sm:$0xf] %v1505_v11  ;;  %v1453_v44 = vpop.permute.xlu1 %1452  ;;  %vm4603_vm5 = vcmask 433152  }
 0x773   : > { %1498 = vst [vmem:[#allocation4 + $0x28] sm:$0xf] %v1496_v25  ;;  %v1445_v47 = vpop.permute.xlu0 %1444  ;;  %v3170_v48 = vcombine.high %v1534_v13, %v1534_v13  ;;  %v3169_v2 = vcombine.low %v1534_v13, %v1534_v13  ;;  %v1454_v16 = vrot.slane %v1453_v44, 4 }
 0x774   : > { %v1446_v50 = vrot.slane %v1445_v47, 4 }
 0x775   : > { %3171 = vmatprep.subr.msk.bf16.mxu0 %vm4599_vm8, %v3170_v48  ;;  %v1574_v51 = vsel %vm4600_vm15, %v3169_v2, 0  ;;  %v1455_v52 = vsel %vm4601_vm4, %v1453_v44, %v1454_v16  ;;  %vm4568_vm15 = vcmask 506880   ;;  %vm4567_vm4 = vcmask 916480  }
 0x776   : > { %v1447_v56 = vsel %vm4602_vm0, %v1445_v47, %v1446_v50  ;;  %1588 = vmatpush1.bf16.msra.mxu0 %v1574_v51  ;;  %1457 = vst [vmem:[#allocation4 + $0x14] sm:$0xf] %v1455_v52  ;;  %v1469_v58 = vpop.permute.xlu1 %1468  ;;  %vm4566_vm0 = vcmask 482304   ;;  %vm4565_vm8 = vcmask 891904  }
 0x777   : > { %1449 = vst [vmem:[#allocation4 + $0x10] sm:$0xf] %v1447_v56  ;;  %v1461_v59 = vpop.permute.xlu0 %1460  ;;  %v1470_v55 = vrot.slane %v1469_v58, 4 }
 0x778   : > { %v1462_v63 = vrot.slane %v1461_v59, 4 }
 0x779   : > { %v1471_v0 = vsel %vm4603_vm5, %v1469_v58, %v1470_v55  ;;  %v3387_v17 = vld [vmem:[#allocation4 + $0x24] ss:$8 sps:$4 sm:$0xff]  }
 0x77a   : > { %v1463_v54 = vsel %vm4604_vm6, %v1461_v59, %v1462_v63  ;;  %v3389_v24 = vld [vmem:[#allocation4 + $0x20] ss:$8 sps:$4 sm:$0xff]   ;;  %1473 = vst [vmem:[#allocation4 + $0x1c] sm:$0xf] %v1471_v0  ;;  %v1418_v19 = vpop.permute.xlu1 %1417  ;;  %1589 = vmatprep.subr.bf16.mxu0 %v3387_v17  ;;  %vm4605_vm6 = vcmask 457728  }
 0x77b   : > { %1465 = vst [vmem:[#allocation4 + $0x18] sm:$0xf] %v1463_v54  ;;  %v1409_v61 = vpop.permute.xlu0 %1408  ;;  %v1419_v9 = vrot.slane %v1418_v19, 4  ;;  %1590 = vmatpush1.bf16.msra.mxu0 %v3389_v24 }
 0x77c   : > { %v1410_v62 = vrot.slane %v1409_v61, 4 }
 0x77d   : > { %v1421_v57 = vsel %vm4568_vm15, %v1418_v19, %v1419_v9 }
 0x77e   : > { %v1412_v8 = vsel %vm4567_vm4, %v1409_v61, %v1410_v62  ;;  %1423 = vst [vmem:[#allocation4 + $0x4] sm:$0xf] %v1421_v57  ;;  %v1436_v32 = vpop.permute.xlu1 %1435 }
 0x77f   : > { %1414 = vst [vmem:[#allocation4] sm:$0xf] %v1412_v8  ;;  %v1427_v3 = vpop.permute.xlu0 %1426  ;;  %v1437_v45 = vrot.slane %v1436_v32, 4 }
 0x780   : > { %v1428_v49 = vrot.slane %v1427_v3, 4 }
 0x781   : > { %v1439_v10 = vsel %vm4566_vm0, %v1436_v32, %v1437_v45  ;;  %v3390_v14 = vld [vmem:[#allocation4 + $0x14] ss:$8 sps:$4 sm:$0xff]  }
 0x782   : > { %v1430_v12 = vsel %vm4565_vm8, %v1427_v3, %v1428_v49  ;;  %v3392_v6 = vld [vmem:[#allocation4 + $0x10] ss:$8 sps:$4 sm:$0xff]   ;;  %1441 = vst [vmem:[#allocation4 + $0xc] sm:$0xf] %v1439_v10  ;;  %1591 = vmatprep.subr.bf16.mxu0 %v3390_v14 }
 0x783   : > { %1432 = vst [vmem:[#allocation4 + $0x8] sm:$0xf] %v1430_v12  ;;  %1592 = vmatpush1.bf16.msra.mxu0 %v3392_v6 }
 0x789   : > { %v3393_v18 = vld [vmem:[#allocation4 + $0x4] ss:$8 sps:$4 sm:$0xff]  }
 0x78a   : > { %v3395_v20 = vld [vmem:[#allocation4] ss:$8 sps:$4 sm:$0xff]   ;;  %1593 = vmatprep.subr.bf16.mxu0 %v3393_v18 }
 0x78b   : > { %1594 = vmatpush1.bf16.msra.mxu0 %v3395_v20 }
 0x78c   : > { %v1863_v23 = vpop.permute.xlu0 %1862 }
 0x78d   : > { %v4088_v28 = vmul.f32 %v1863_v23, %v3607_v4  ;;  %v4091_v40 = vmul.f32 %v1863_v23, %v3609_v5 }
 0x78e   : > { %3172 = vmatmul.mubr.msk.bf16.vlgmr.msra.gmra.mxu0 %vm4605_vm6, %v3162_v21 }
 0x78f   : > { %2395 = vmatprep.mubr.bf16.mxu0 %v3490_v1  ;;  %v1870_v7 = vand.u32 2139095040, %v4088_v28  ;;  %v1974_v34 = vand.u32 2139095040, %v4091_v40  ;;  %v1867_v47 = vand.u32 2147483647, %v4088_v28  ;;  %v1971_v51 = vand.u32 2147483647, %v4091_v40 }
 0x791   : > { %v1871_v36 = vshrl.u32 %v1870_v7, 23  ;;  %v1975_v38 = vshrl.u32 %v1974_v34, 23  ;;  %v1874_v52 = vand.u32 8388607, %v1867_v47  ;;  %v1978_v7 = vand.u32 8388607, %v1971_v51 }
 0x793   : > { %v3188_v26 = vadd.s32 4294967169, %v1871_v36  ;;  %v3192_v42 = vadd.s32 4294967169, %v1975_v38 }
 0x795   : > { %v1877_v43 = vadd.s32 1, %v3188_v26  ;;  %v1981_v22 = vadd.s32 1, %v3192_v42  ;;  %v1875_v26 = vor.u32 8388608, %v1874_v52 }
 0x797   : > { %vm1878_vm5 = vcmp.gt.s32.totalorder %v1877_v43, 0  ;;  %vm1982_vm6 = vcmp.gt.s32.totalorder %v1981_v22, 0 }
 0x798   : > { %v1879_v53 = vsel %vm1878_vm5, %v1877_v43, 0  ;;  %v1983_v11 = vsel %vm1982_vm6, %v1981_v22, 0 }
 0x799   : > { %v1881_v25 = vand.u32 31, %v1879_v53  ;;  %v1985_v13 = vand.u32 31, %v1983_v11  ;;  %v4100_v2 = vshrl.u32 %v1879_v53, 5  ;;  %v4111_v59 = vshrl.u32 %v1983_v11, 5 }
 0x79b   : > { %v4095_v44 = vsub.s32 32, %v1881_v25  ;;  %v4098_v48 = vsub.s32 32, %v1985_v13  ;;  %v1893_v56 = vshll.u32 %v3494_v37, %v1881_v25  ;;  %v1896_v58 = vshll.u32 %v3495_v39, %v1881_v25 }
 0x79c   : > { %v1884_v17 = vshll.u32 %v3491_v29, %v1881_v25  ;;  %v1887_v24 = vshll.u32 %v3492_v33, %v1881_v25  ;;  %v1890_v19 = vshll.u32 %v3493_v35, %v1881_v25  ;;  %vm1902_vm5 = vcmp.lt.s32.totalorder %v4100_v2, 4 }
 0x79d   : > { %v1894_v16 = vshrl.u32 %v3495_v39, %v4095_v44  ;;  %v1897_v50 = vshrl.u32 %v3496_v46, %v4095_v44  ;;  %v1885_v55 = vshrl.u32 %v3492_v33, %v4095_v44  ;;  %v1888_v63 = vshrl.u32 %v3493_v35, %v4095_v44 }
 0x79e   : > { %v1891_v0 = vshrl.u32 %v3494_v37, %v4095_v44  ;;  %v1998_v54 = vshrl.u32 %v3495_v39, %v4098_v48  ;;  %v2001_v61 = vshrl.u32 %v3496_v46, %v4098_v48  ;;  %v1997_v57 = vshll.u32 %v3494_v37, %v1985_v13 }
 0x79f   : > { %v1895_v9 = vor.u32 %v1894_v16, %v1893_v56  ;;  %v1898_v62 = vor.u32 %v1897_v50, %v1896_v58  ;;  %v1989_v8 = vshrl.u32 %v3492_v33, %v4098_v48  ;;  %v1992_v32 = vshrl.u32 %v3493_v35, %v4098_v48 }
 0x7a0   : > { %v1995_v3 = vshrl.u32 %v3494_v37, %v4098_v48  ;;  %v2000_v45 = vshll.u32 %v3495_v39, %v1985_v13  ;;  %v1886_v46 = vor.u32 %v1885_v55, %v1884_v17  ;;  %v1889_v10 = vor.u32 %v1888_v63, %v1887_v24 }
 0x7a1   : > { %v1892_v12 = vor.u32 %v1891_v0, %v1890_v19  ;;  %v1999_v14 = vor.u32 %v1998_v54, %v1997_v57  ;;  %v1988_v6 = vshll.u32 %v3491_v29, %v1985_v13  ;;  %v1991_v18 = vshll.u32 %v3492_v33, %v1985_v13 }
 0x7a2   : > { %v1994_v20 = vshll.u32 %v3493_v35, %v1985_v13  ;;  %v2002_v21 = vor.u32 %v2001_v61, %v2000_v45  ;;  %v1908_v37 = vsel %vm1902_vm5, %v1895_v9, 920167782  ;;  %v1912_v39 = vsel %vm1902_vm5, %v1898_v62, 1326507024 }
 0x7a3   : > { %v1990_v34 = vor.u32 %v1989_v8, %v1988_v6  ;;  %v1993_v36 = vor.u32 %v1992_v32, %v1991_v18  ;;  %vm2006_vm6 = vcmp.lt.s32.totalorder %v4111_v59, 4  ;;  %vm1899_vm8 = vcmp.lt.s32.totalorder %v4100_v2, 1 }
 0x7a4   : > { %v1996_v38 = vor.u32 %v1995_v3, %v1994_v20  ;;  %vm1901_vm0 = vcmp.lt.s32.totalorder %v4100_v2, 3  ;;  %v2012_v35 = vsel %vm2006_vm6, %v1999_v14, 920167782  ;;  %v1907_v42 = vsel %vm1899_vm8, %v1886_v46, %v1889_v10 }
 0x7a5   : > { %v1909_v43 = vsel %vm1901_vm0, %v1892_v12, %v1908_v37  ;;  %v2016_v22 = vsel %vm2006_vm6, %v2002_v21, 1326507024  ;;  %v1911_v11 = vsel %vm1899_vm8, %v1889_v10, %v1892_v12  ;;  %v1913_v25 = vsel %vm1901_vm0, %v1895_v9, %v1912_v39 }
 0x7a6   : > { %vm2003_vm4 = vcmp.lt.s32.totalorder %v4111_v59, 1  ;;  %vm2005_vm15 = vcmp.lt.s32.totalorder %v4111_v59, 3  ;;  %vm1900_vm10 = vcmp.lt.s32.totalorder %v4100_v2, 2  ;;  %v1979_v13 = vor.u32 8388608, %v1978_v7 }
 0x7a7   : > { %v2011_v16 = vsel %vm2003_vm4, %v1990_v34, %v1993_v36  ;;  %v2013_v50 = vsel %vm2005_vm15, %v1996_v38, %v2012_v35  ;;  %v1910_v52 = vsel %vm1900_vm10, %v1907_v42, %v1909_v43  ;;  %v2015_v56 = vsel %vm2003_vm4, %v1993_v36, %v1996_v38 }
 0x7a8   : > { %v2017_v58 = vsel %vm2005_vm15, %v1999_v14, %v2016_v22  ;;  %v1914_v55 = vsel %vm1900_vm10, %v1911_v11, %v1913_v25  ;;  %v1915_v63 = vshll.u32 %v1875_v26, 8  ;;  %vm2004_vm3 = vcmp.lt.s32.totalorder %v4111_v59, 2 }
 0x7a9   : > { %v2014_v0 = vsel %vm2004_vm3, %v2011_v16, %v2013_v50  ;;  %v2018_v24 = vsel %vm2004_vm3, %v2015_v56, %v2017_v58  ;;  %v2019_v19 = vshll.u32 %v1979_v13, 8  ;;  %v1904_v3 = vsel %vm1902_vm5, %v1892_v12, 2102212464 }
 0x7aa   : > { %v4181_v54 = vmul.u32.u64.low %v1915_v63, %v1910_v52  ;;  %v4182_v17 = vmul.u32.u64.high %v1915_v63, %v1910_v52, %v4181_v54  ;;  %v4186_v61 = vmul.u32.u64.low %v1915_v63, %v1914_v55  ;;  %v4187_v9 = vmul.u32.u64.high %v1915_v63, %v1914_v55, %v4186_v61 }
 0x7ab   : > { %v4189_v62 = vmul.u32.u64.low %v2019_v19, %v2014_v0  ;;  %v4190_v57 = vmul.u32.u64.high %v2019_v19, %v2014_v0, %v4189_v62  ;;  %v4192_v8 = vmul.u32.u64.low %v2019_v19, %v2018_v24  ;;  %v4193_v32 = vmul.u32.u64.high %v2019_v19, %v2018_v24, %v4192_v8 }
 0x7ac   : > { %v1883_v45 = vshrl.u32 %v3491_v29, %v4095_v44  ;;  %v2008_v14 = vsel %vm2006_vm6, %v1996_v38, 2102212464  ;;  %v1905_v18 = vsel %vm1901_vm0, %v1889_v10, %v1904_v3  ;;  %v1987_v20 = vshrl.u32 %v3491_v29, %v4098_v48 }
 0x7ad   : > { %v1925_v21 = vadd.s32 1, %v4182_v17  ;;  %vm1924_vm12 = vc.u32 %v4187_v9, %v4181_v54  ;;  %v2009_v44 = vsel %vm2005_vm15, %v1993_v36, %v2008_v14  ;;  %vm2028_vm0 = vc.u32 %v4193_v32, %v4189_v62 }
 0x7ae   : > { %v1903_v6 = vsel %vm1899_vm8, %v1883_v45, %v1886_v46  ;;  %v2007_v12 = vsel %vm2003_vm4, %v1987_v20, %v1990_v34  ;;  %v2029_v46 = vadd.s32 1, %v4190_v57  ;;  %v2027_v3 = vadd.s32 %v4189_v62, %v4193_v32 }
 0x7af   : > { %v1906_v37 = vsel %vm1900_vm10, %v1903_v6, %v1905_v18  ;;  %v1926_v10 = vsel %vm1924_vm12, %v1925_v21, %v4182_v17  ;;  %v2010_v29 = vsel %vm2004_vm3, %v2007_v12, %v2009_v44  ;;  %vm1869_vm10 = vcmp.lt.s32.totalorder %v4088_v28, 0 }
 0x7b0   : > { %v1922_v48 = vmul.u32 %v1915_v63, %v1906_v37  ;;  %v2030_v39 = vsel %vm2028_vm0, %v2029_v46, %v4190_v57  ;;  %v2026_v34 = vmul.u32 %v2019_v19, %v2010_v29  ;;  %v1923_v19 = vadd.s32 %v4181_v54, %v4187_v9 }
 0x7b1   : > { %vm1973_vm15 = vcmp.lt.s32.totalorder %v4091_v40, 0  ;;  %vm1868_vm4 = vcmp.le.f32.partialorder %v1867_v47, 0.7853982  ;;  %vm1972_vm8 = vcmp.le.f32.partialorder %v1971_v51, 0.7853982 }
 0x7b2   : > { %v1927_v7 = vadd.s32 %v1926_v10, %v1922_v48  ;;  %v2031_v38 = vadd.s32 %v2030_v39, %v2026_v34 }
 0x7b4   : > { %v2032_v36 = vadd.s32 536870912, %v2031_v38 }
 0x7b6   : > { %v2033_v2 = vshrl.u32 %v2032_v36, 30 }
 0x7b8   : > { %v2034_v42 = vshll.u32 %v2033_v2, 30 }
 0x7ba   : > { %v2035_v22 = vsub.s32 %v2031_v38, %v2034_v42 }
 0x7bc   : > { %v2037_v11 = vsub.s32 0, %v2035_v22 }
 0x7be   : > { %v3193_v13 = vmin.u32 %v2037_v11, %v2035_v22 }
 0x7c0   : > { %v2039_v16 = vclz %v3193_v13 }
 0x7c2   : > { %v3194_v52 = vadd.s32 4294967294, %v2039_v16 }
 0x7c4   : > { %v4135_v49 = vpop.f32.mrf.mxu0  ;;  %vm3195_vm12 = vcmp.lt.s32.totalorder %v3194_v52, 0 }
 0x7c5   : > { %v2042_v58 = vsel %vm3195_vm12, 0, %v3194_v52 }
 0x7c6   : > { %v4140_v23 = vpop.f32.mrf.mxu0  ;;  %v2047_v63 = vsub.s32 4294967266, %v2042_v58  ;;  %v2043_v57 = vsub.s32 32, %v2042_v58  ;;  %v2044_v21 = vshll.u32 %v2035_v22, %v2042_v58 }
 0x7c8   : > { %v921_v33 = vpop.f32.mrf.mxu0  ;;  %v2048_v24 = vadd.s32 127, %v2047_v63  ;;  %v2045_v18 = vshrl.u32 %v2027_v3, %v2043_v57  ;;  %v2080_v57 = vpop.permute.xlu1 %2079 }
 0x7c9   : > { %v1928_v33 = vadd.s32 536870912, %v1927_v7 }
 0x7ca   : > { %v922_v53 = vpop.f32.mrf.mxu0  ;;  %v2049_v45 = vshll.u32 %v2048_v24, 23  ;;  %v2046_v37 = vor.u32 %v2045_v18, %v2044_v21 }
 0x7cb   : > { %v1929_v35 = vshrl.u32 %v1928_v33, 30  ;;  %v2057_v33 = vsub.s32 4, %v2033_v2 }
 0x7cc   : > { %v2050_v12 = vor.u32 4788187, %v2049_v45  ;;  %v2053_v48 = vcvt.s32.f32 %v2046_v37 }
 0x7cd   : > { %v1930_v26 = vshll.u32 %v1929_v35, 30  ;;  %v1953_v38 = vsub.s32 4, %v1929_v35 }
 0x7ce   : > { %v2051_v10 = vand.u32 2147483647, %v2050_v12 }
 0x7cf   : > { %v1931_v43 = vsub.s32 %v1927_v7, %v1930_v26  ;;  %v1954_v36 = vsel %vm1869_vm10, %v1953_v38, %v1929_v35  ;;  %v2058_v26 = vsel %vm1973_vm15, %v2057_v33, %v2033_v2 }
 0x7d0   : > { %v2054_v39 = vmul.f32 %v2053_v48, %v2051_v10  ;;  %v1956_v42 = vsel %vm1868_vm4, 0, %v1954_v36 }
 0x7d1   : > { %v1933_v53 = vsub.s32 0, %v1931_v43  ;;  %v1960_v22 = vadd.s32 3, %v1956_v42 }
 0x7d2   : > { %v2055_v9 = vxor.u32 2147483648, %v2054_v39 }
 0x7d3   : > { %v3189_v25 = vmin.u32 %v1933_v53, %v1931_v43 }
 0x7d4   : > { %v2056_v62 = vsel %vm1973_vm15, %v2055_v9, %v2054_v39  ;;  %vm1959_vm15 = vweird.f32 %v4088_v28 }
 0x7d5   : > { %v1935_v59 = vclz %v3189_v25  ;;  %v2059_v34 = vsel %vm1972_vm8, %v4091_v40, %v2056_v62 }
 0x7d7   : > { %v3190_v50 = vadd.s32 4294967294, %v1935_v59  ;;  %v1961_v59 = vand.u32 3, %v1960_v22 }
 0x7d9   : > { %vm3191_vm3 = vcmp.lt.s32.totalorder %v3190_v50, 0  ;;  %vm1963_vm5 = vcmp.eq.s32.totalorder %v1961_v59, 0  ;;  %vm1966_vm6 = vcmp.eq.s32.totalorder %v1961_v59, 2  ;;  %vm1962_vm12 = vcmp.lt.s32.totalorder %v1961_v59, 2 }
 0x7da   : > { %v1938_v56 = vsel %vm3191_vm3, 0, %v3190_v50 }
 0x7db   : > { %v1943_v55 = vsub.s32 4294967266, %v1938_v56  ;;  %v1939_v17 = vsub.s32 32, %v1938_v56  ;;  %v1940_v14 = vshll.u32 %v1931_v43, %v1938_v56  ;;  %v2060_v43 = vsel %vm1972_vm8, 0, %v2058_v26 }
 0x7dc   : > { %v2064_v11 = vadd.s32 3, %v2060_v43  ;;  %vm4612_vm8 = vcmask 818176  }
 0x7dd   : > { %v1944_v0 = vadd.s32 127, %v1943_v55  ;;  %v1941_v8 = vshrl.u32 %v1923_v19, %v1939_v17 }
 0x7de   : > { %v2065_v50 = vand.u32 3, %v2064_v11 }
 0x7df   : > { %v1945_v61 = vshll.u32 %v1944_v0, 23  ;;  %v1942_v20 = vor.u32 %v1941_v8, %v1940_v14 }
 0x7e0   : > { %vm2067_vm0 = vcmp.eq.s32.totalorder %v2065_v50, 0  ;;  %vm2070_vm3 = vcmp.eq.s32.totalorder %v2065_v50, 2 }
 0x7e1   : > { %v1946_v6 = vor.u32 4788187, %v1945_v61  ;;  %v1949_v46 = vcvt.s32.f32 %v1942_v20 }
 0x7e3   : > { %v1947_v44 = vand.u32 2147483647, %v1946_v6 }
 0x7e5   : > { %v1950_v29 = vmul.f32 %v1949_v46, %v1947_v44 }
 0x7e7   : > { %v1951_v54 = vxor.u32 2147483648, %v1950_v29 }
 0x7e9   : > { %v1952_v7 = vsel %vm1869_vm10, %v1951_v54, %v1950_v29  ;;  %vm2066_vm10 = vcmp.lt.s32.totalorder %v2065_v50, 2 }
 0x7ea   : > { %v1955_v32 = vsel %vm1868_vm4, %v4088_v28, %v1952_v7  ;;  %vm2063_vm4 = vweird.f32 %v4091_v40 }
 0x7eb   : > { %3474 = vcosq.f32 %v1955_v32 }
 0x7ec   : > { %3476 = vsinq.f32 %v1955_v32 }
 0x7ed   : > { %3478 = vcosq.f32 %v2059_v34 }
 0x7ee   : > { %3480 = vsinq.f32 %v2059_v34 }
 0x7f8   : > { %v3475_v47 = vpop.eup %3474 }
 0x7f9   : > { %v3477_v53 = vpop.eup %3476  ;;  %v1967_v16 = vxor.u32 2147483648, %v3475_v47 }
 0x7fa   : > { %v3479_v25 = vpop.eup %3478  ;;  %v1964_v51 = vxor.u32 2147483648, %v3477_v53 }
 0x7fb   : > { %v3481_v13 = vpop.eup %3480  ;;  %v2071_v56 = vxor.u32 2147483648, %v3479_v25  ;;  %v1968_v55 = vsel %vm1966_vm6, %v1967_v16, %v3477_v53  ;;  %vm2257_vm6 = vcmask 809984  }
 0x7fc   : > { %v2068_v52 = vxor.u32 2147483648, %v3481_v13  ;;  %v1965_v58 = vsel %vm1963_vm5, %v3475_v47, %v1964_v51  ;;  %vm2266_vm5 = vcmask 400384  }
 0x7fd   : > { %v2072_v2 = vsel %vm2070_vm3, %v2071_v56, %v3481_v13  ;;  %v1969_v63 = vsel %vm1962_vm12, %v1965_v58, %v1968_v55  ;;  %vm4615_vm12 = vcmask 424960  }
 0x7fe   : > { %v2069_v35 = vsel %vm2067_vm0, %v3479_v25, %v2068_v52  ;;  %v1970_v17 = vsel %vm1959_vm15, nan, %v1969_v63  ;;  %vm4613_vm0 = vcmask 1043456   ;;  %vm4617_vm15 = vcmask 416768  }
 0x7ff   : > { %v2073_v0 = vsel %vm2066_vm10, %v2069_v35, %v2072_v2  ;;  %v2075_v19 = vmul.f32 %v1970_v17, %v1970_v17  ;;  %vm4614_vm3 = vmmov %vm4613_vm0  ;;  %vm4616_vm10 = vcmask 834560  }
 0x800   : > { %v2074_v24 = vsel %vm2063_vm4, nan, %v2073_v0  ;;  %vm4618_vm4 = vcmask 826368  }
 0x801   : > { %v2076_v61 = vmul.f32 %v2074_v24, %v2074_v24  ;;  %v2082_v8 = vmul.f32 %v2080_v57, %v2075_v19 }
 0x803   : > { %v2083_v14 = vmul.f32 %v2080_v57, %v2076_v61  ;;  %v4242_v20 = vadd.f32 %v2082_v8, %v3607_v4 }
 0x805   : > { %v3262_v44 = vpack.c.bf16 %v4242_v20, %v4242_v20 }
 0x84e   : > { %v1613_v3 = vpop.f32.mrf.mxu0 }
 0x84f   : > { %v4234_v45 = vadd.f32 %v1613_v3, %v4004_v30  ;;  %v4248_v30 = vadd.f32 %v2083_v14, %v3609_v5 }
 0x850   : > { %v1615_v6 = vpop.f32.mrf.mxu0 }
 0x851   : > { %v3260_v18 = vpack.c.bf16 %v4234_v45, %v4234_v45  ;;  %v4239_v28 = vadd.f32 %v1615_v6, %v4009_v27  ;;  %v3263_v4 = vpack.c.bf16 %v4248_v30, %v4248_v30 }
 0x852   : > { %v1617_v40 = vpop.f32.mrf.mxu0 }
 0x853   : > { %v3261_v21 = vpack.c.bf16 %v4239_v28, %v4239_v28  ;;  %1625 = vrot.lane.b32.xlu0 %v3260_v18, %s3497_s7 }
 0x854   : > { %v1618_v12 = vpop.f32.mrf.mxu0 }
 0x855   : > { %1634 = vrot.lane.b32.xlu1 %v3261_v21, %s3498_s8 }
 0x857   : > { %2091 = vrot.lane.b32.xlu0 %v3262_v44, %s3497_s7 }
 0x859   : > { %2100 = vrot.lane.b32.xlu1 %v3263_v4, %s3498_s8 }
 0x8c5   : > { %v1626_v27 = vpop.permute.xlu0 %1625 }
 0x8c6   : > { %v1627_v37 = vrot.slane %v1626_v27, 4 }
 0x8c7   : > { %v1635_v46 = vpop.permute.xlu1 %1634 }
 0x8c8   : > { %v1628_v10 = vsel %vm495_vm13, %v1627_v37, %v1626_v27  ;;  %v1636_v5 = vrot.slane %v1635_v46, 4 }
 0x8c9   : > { %1630 = vst.msk [vmem:[#allocation2] sm:$0xff] %vm3710_vm14, %v1628_v10  ;;  %v2092_v48 = vpop.permute.xlu0 %2091 }
 0x8ca   : > { %v1637_v29 = vsel %vm508_vm1, %v1636_v5, %v1635_v46  ;;  %v2093_v54 = vrot.slane %v2092_v48, 4 }
 0x8cb   : > { %1639 = vst.msk [vmem:[#allocation2 + $0x4] sm:$0xff] %vm3717_vm2, %v1637_v29  ;;  %v2101_v39 = vpop.permute.xlu1 %2100 }
 0x8cc   : > { %v2102_v9 = vrot.slane %v2101_v39, 4  ;;  %v2094_v62 = vsel %vm495_vm13, %v2093_v54, %v2092_v48 }
 0x8ce   : > { %v2103_v34 = vsel %vm508_vm1, %v2102_v9, %v2101_v39 }
 0x8d2   : > { %v4263_v7 = vld [vmem:[#allocation2] sm:$0xff] }
 0x8d3   : > { %v4266_v32 = vld [vmem:[#allocation2 + $0x4] sm:$0xff] }
 0x8d4   : > { %2096 = vst.msk [vmem:[#allocation2] sm:$0xff] %vm3710_vm14, %v2094_v62 }
 0x8d5   : > { %2105 = vst.msk [vmem:[#allocation2 + $0x4] sm:$0xff] %vm3717_vm2, %v2103_v34 }
 0x8dc   : > { %v2278_v38 = vld [vmem:[#allocation2 + $0x4] sm:$0xff] }
 0x8dd   : > { %v2270_v33 = vld [vmem:[#allocation2] sm:$0xff]  ;;  %2280 = vrot.lane.b32.xlu1 %v2278_v38, %s3514_s26 }
 0x8de   : > { %2272 = vrot.lane.b32.xlu0 %v2270_v33, %s3513_s25 }
 0x8e1   : > { %2246 = vrot.lane.b32.xlu1 %v2278_v38, %s3505_s17 }
 0x8e2   : > { %2238 = vrot.lane.b32.xlu0 %v2270_v33, %s3506_s18 }
 0x8e5   : > { %2263 = vrot.lane.b32.xlu1 %v2278_v38, %s3525_s27  ;;  %s4608_s27 = smov 55  }
 0x8e6   : > { %2254 = vrot.lane.b32.xlu0 %v2270_v33, %s3526_s28  ;;  %s3534_s28 = smov 68  }
 0x8e9   : > { %2214 = vrot.lane.b32.xlu1 %v2278_v38, %s3499_s9  ;;  %s4609_s9 = smov 105  }
 0x8ea   : > { %2206 = vrot.lane.b32.xlu0 %v2270_v33, %s3500_s10  ;;  %s4610_s10 = smov 58  }
 0x8ed   : > { %2230 = vrot.lane.b32.xlu1 %v2278_v38, %s3509_s29  ;;  %s4611_s29 = smov 108  }
 0x8ee   : > { %2222 = vrot.lane.b32.xlu0 %v2270_v33, %s3510_s30  ;;  %s3527_s30 = smov 57  }
 0x8f1   : > { %2182 = vrot.lane.b32.xlu1 %v2278_v38, %s3501_s11  ;;  %s3528_s11 = smov 107  }
 0x8f2   : > { %2174 = vrot.lane.b32.xlu0 %v2270_v33, %s3502_s12  ;;  %s3533_s12 = smov 118  }
 0x8f5   : > { %2198 = vrot.lane.b32.xlu1 %v2278_v38, %s3503_s13 }
 0x8f6   : > { %2190 = vrot.lane.b32.xlu0 %v2270_v33, %s3504_s14 }
 0x8f9   : > { %2150 = vrot.lane.b32.xlu1 %v2278_v38, %s4606_s19 }
 0x8fa   : > { %2142 = vrot.lane.b32.xlu0 %v2270_v33, %s4607_s20 }
 0x8fd   : > { %2166 = vrot.lane.b32.xlu1 %v2278_v38, %s4608_s27  ;;  %s3529_s27 = smov 88  }
 0x8fe   : > { %2158 = vrot.lane.b32.xlu0 %v2270_v33, %s4609_s9  ;;  %s3530_s9 = smov 38  }
 0x901   : > { %2116 = vrot.lane.b32.xlu1 %v2278_v38, %s4610_s10 }
 0x902   : > { %2108 = vrot.lane.b32.xlu0 %v2270_v33, %s4611_s29 }
 0x905   : > { %2133 = vrot.lane.b32.xlu1 %v2278_v38, %s3527_s30  ;;  %s4572_s30 = smov 93  }
 0x906   : > { %2124 = vrot.lane.b32.xlu0 %v2270_v33, %s3528_s11  ;;  %s4573_s11 = smov 43  }
 0x94f   : > { %v2281_v36 = vpop.permute.xlu1 %2280 }
 0x950   : > { %v2273_v26 = vpop.permute.xlu0 %2272  ;;  %v2282_v42 = vrot.slane %v2281_v36, 4 }
 0x951   : > { %v2274_v43 = vrot.slane %v2273_v26, 4 }
 0x952   : > { %v2283_v22 = vsel %vm850_vm9, %v2281_v36, %v2282_v42 }
 0x953   : > { %v2275_v47 = vsel %vm841_vm7, %v2273_v26, %v2274_v43  ;;  %2285 = vst [vmem:[#allocation5 + $0x54] sm:$0xf] %v2283_v22  ;;  %v2247_v53 = vpop.permute.xlu1 %2246 }
 0x954   : > { %2277 = vst [vmem:[#allocation5 + $0x50] sm:$0xf] %v2275_v47  ;;  %v2239_v11 = vpop.permute.xlu0 %2238  ;;  %v2248_v25 = vrot.slane %v2247_v53, 4 }
 0x955   : > { %v2240_v13 = vrot.slane %v2239_v11, 4 }
 0x956   : > { %v2249_v59 = vsel %vm708_vm11, %v2247_v53, %v2248_v25 }
 0x957   : > { %v2241_v51 = vsel %vm4612_vm8, %v2239_v11, %v2240_v13  ;;  %2251 = vst [vmem:[#allocation5 + $0x44] sm:$0xf] %v2249_v59  ;;  %v2264_v16 = vpop.permute.xlu1 %2263  ;;  %vm4619_vm8 = vcmask 441344  }
 0x958   : > { %2243 = vst [vmem:[#allocation5 + $0x40] sm:$0xf] %v2241_v51  ;;  %v2255_v50 = vpop.permute.xlu0 %2254  ;;  %v2265_v52 = vrot.slane %v2264_v16, 4 }
 0x959   : > { %v2256_v56 = vrot.slane %v2255_v50, 4 }
 0x95a   : > { %v2267_v58 = vsel %vm2266_vm5, %v2264_v16, %v2265_v52  ;;  %vm4620_vm5 = vcmask 850944  }
 0x95b   : > { %v2258_v55 = vsel %vm2257_vm6, %v2255_v50, %v2256_v56  ;;  %v2297_v35 = vld [vmem:[#allocation5 + $0x50] sm:$0xff]  ;;  %2269 = vst [vmem:[#allocation5 + $0x4c] sm:$0xf] %v2267_v58  ;;  %v2215_v2 = vpop.permute.xlu1 %2214  ;;  %vm4621_vm6 = vcmask 433152  }
 0x95c   : > { %2260 = vst [vmem:[#allocation5 + $0x48] sm:$0xf] %v2258_v55  ;;  %v2207_v63 = vpop.permute.xlu0 %2206  ;;  %v3209_v0 = vcombine.high %v2297_v35, %v2297_v35  ;;  %v3208_v17 = vcombine.low %v2297_v35, %v2297_v35  ;;  %v2216_v24 = vrot.slane %v2215_v2, 4 }
 0x95d   : > { %v2208_v19 = vrot.slane %v2207_v63, 4 }
 0x95e   : > { %3210 = vmatprep.subr.msk.bf16.mxu0 %vm4613_vm0, %v3209_v0  ;;  %v2358_v61 = vsel %vm4614_vm3, %v3208_v17, 0  ;;  %v2217_v57 = vsel %vm4615_vm12, %v2215_v2, %v2216_v24  ;;  %vm4622_vm0 = vcmask 842752   ;;  %vm4623_vm3 = vcmask 457728  }
 0x95f   : > { %v2209_v8 = vsel %vm4616_vm10, %v2207_v63, %v2208_v19  ;;  %2368 = vmatpush1.bf16.msra.mxu0 %v2358_v61  ;;  %2219 = vst [vmem:[#allocation5 + $0x34] sm:$0xf] %v2217_v57  ;;  %v2231_v3 = vpop.permute.xlu1 %2230  ;;  %vm4624_vm12 = vcmask 867328   ;;  %vm4625_vm10 = vcmask 449536  }
 0x960   : > { %2211 = vst [vmem:[#allocation5 + $0x30] sm:$0xf] %v2209_v8  ;;  %v2223_v14 = vpop.permute.xlu0 %2222  ;;  %v2232_v6 = vrot.slane %v2231_v3, 4 }
 0x961   : > { %v2224_v18 = vrot.slane %v2223_v14, 4 }
 0x962   : > { %v2233_v40 = vsel %vm4617_vm15, %v2231_v3, %v2232_v6  ;;  %v3398_v12 = vld [vmem:[#allocation5 + $0x44] ss:$8 sps:$4 sm:$0xff]   ;;  %vm4626_vm15 = vcmask 859136  }
 0x963   : > { %v2225_v21 = vsel %vm4618_vm4, %v2223_v14, %v2224_v18  ;;  %v3400_v44 = vld [vmem:[#allocation5 + $0x40] ss:$8 sps:$4 sm:$0xff]   ;;  %2235 = vst [vmem:[#allocation5 + $0x3c] sm:$0xf] %v2233_v40  ;;  %v2183_v4 = vpop.permute.xlu1 %2182  ;;  %2369 = vmatprep.subr.bf16.mxu0 %v3398_v12  ;;  %vm4627_vm4 = vcmask 474112  }
 0x964   : > { %2227 = vst [vmem:[#allocation5 + $0x38] sm:$0xf] %v2225_v21  ;;  %v2175_v27 = vpop.permute.xlu0 %2174  ;;  %v2184_v37 = vrot.slane %v2183_v4, 4  ;;  %2370 = vmatpush1.bf16.msra.mxu0 %v3400_v44  ;;  %v2286_v14 = vld [vmem:[%s4530_s4] sm:$0xf] }
 0x965   : > { %v2176_v46 = vrot.slane %v2175_v27, 4 }
 0x966   : > { %v2185_v10 = vsel %vm4619_vm8, %v2183_v4, %v2184_v37  ;;  %vm4628_vm8 = vcmask 883712  }
 0x967   : > { %v2177_v5 = vsel %vm4620_vm5, %v2175_v27, %v2176_v46  ;;  %2187 = vst [vmem:[#allocation5 + $0x24] sm:$0xf] %v2185_v10  ;;  %v2199_v29 = vpop.permute.xlu1 %2198  ;;  %vm2136_vm5 = vcmask 465920  }
 0x968   : > { %2179 = vst [vmem:[#allocation5 + $0x20] sm:$0xf] %v2177_v5  ;;  %v2191_v48 = vpop.permute.xlu0 %2190  ;;  %v2200_v39 = vrot.slane %v2199_v29, 4 }
 0x969   : > { %v2192_v54 = vrot.slane %v2191_v48, 4 }
 0x96a   : > { %v2201_v9 = vsel %vm4621_vm6, %v2199_v29, %v2200_v39  ;;  %v3401_v34 = vld [vmem:[#allocation5 + $0x34] ss:$8 sps:$4 sm:$0xff]   ;;  %vm2127_vm6 = vcmask 875520  }
 0x96b   : > { %v2193_v62 = vsel %vm4622_vm0, %v2191_v48, %v2192_v54  ;;  %v3403_v38 = vld [vmem:[#allocation5 + $0x30] ss:$8 sps:$4 sm:$0xff]   ;;  %2203 = vst [vmem:[#allocation5 + $0x2c] sm:$0xf] %v2201_v9  ;;  %v2151_v33 = vpop.permute.xlu1 %2150  ;;  %2371 = vmatprep.subr.bf16.mxu0 %v3401_v34  ;;  %vm1747_vm0 = vcmask 719872  }
 0x96c   : > { %2195 = vst [vmem:[#allocation5 + $0x28] sm:$0xf] %v2193_v62  ;;  %v2143_v36 = vpop.permute.xlu0 %2142  ;;  %v2152_v26 = vrot.slane %v2151_v33, 4  ;;  %2372 = vmatpush1.bf16.msra.mxu0 %v3403_v38 }
 0x96d   : > { %v2144_v42 = vrot.slane %v2143_v36, 4 }
 0x96e   : > { %v2153_v43 = vsel %vm4623_vm3, %v2151_v33, %v2152_v26  ;;  %vm1756_vm3 = vcmask 310272  }
 0x96f   : > { %v2145_v22 = vsel %vm4624_vm12, %v2143_v36, %v2144_v42  ;;  %2155 = vst [vmem:[#allocation5 + $0x14] sm:$0xf] %v2153_v43  ;;  %v2167_v47 = vpop.permute.xlu1 %2166  ;;  %vm4578_vm12 = vcmask 760832  }
 0x970   : > { %2147 = vst [vmem:[#allocation5 + $0x10] sm:$0xf] %v2145_v22  ;;  %v2159_v53 = vpop.permute.xlu0 %2158  ;;  %v2168_v11 = vrot.slane %v2167_v47, 4 }
 0x971   : > { %v2160_v25 = vrot.slane %v2159_v53, 4 }
 0x972   : > { %v2169_v13 = vsel %vm4625_vm10, %v2167_v47, %v2168_v11  ;;  %v3404_v51 = vld [vmem:[#allocation5 + $0x24] ss:$8 sps:$4 sm:$0xff]   ;;  %vm4579_vm10 = vcmask 351232  }
 0x973   : > { %v2161_v59 = vsel %vm4626_vm15, %v2159_v53, %v2160_v25  ;;  %v3406_v16 = vld [vmem:[#allocation5 + $0x20] ss:$8 sps:$4 sm:$0xff]   ;;  %2171 = vst [vmem:[#allocation5 + $0x1c] sm:$0xf] %v2169_v13  ;;  %v2117_v50 = vpop.permute.xlu1 %2116  ;;  %2373 = vmatprep.subr.bf16.mxu0 %v3404_v51  ;;  %vm4631_vm15 = vmmov %vm4628_vm8 }
 0x974   : > { %2163 = vst [vmem:[#allocation5 + $0x18] sm:$0xf] %v2161_v59  ;;  %v2109_v52 = vpop.permute.xlu0 %2108  ;;  %v2118_v56 = vrot.slane %v2117_v50, 4  ;;  %2374 = vmatpush1.bf16.msra.mxu0 %v3406_v16 }
 0x975   : > { %v2110_v58 = vrot.slane %v2109_v52, 4 }
 0x976   : > { %v2119_v55 = vsel %vm4627_vm4, %v2117_v50, %v2118_v56  ;;  %vm4632_vm4 = vcmask 1043456  }
 0x977   : > { %v2111_v35 = vsel %vm4628_vm8, %v2109_v52, %v2110_v58  ;;  %2121 = vst [vmem:[#allocation5 + $0x4] sm:$0xf] %v2119_v55  ;;  %v2134_v2 = vpop.permute.xlu1 %2133  ;;  %vm4633_vm8 = vmmov %vm4632_vm4 }
 0x978   : > { %2113 = vst [vmem:[#allocation5] sm:$0xf] %v2111_v35  ;;  %v2125_v63 = vpop.permute.xlu0 %2124  ;;  %v2135_v0 = vrot.slane %v2134_v2, 4 }
 0x979   : > { %v2126_v17 = vrot.slane %v2125_v63, 4 }
 0x97a   : > { %v2137_v24 = vsel %vm2136_vm5, %v2134_v2, %v2135_v0  ;;  %v3407_v61 = vld [vmem:[#allocation5 + $0x14] ss:$8 sps:$4 sm:$0xff]   ;;  %vm4634_vm5 = vcmask 474112  }
 0x97b   : > { %v2128_v19 = vsel %vm2127_vm6, %v2125_v63, %v2126_v17  ;;  %v3409_v57 = vld [vmem:[#allocation5 + $0x10] ss:$8 sps:$4 sm:$0xff]   ;;  %2139 = vst [vmem:[#allocation5 + $0xc] sm:$0xf] %v2137_v24  ;;  %2375 = vmatprep.subr.bf16.mxu0 %v3407_v61  ;;  %vm4635_vm6 = vcmask 842752  }
 0x97c   : > { %2130 = vst [vmem:[#allocation5 + $0x8] sm:$0xf] %v2128_v19  ;;  %2376 = vmatpush1.bf16.msra.mxu0 %v3409_v57 }
 0x982   : > { %v3410_v8 = vld [vmem:[#allocation5 + $0x4] ss:$8 sps:$4 sm:$0xff]  }
 0x983   : > { %v3412_v3 = vld [vmem:[#allocation5] ss:$8 sps:$4 sm:$0xff]   ;;  %2377 = vmatprep.subr.bf16.mxu0 %v3410_v8 }
 0x984   : > { %2378 = vmatpush1.bf16.msra.mxu0 %v3412_v3 }
 0x987   : > { %3211 = vmatmul.mubr.msk.bf16.vlgmr.msra.gmra.mxu0 %vm1747_vm0, %v2286_v14 }
 0x988   : > { %3027 = vmatprep.mubr.bf16.mxu0 %v3490_v1 }
 0xa47   : > { %v2397_v6 = vpop.f32.mrf.mxu0 }
 0xa48   : > { %v4317_v18 = vadd.f32 %v2397_v6, %v4242_v20 }
 0xa49   : > { %v2399_v40 = vpop.f32.mrf.mxu0 }
 0xa4a   : > { %v3264_v21 = vpack.c.bf16 %v4317_v18, %v4317_v18  ;;  %v4322_v12 = vadd.f32 %v2399_v40, %v4248_v30 }
 0xa4b   : > { %v2401_v44 = vpop.f32.mrf.mxu0 }
 0xa4c   : > { %v3265_v4 = vpack.c.bf16 %v4322_v12, %v4322_v12  ;;  %2409 = vrot.lane.b32.xlu0 %v3264_v21, %s3497_s7 }
 0xa4d   : > { %v2402_v27 = vpop.f32.mrf.mxu0 }
 0xa4e   : > { %2418 = vrot.lane.b32.xlu1 %v3265_v4, %s3498_s8 }
 0xa50   : > { %1744 = vrot.lane.b32.xlu0 %v4263_v7, %s3529_s27 }
 0xa52   : > { %1753 = vrot.lane.b32.xlu1 %v4266_v32, %s3530_s9 }
 0xa54   : > { %1710 = vrot.lane.b32.xlu0 %v4263_v7, %s3513_s25 }
 0xa56   : > { %1718 = vrot.lane.b32.xlu1 %v4266_v32, %s3514_s26 }
 0xa58   : > { %1726 = vrot.lane.b32.xlu0 %v4263_v7, %s4572_s30  ;;  %s4574_s30 = smov 113  }
 0xa5a   : > { %1735 = vrot.lane.b32.xlu1 %v4266_v32, %s4573_s11  ;;  %s4575_s11 = smov 63  }
 0xa5c   : > { %1678 = vrot.lane.b32.xlu0 %v4263_v7, %s4611_s29 }
 0xa5e   : > { %1686 = vrot.lane.b32.xlu1 %v4266_v32, %s4610_s10 }
 0xa60   : > { %1694 = vrot.lane.b32.xlu0 %v4263_v7, %s3504_s14 }
 0xa62   : > { %1702 = vrot.lane.b32.xlu1 %v4266_v32, %s3503_s13 }
 0xa64   : > { %1642 = vrot.lane.b32.xlu0 %v4263_v7, %s3533_s12 }
 0xa66   : > { %1651 = vrot.lane.b32.xlu1 %v4266_v32, %s3534_s28 }
 0xa68   : > { %1660 = vrot.lane.b32.xlu0 %v4263_v7, %s4574_s30  ;;  %s4629_s30 = smov 44  }
 0xa6a   : > { %1669 = vrot.lane.b32.xlu1 %v4266_v32, %s4575_s11  ;;  %s4630_s11 = smov 94  }
 0xabe   : > { %v2410_v20 = vpop.permute.xlu0 %2409 }
 0xabf   : > { %v2411_v30 = vrot.slane %v2410_v20, 4 }
 0xac0   : > { %v2419_v37 = vpop.permute.xlu1 %2418 }
 0xac1   : > { %v2412_v46 = vsel %vm495_vm13, %v2411_v30, %v2410_v20  ;;  %v2420_v10 = vrot.slane %v2419_v37, 4 }
 0xac2   : > { %2414 = vst.msk [vmem:[#allocation2] sm:$0xff] %vm3710_vm14, %v2412_v46  ;;  %v1745_v5 = vpop.permute.xlu0 %1744 }
 0xac3   : > { %v2421_v29 = vsel %vm508_vm1, %v2420_v10, %v2419_v37  ;;  %v1746_v48 = vrot.slane %v1745_v5, 4 }
 0xac4   : > { %2423 = vst.msk [vmem:[#allocation2 + $0x4] sm:$0xff] %vm3717_vm2, %v2421_v29  ;;  %v1754_v7 = vpop.permute.xlu1 %1753 }
 0xac5   : > { %v1748_v32 = vsel %vm1747_vm0, %v1745_v5, %v1746_v48  ;;  %v1755_v39 = vrot.slane %v1754_v7, 4  ;;  %v3175_v48 = vld [vmem:[%s4529_s3 + $0x8] sm:$0xf] }
 0xac6   : > { %1750 = vst [vmem:[#allocation4 + $0x30] sm:$0xf] %v1748_v32  ;;  %v1711_v54 = vpop.permute.xlu0 %1710 }
 0xac7   : > { %v1757_v9 = vsel %vm1756_vm3, %v1754_v7, %v1755_v39  ;;  %v1712_v62 = vrot.slane %v1711_v54, 4 }
 0xac8   : > { %1759 = vst [vmem:[#allocation4 + $0x34] sm:$0xf] %v1757_v9  ;;  %v1719_v34 = vpop.permute.xlu1 %1718 }
 0xac9   : > { %v1713_v38 = vsel %vm841_vm7, %v1711_v54, %v1712_v62  ;;  %v1720_v33 = vrot.slane %v1719_v34, 4 }
 0xaca   : > { %1715 = vst [vmem:[#allocation4 + $0x20] sm:$0xf] %v1713_v38  ;;  %v1727_v36 = vpop.permute.xlu0 %1726 }
 0xacb   : > { %v1721_v26 = vsel %vm850_vm9, %v1719_v34, %v1720_v33  ;;  %v1728_v42 = vrot.slane %v1727_v36, 4  ;;  %v4366_v43 = vld [vmem:[#allocation2 + $0x4] sm:$0xff] }
 0xacc   : > { %v4368_v22 = vld [vmem:[#allocation2] sm:$0xff]  ;;  %1723 = vst [vmem:[#allocation4 + $0x24] sm:$0xf] %v1721_v26  ;;  %v1736_v47 = vpop.permute.xlu1 %1735  ;;  %2598 = vrot.lane.b32.xlu1 %v4366_v43, %s3530_s9 }
 0xacd   : > { %2590 = vrot.lane.b32.xlu0 %v4368_v22, %s3529_s27  ;;  %v1730_v53 = vsel %vm4578_vm12, %v1727_v36, %v1728_v42  ;;  %v1737_v11 = vrot.slane %v1736_v47, 4  ;;  %vm2575_vm12 = vcmask 744448  }
 0xace   : > { %1732 = vst [vmem:[#allocation4 + $0x28] sm:$0xf] %v1730_v53  ;;  %v1679_v25 = vpop.permute.xlu0 %1678 }
 0xacf   : > { %v1739_v13 = vsel %vm4579_vm10, %v1736_v47, %v1737_v11  ;;  %v1680_v59 = vrot.slane %v1679_v25, 4  ;;  %v1768_v51 = vld [vmem:[#allocation4 + $0x30] sm:$0xff]  ;;  %vm4644_vm10 = vcmask 818176  }
 0xad0   : > { %1741 = vst [vmem:[#allocation4 + $0x2c] sm:$0xf] %v1739_v13  ;;  %v1687_v16 = vpop.permute.xlu1 %1686  ;;  %2564 = vrot.lane.b32.xlu1 %v4366_v43, %s4629_s30  ;;  %v3183_v50 = vcombine.high %v1768_v51, %v1768_v51  ;;  %v3182_v52 = vcombine.low %v1768_v51, %v1768_v51  ;;  %s3537_s30 = smov 41  }
 0xad1   : > { %2556 = vrot.lane.b32.xlu0 %v4368_v22, %s4630_s11  ;;  %v1681_v56 = vsel %vm4631_vm15, %v1679_v25, %v1680_v59  ;;  %v1688_v58 = vrot.slane %v1687_v16, 4  ;;  %s3538_s11 = smov 91   ;;  %vm1645_vm15 = vcmask 965632  }
 0xad2   : > { %1683 = vst [vmem:[#allocation4 + $0x10] sm:$0xf] %v1681_v56  ;;  %3184 = vmatprep.subr.msk.bf16.mxu1 %vm4632_vm4, %v3183_v50  ;;  %v1695_v55 = vpop.permute.xlu0 %1694  ;;  %v1808_v35 = vsel %vm4633_vm8, %v3182_v52, 0  ;;  %vm4636_vm4 = vcmask 433152   ;;  %vm1654_vm8 = vcmask 556032  }
 0xad3   : > { %v1689_v2 = vsel %vm4634_vm5, %v1687_v16, %v1688_v58  ;;  %v1696_v63 = vrot.slane %v1695_v55, 4  ;;  %1822 = vmatpush1.bf16.msra.mxu1 %v1808_v35  ;;  %vm4576_vm5 = vcmask 924672  }
 0xad4   : > { %1691 = vst [vmem:[#allocation4 + $0x14] sm:$0xf] %v1689_v2  ;;  %v1703_v0 = vpop.permute.xlu1 %1702  ;;  %2581 = vrot.lane.b32.xlu1 %v4366_v43, %s3537_s30  ;;  %s4637_s30 = smov 47  }
 0xad5   : > { %2572 = vrot.lane.b32.xlu0 %v4368_v22, %s3538_s11  ;;  %v1697_v17 = vsel %vm4635_vm6, %v1695_v55, %v1696_v63  ;;  %v1704_v24 = vrot.slane %v1703_v0, 4  ;;  %v3415_v8 = vld [vmem:[#allocation4 + $0x20] ss:$8 sps:$4 sm:$0xff]   ;;  %vm4577_vm6 = vcmask 515072   ;;  %s3544_s11 = smov 83  }
 0xad6   : > { %1699 = vst [vmem:[#allocation4 + $0x18] sm:$0xf] %v1697_v17  ;;  %v1643_v19 = vpop.permute.xlu0 %1642 }
 0xad7   : > { %v1705_v61 = vsel %vm4636_vm4, %v1703_v0, %v1704_v24  ;;  %v1644_v57 = vrot.slane %v1643_v19, 4  ;;  %v3417_v3 = vld [vmem:[#allocation4 + $0x24] ss:$8 sps:$4 sm:$0xff]   ;;  %vm4639_vm4 = vcmask 457728  }
 0xad8   : > { %1707 = vst [vmem:[#allocation4 + $0x1c] sm:$0xf] %v1705_v61  ;;  %v1652_v14 = vpop.permute.xlu1 %1651  ;;  %2532 = vrot.lane.b32.xlu1 %v4366_v43, %s3505_s17  ;;  %1823 = vmatprep.subr.bf16.mxu1 %v3417_v3  ;;  %s4638_s17 = smov 97  }
 0xad9   : > { %2524 = vrot.lane.b32.xlu0 %v4368_v22, %s3506_s18  ;;  %v1646_v6 = vsel %vm1645_vm15, %v1643_v19, %v1644_v57  ;;  %v1653_v40 = vrot.slane %v1652_v14, 4  ;;  %1824 = vmatpush1.bf16.msra.mxu1 %v3415_v8 }
 0xada   : > { %1648 = vst [vmem:[#allocation4] sm:$0xf] %v1646_v6  ;;  %v1661_v21 = vpop.permute.xlu0 %1660 }
 0xadb   : > { %v1655_v44 = vsel %vm1654_vm8, %v1652_v14, %v1653_v40  ;;  %v1662_v4 = vrot.slane %v1661_v21, 4 }
 0xadc   : > { %1657 = vst [vmem:[#allocation4 + $0x4] sm:$0xf] %v1655_v44  ;;  %v1670_v27 = vpop.permute.xlu1 %1669  ;;  %2548 = vrot.lane.b32.xlu1 %v4366_v43, %s4637_s30  ;;  %s4655_s30 = smov 43  }
 0xadd   : > { %2540 = vrot.lane.b32.xlu0 %v4368_v22, %s4638_s17  ;;  %v1664_v20 = vsel %vm4576_vm5, %v1661_v21, %v1662_v4  ;;  %v1671_v30 = vrot.slane %v1670_v27, 4  ;;  %v3418_v46 = vld [vmem:[#allocation4 + $0x10] ss:$8 sps:$4 sm:$0xff]   ;;  %vm4641_vm5 = vcmask 769024   ;;  %s4656_s17 = smov 93  }
 0xade   : > { %1666 = vst [vmem:[#allocation4 + $0x8] sm:$0xf] %v1664_v20 }
 0xadf   : > { %v1673_v37 = vsel %vm4577_vm6, %v1670_v27, %v1671_v30  ;;  %v3420_v10 = vld [vmem:[#allocation4 + $0x14] ss:$8 sps:$4 sm:$0xff]   ;;  %vm2584_vm6 = vcmask 334848  }
 0xae0   : > { %1675 = vst [vmem:[#allocation4 + $0xc] sm:$0xf] %v1673_v37  ;;  %2500 = vrot.lane.b32.xlu1 %v4366_v43, %s4606_s19  ;;  %1825 = vmatprep.subr.bf16.mxu1 %v3420_v10 }
 0xae1   : > { %2492 = vrot.lane.b32.xlu0 %v4368_v22, %s4607_s20  ;;  %1826 = vmatpush1.bf16.msra.mxu1 %v3418_v46  ;;  %s3543_s20 = smov 33  }
 0xae4   : > { %2516 = vrot.lane.b32.xlu1 %v4366_v43, %s3503_s13 }
 0xae5   : > { %2508 = vrot.lane.b32.xlu0 %v4368_v22, %s3504_s14  ;;  %v3421_v5 = vld [vmem:[#allocation4] ss:$8 sps:$4 sm:$0xff]  }
 0xae7   : > { %v3423_v29 = vld [vmem:[#allocation4 + $0x4] ss:$8 sps:$4 sm:$0xff]  }
 0xae8   : > { %2468 = vrot.lane.b32.xlu1 %v4366_v43, %s3521_s23  ;;  %1827 = vmatprep.subr.bf16.mxu1 %v3423_v29  ;;  %s3539_s23 = smov 65  }
 0xae9   : > { %2460 = vrot.lane.b32.xlu0 %v4368_v22, %s3522_s24  ;;  %1828 = vmatpush1.bf16.msra.mxu1 %v3421_v5  ;;  %s3540_s24 = smov 115  }
 0xaec   : > { %2484 = vrot.lane.b32.xlu1 %v4366_v43, %s3523_s16  ;;  %3185 = vmatmul.mubr.msk.bf16.vlgmr.msra.gmra.mxu1 %vm4639_vm4, %v3175_v48  ;;  %vm4640_vm4 = vcmask 359424  }
 0xaed   : > { %2476 = vrot.lane.b32.xlu0 %v4368_v22, %s3524_s15  ;;  %2713 = vmatprep.mubr.bf16.mxu1 %v3490_v1 }
 0xaf0   : > { %2434 = vrot.lane.b32.xlu1 %v4366_v43, %s3534_s28 }
 0xaf1   : > { %2426 = vrot.lane.b32.xlu0 %v4368_v22, %s3533_s12 }
 0xaf4   : > { %2451 = vrot.lane.b32.xlu1 %v4366_v43, %s3539_s23 }
 0xaf5   : > { %2442 = vrot.lane.b32.xlu0 %v4368_v22, %s3540_s24 }
 0xb3e   : > { %v2599_v7 = vpop.permute.xlu1 %2598 }
 0xb3f   : > { %v2591_v32 = vpop.permute.xlu0 %2590  ;;  %v2600_v39 = vrot.slane %v2599_v7, 4 }
 0xb40   : > { %v2592_v54 = vrot.slane %v2591_v32, 4 }
 0xb41   : > { %v2601_v9 = vsel %vm1756_vm3, %v2599_v7, %v2600_v39 }
 0xb42   : > { %v2593_v1 = vsel %vm1747_vm0, %v2591_v32, %v2592_v54  ;;  %2603 = vst [vmem:[#allocation5 + $0x54] sm:$0xf] %v2601_v9  ;;  %v2565_v62 = vpop.permute.xlu1 %2564 }
 0xb43   : > { %2595 = vst [vmem:[#allocation5 + $0x50] sm:$0xf] %v2593_v1  ;;  %v2557_v34 = vpop.permute.xlu0 %2556  ;;  %v2566_v38 = vrot.slane %v2565_v62, 4 }
 0xb44   : > { %v2558_v33 = vrot.slane %v2557_v34, 4 }
 0xb45   : > { %v2567_v36 = vsel %vm4640_vm4, %v2565_v62, %v2566_v38 }
 0xb46   : > { %v2559_v26 = vsel %vm4641_vm5, %v2557_v34, %v2558_v33  ;;  %2569 = vst [vmem:[#allocation5 + $0x44] sm:$0xf] %v2567_v36  ;;  %v2582_v42 = vpop.permute.xlu1 %2581  ;;  %vm4642_vm5 = vcmask 1043456  }
 0xb47   : > { %2561 = vst [vmem:[#allocation5 + $0x40] sm:$0xf] %v2559_v26  ;;  %v2573_v43 = vpop.permute.xlu0 %2572  ;;  %v2583_v22 = vrot.slane %v2582_v42, 4  ;;  %vm4643_vm4 = vmmov %vm4642_vm5 }
 0xb48   : > { %v2574_v47 = vrot.slane %v2573_v43, 4 }
 0xb49   : > { %v2585_v53 = vsel %vm2584_vm6, %v2582_v42, %v2583_v22  ;;  %vm4646_vm6 = vcmask 793600  }
 0xb4a   : > { %v2576_v11 = vsel %vm2575_vm12, %v2573_v43, %v2574_v47  ;;  %v2616_v25 = vld [vmem:[#allocation5 + $0x50] sm:$0xff]  ;;  %2587 = vst [vmem:[#allocation5 + $0x4c] sm:$0xf] %v2585_v53  ;;  %v2533_v13 = vpop.permute.xlu1 %2532  ;;  %vm4645_vm12 = vcmask 384000  }
 0xb4b   : > { %2578 = vst [vmem:[#allocation5 + $0x48] sm:$0xf] %v2576_v11  ;;  %v2525_v59 = vpop.permute.xlu0 %2524  ;;  %v3226_v51 = vcombine.high %v2616_v25, %v2616_v25  ;;  %v3225_v16 = vcombine.low %v2616_v25, %v2616_v25  ;;  %v2534_v50 = vrot.slane %v2533_v13, 4 }
 0xb4c   : > { %v2526_v52 = vrot.slane %v2525_v59, 4 }
 0xb4d   : > { %3227 = vmatprep.subr.msk.bf16.mxu1 %vm4642_vm5, %v3226_v51  ;;  %v2676_v56 = vsel %vm4643_vm4, %v3225_v16, 0  ;;  %v2535_v58 = vsel %vm708_vm11, %v2533_v13, %v2534_v50  ;;  %vm4647_vm11 = vcmask 457728   ;;  %vm4649_vm5 = vcmask 433152  }
 0xb4e   : > { %v2527_v55 = vsel %vm4644_vm10, %v2525_v59, %v2526_v52  ;;  %2686 = vmatpush1.bf16.msra.mxu1 %v2676_v56  ;;  %2537 = vst [vmem:[#allocation5 + $0x34] sm:$0xf] %v2535_v58  ;;  %v2549_v35 = vpop.permute.xlu1 %2548  ;;  %vm4648_vm10 = vcmask 867328   ;;  %vm4650_vm4 = vcmask 842752   ;;  %v3214_v58 = vld [vmem:[%s4530_s4 + $0x4] sm:$0xf] }
 0xb4f   : > { %2529 = vst [vmem:[#allocation5 + $0x30] sm:$0xf] %v2527_v55  ;;  %v2541_v2 = vpop.permute.xlu0 %2540  ;;  %v2550_v63 = vrot.slane %v2549_v35, 4 }
 0xb50   : > { %v2542_v0 = vrot.slane %v2541_v2, 4 }
 0xb51   : > { %v2551_v17 = vsel %vm4645_vm12, %v2549_v35, %v2550_v63  ;;  %v3426_v19 = vld [vmem:[#allocation5 + $0x44] ss:$8 sps:$4 sm:$0xff]   ;;  %vm4651_vm12 = vcmask 506880   ;;  %v918_v35 = vadd.f32 %v4135_v49, %v3929_v60 }
 0xb52   : > { %v2543_v24 = vsel %vm4646_vm6, %v2541_v2, %v2542_v0  ;;  %v3428_v61 = vld [vmem:[#allocation5 + $0x40] ss:$8 sps:$4 sm:$0xff]   ;;  %2553 = vst [vmem:[#allocation5 + $0x3c] sm:$0xf] %v2551_v17  ;;  %v2501_v57 = vpop.permute.xlu1 %2500  ;;  %2687 = vmatprep.subr.bf16.mxu1 %v3426_v19  ;;  %vm4652_vm6 = vcmask 916480   ;;  %v920_v0 = vadd.f32 %v4140_v23, %v3937_v31 }
 0xb53   : > { %2545 = vst [vmem:[#allocation5 + $0x38] sm:$0xf] %v2543_v24  ;;  %v2493_v8 = vpop.permute.xlu0 %2492  ;;  %v2502_v3 = vrot.slane %v2501_v57, 4  ;;  %2688 = vmatpush1.bf16.msra.mxu1 %v3428_v61 }
 0xb54   : > { %v2494_v14 = vrot.slane %v2493_v8, 4 }
 0xb55   : > { %v2503_v6 = vsel %vm4647_vm11, %v2501_v57, %v2502_v3  ;;  %vm4653_vm11 = vcmask 482304  }
 0xb56   : > { %v2495_v40 = vsel %vm4648_vm10, %v2493_v8, %v2494_v14  ;;  %2505 = vst [vmem:[#allocation5 + $0x24] sm:$0xf] %v2503_v6  ;;  %v2517_v21 = vpop.permute.xlu1 %2516  ;;  %vm4654_vm10 = vcmask 891904  }
 0xb57   : > { %2497 = vst [vmem:[#allocation5 + $0x20] sm:$0xf] %v2495_v40  ;;  %v2509_v44 = vpop.permute.xlu0 %2508  ;;  %v2518_v4 = vrot.slane %v2517_v21, 4 }
 0xb58   : > { %v2510_v27 = vrot.slane %v2509_v44, 4 }
 0xb59   : > { %v2519_v20 = vsel %vm4649_vm5, %v2517_v21, %v2518_v4  ;;  %v3429_v37 = vld [vmem:[#allocation5 + $0x34] ss:$8 sps:$4 sm:$0xff]   ;;  %vm2454_vm5 = vcmask 531456  }
 0xb5a   : > { %v2511_v30 = vsel %vm4650_vm4, %v2509_v44, %v2510_v27  ;;  %v3431_v46 = vld [vmem:[#allocation5 + $0x30] ss:$8 sps:$4 sm:$0xff]   ;;  %2521 = vst [vmem:[#allocation5 + $0x2c] sm:$0xf] %v2519_v20  ;;  %v2469_v10 = vpop.permute.xlu1 %2468  ;;  %2689 = vmatprep.subr.bf16.mxu1 %v3429_v37  ;;  %vm2445_vm4 = vcmask 941056  }
 0xb5b   : > { %2513 = vst [vmem:[#allocation5 + $0x28] sm:$0xf] %v2511_v30  ;;  %v2461_v5 = vpop.permute.xlu0 %2460  ;;  %v2470_v29 = vrot.slane %v2469_v10, 4  ;;  %2690 = vmatpush1.bf16.msra.mxu1 %v3431_v46 }
 0xb5c   : > { %v2462_v48 = vrot.slane %v2461_v5, 4 }
 0xb5d   : > { %v2471_v7 = vsel %vm4651_vm12, %v2469_v10, %v2470_v29 }
 0xb5e   : > { %v2463_v32 = vsel %vm4652_vm6, %v2461_v5, %v2462_v48  ;;  %2473 = vst [vmem:[#allocation5 + $0x14] sm:$0xf] %v2471_v7  ;;  %v2485_v39 = vpop.permute.xlu1 %2484  ;;  %vm4661_vm6 = vcmask 351232  }
 0xb5f   : > { %2465 = vst [vmem:[#allocation5 + $0x10] sm:$0xf] %v2463_v32  ;;  %v2477_v54 = vpop.permute.xlu0 %2476  ;;  %v2486_v9 = vrot.slane %v2485_v39, 4 }
 0xb60   : > { %v2478_v1 = vrot.slane %v2477_v54, 4 }
 0xb61   : > { %v2487_v62 = vsel %vm4653_vm11, %v2485_v39, %v2486_v9  ;;  %v3432_v38 = vld [vmem:[#allocation5 + $0x24] ss:$8 sps:$4 sm:$0xff]   ;;  %vm4662_vm11 = vcmask 760832  }
 0xb62   : > { %v2479_v34 = vsel %vm4654_vm10, %v2477_v54, %v2478_v1  ;;  %v3434_v33 = vld [vmem:[#allocation5 + $0x20] ss:$8 sps:$4 sm:$0xff]   ;;  %2489 = vst [vmem:[#allocation5 + $0x1c] sm:$0xf] %v2487_v62  ;;  %v2435_v36 = vpop.permute.xlu1 %2434  ;;  %2691 = vmatprep.subr.bf16.mxu1 %v3432_v38  ;;  %vm4665_vm10 = vcmask 433152  }
 0xb63   : > { %2481 = vst [vmem:[#allocation5 + $0x18] sm:$0xf] %v2479_v34  ;;  %v2427_v26 = vpop.permute.xlu0 %2426  ;;  %v2436_v42 = vrot.slane %v2435_v36, 4  ;;  %2692 = vmatpush1.bf16.msra.mxu1 %v3434_v33 }
 0xb64   : > { %v2428_v43 = vrot.slane %v2427_v26, 4 }
 0xb65   : > { %v2437_v22 = vsel %vm1654_vm8, %v2435_v36, %v2436_v42 }
 0xb66   : > { %v2429_v47 = vsel %vm1645_vm15, %v2427_v26, %v2428_v43  ;;  %2439 = vst [vmem:[#allocation5 + $0x4] sm:$0xf] %v2437_v22  ;;  %v2452_v53 = vpop.permute.xlu1 %2451 }
 0xb67   : > { %2431 = vst [vmem:[#allocation5] sm:$0xf] %v2429_v47  ;;  %v2443_v11 = vpop.permute.xlu0 %2442  ;;  %v2453_v25 = vrot.slane %v2452_v53, 4 }
 0xb68   : > { %v2444_v13 = vrot.slane %v2443_v11, 4 }
 0xb69   : > { %v2455_v59 = vsel %vm2454_vm5, %v2452_v53, %v2453_v25  ;;  %v3435_v16 = vld [vmem:[#allocation5 + $0x14] ss:$8 sps:$4 sm:$0xff]   ;;  %vm4666_vm5 = vcmask 842752  }
 0xb6a   : > { %v2446_v51 = vsel %vm2445_vm4, %v2443_v11, %v2444_v13  ;;  %v3437_v50 = vld [vmem:[#allocation5 + $0x10] ss:$8 sps:$4 sm:$0xff]   ;;  %2457 = vst [vmem:[#allocation5 + $0xc] sm:$0xf] %v2455_v59  ;;  %2693 = vmatprep.subr.bf16.mxu1 %v3435_v16  ;;  %vm4667_vm4 = vcmask 515072  }
 0xb6b   : > { %2448 = vst [vmem:[#allocation5 + $0x8] sm:$0xf] %v2446_v51  ;;  %2694 = vmatpush1.bf16.msra.mxu1 %v3437_v50 }
 0xb71   : > { %v3438_v52 = vld [vmem:[#allocation5 + $0x4] ss:$8 sps:$4 sm:$0xff]  }
 0xb72   : > { %v3440_v56 = vld [vmem:[#allocation5] ss:$8 sps:$4 sm:$0xff]   ;;  %2695 = vmatprep.subr.bf16.mxu1 %v3438_v52 }
 0xb73   : > { %2696 = vmatpush1.bf16.msra.mxu1 %v3440_v56 }
 0xb76   : > { %3228 = vmatmul.mubr.msk.bf16.vlgmr.msra.gmra.mxu1 %vm1747_vm0, %v3214_v58 }
 0xbac   : > { %v1847_v55 = vpop.f32.mrf.mxu1 }
 0xbad   : > { %v1848_v2 = vadd.f32 %v1847_v55, %v4234_v45 }
 0xbae   : > { %v1849_v63 = vpop.f32.mrf.mxu1 }
 0xbaf   : > { %v4456_v17 = vadd.f32 %v1848_v2, %v918_v35  ;;  %v1850_v24 = vadd.f32 %v1849_v63, %v4239_v28 }
 0xbb0   : > { %v1851_v19 = vpop.f32.mrf.mxu1 }
 0xbb1   : > { %v4459_v61 = vadd.f32 %v1850_v24, %v920_v0 }
 0xbb2   : > { %v1852_v57 = vpop.f32.mrf.mxu1 }
 0xc36   : > { %v2715_v8 = vpop.f32.mrf.mxu1 }
 0xc37   : > { %v4462_v3 = vadd.f32 %v2715_v8, %v4317_v18 }
 0xc38   : > { %v2717_v14 = vpop.f32.mrf.mxu1 }
 0xc39   : > { %v3266_v60 = vpack.c.bf16 %v4462_v3, %v4462_v3  ;;  %v4467_v49 = vadd.f32 %v2717_v14, %v4322_v12 }
 0xc3a   : > { %v2719_v31 = vpop.f32.mrf.mxu1 }
 0xc3b   : > { %v3267_v23 = vpack.c.bf16 %v4467_v49, %v4467_v49  ;;  %2727 = vrot.lane.b32.xlu0 %v3266_v60, %s3497_s7  ;;  %s3541_s7 = smov 28  }
 0xc3c   : > { %v2720_v45 = vpop.f32.mrf.mxu1 }
 0xc3d   : > { %2736 = vrot.lane.b32.xlu1 %v3267_v23, %s3498_s8  ;;  %s3542_s8 = smov 78  }
 0xcad   : > { %v2728_v28 = vpop.permute.xlu0 %2727 }
 0xcae   : > { %v2729_v6 = vrot.slane %v2728_v28, 4 }
 0xcaf   : > { %v2737_v18 = vpop.permute.xlu1 %2736 }
 0xcb0   : > { %v2730_v40 = vsel %vm495_vm13, %v2729_v6, %v2728_v28  ;;  %v2738_v21 = vrot.slane %v2737_v18, 4  ;;  %vm2914_vm13 = vcmask 228352  }
 0xcb1   : > { %2732 = vst.msk [vmem:[#allocation2] sm:$0xff] %vm3710_vm14, %v2730_v40  ;;  %vm2749_vm14 = vcmask 637952  }
 0xcb2   : > { %v2739_v12 = vsel %vm508_vm1, %v2738_v21, %v2737_v18  ;;  %vm2897_vm1 = vcmask 269312  }
 0xcb3   : > { %2741 = vst.msk [vmem:[#allocation2 + $0x4] sm:$0xff] %vm3717_vm2, %v2739_v12  ;;  %vm2888_vm2 = vcmask 678912  }
 0xcb8   : > { %v2742_v44 = vld [vmem:[#allocation2] sm:$0xf] }
 0xcb9   : > { %2743 = vst [vmem:[#allocation5] sm:$0xf] %v2742_v44 }
 0xcba   : > { %v2909_v4 = vld [vmem:[#allocation2 + $0x4] sm:$0xff] }
 0xcbb   : > { %v2901_v27 = vld [vmem:[#allocation2] sm:$0xff]  ;;  %2911 = vrot.lane.b32.xlu1 %v2909_v4, %s3541_s7 }
 0xcbc   : > { %2903 = vrot.lane.b32.xlu0 %v2901_v27, %s3542_s8 }
 0xcbf   : > { %2877 = vrot.lane.b32.xlu1 %v2909_v4, %s3530_s9  ;;  %s3546_s9 = smov 73  }
 0xcc0   : > { %2869 = vrot.lane.b32.xlu0 %v2901_v27, %s3529_s27  ;;  %s4657_s27 = smov 63  }
 0xcc3   : > { %2894 = vrot.lane.b32.xlu1 %v2909_v4, %s3543_s20 }
 0xcc4   : > { %2885 = vrot.lane.b32.xlu0 %v2901_v27, %s3544_s11 }
 0xcc7   : > { %2845 = vrot.lane.b32.xlu1 %v2909_v4, %s3514_s26  ;;  %s4658_s26 = smov 113  }
 0xcc8   : > { %2837 = vrot.lane.b32.xlu0 %v2901_v27, %s3513_s25  ;;  %s3545_s25 = smov 123  }
 0xccb   : > { %2861 = vrot.lane.b32.xlu1 %v2909_v4, %s4655_s30 }
 0xccc   : > { %2853 = vrot.lane.b32.xlu0 %v2901_v27, %s4656_s17 }
 0xccf   : > { %2813 = vrot.lane.b32.xlu1 %v2909_v4, %s4610_s10  ;;  %s3249_s10 = sshll.u32 %s4670_s22, 4 }
 0xcd0   : > { %2805 = vrot.lane.b32.xlu0 %v2901_v27, %s4611_s29 }
 0xcd3   : > { %2829 = vrot.lane.b32.xlu1 %v2909_v4, %s3503_s13 }
 0xcd4   : > { %2821 = vrot.lane.b32.xlu0 %v2901_v27, %s3504_s14 }
 0xcd7   : > { %2781 = vrot.lane.b32.xlu1 %v2909_v4, %s3534_s28  ;;  %s251_s28 = scalar_lea.vmem %s4532_s6, %s3249_s10 }
 0xcd8   : > { %2773 = vrot.lane.b32.xlu0 %v2901_v27, %s3533_s12 }
 0xcdb   : > { %2797 = vrot.lane.b32.xlu1 %v2909_v4, %s4657_s27 }
 0xcdc   : > { %2789 = vrot.lane.b32.xlu0 %v2901_v27, %s4658_s26 }
 0xcdf   : > { %2755 = vrot.lane.b32.xlu1 %v2901_v27, %s3545_s25 }
 0xce0   : > { %2746 = vrot.lane.b32.xlu0 %v2909_v4, %s3542_s8 }
 0xce4   : > { %2764 = vrot.lane.b32.xlu0 %v2909_v4, %s3546_s9 }
 0xd2d   : > { %v2912_v41 = vpop.permute.xlu1 %2911 }
 0xd2e   : > { %v2904_v15 = vpop.permute.xlu0 %2903  ;;  %v2913_v20 = vrot.slane %v2912_v41, 4 }
 0xd2f   : > { %v2905_v30 = vrot.slane %v2904_v15, 4 }
 0xd30   : > { %v2915_v37 = vsel %vm2914_vm13, %v2912_v41, %v2913_v20  ;;  %vm4668_vm13 = vcmask 924672  }
 0xd31   : > { %v2906_v46 = vsel %vm2749_vm14, %v2904_v15, %v2905_v30  ;;  %2917 = vst [vmem:[#allocation5 + $0x54] sm:$0xf] %v2915_v37  ;;  %v2878_v10 = vpop.permute.xlu1 %2877 }
 0xd32   : > { %2908 = vst [vmem:[#allocation5 + $0x50] sm:$0xf] %v2906_v46  ;;  %v2870_v5 = vpop.permute.xlu0 %2869  ;;  %v2879_v29 = vrot.slane %v2878_v10, 4 }
 0xd33   : > { %v2871_v48 = vrot.slane %v2870_v5, 4 }
 0xd34   : > { %v2880_v7 = vsel %vm1756_vm3, %v2878_v10, %v2879_v29  ;;  %vm4659_vm3 = vcmask 1043456  }
 0xd35   : > { %v2872_v32 = vsel %vm1747_vm0, %v2870_v5, %v2871_v48  ;;  %2882 = vst [vmem:[#allocation5 + $0x44] sm:$0xf] %v2880_v7  ;;  %v2895_v39 = vpop.permute.xlu1 %2894  ;;  %vm4660_vm12 = vmmov %vm4659_vm3 }
 0xd36   : > { %2874 = vst [vmem:[#allocation5 + $0x40] sm:$0xf] %v2872_v32  ;;  %v2886_v54 = vpop.permute.xlu0 %2885  ;;  %v2896_v9 = vrot.slane %v2895_v39, 4 }
 0xd37   : > { %v2887_v1 = vrot.slane %v2886_v54, 4 }
 0xd38   : > { %v2898_v62 = vsel %vm2897_vm1, %v2895_v39, %v2896_v9  ;;  %vm2758_vm1 = vcmask 1006592  }
 0xd39   : > { %v2889_v34 = vsel %vm2888_vm2, %v2886_v54, %v2887_v1  ;;  %v2930_v38 = vld [vmem:[#allocation5 + $0x50] sm:$0xff]  ;;  %2900 = vst [vmem:[#allocation5 + $0x4c] sm:$0xf] %v2898_v62  ;;  %v2846_v33 = vpop.permute.xlu1 %2845 }
 0xd3a   : > { %2891 = vst [vmem:[#allocation5 + $0x48] sm:$0xf] %v2889_v34  ;;  %v2838_v36 = vpop.permute.xlu0 %2837  ;;  %v3243_v26 = vcombine.high %v2930_v38, %v2930_v38  ;;  %v3242_v42 = vcombine.low %v2930_v38, %v2930_v38  ;;  %v2847_v43 = vrot.slane %v2846_v33, 4  ;;  %v3231_v34 = vld [vmem:[%s4530_s4 + $0x8] sm:$0xf] }
 0xd3b   : > { %v2839_v22 = vrot.slane %v2838_v36, 4 }
 0xd3c   : > { %3244 = vmatprep.subr.msk.bf16.mxu0 %vm4659_vm3, %v3243_v26  ;;  %v2990_v47 = vsel %vm4660_vm12, %v3242_v42, 0  ;;  %v2848_v53 = vsel %vm850_vm9, %v2846_v33, %v2847_v43  ;;  %vm4664_vm9 = vcmask 883712  }
 0xd3d   : > { %v2840_v11 = vsel %vm841_vm7, %v2838_v36, %v2839_v22  ;;  %3000 = vmatpush1.bf16.msra.mxu0 %v2990_v47  ;;  %2850 = vst [vmem:[#allocation5 + $0x34] sm:$0xf] %v2848_v53  ;;  %v2862_v25 = vpop.permute.xlu1 %2861  ;;  %vm4663_vm7 = vcmask 474112  }
 0xd3e   : > { %2842 = vst [vmem:[#allocation5 + $0x30] sm:$0xf] %v2840_v11  ;;  %v2854_v13 = vpop.permute.xlu0 %2853  ;;  %v2863_v59 = vrot.slane %v2862_v25, 4 }
 0xd3f   : > { %v2855_v51 = vrot.slane %v2854_v13, 4 }
 0xd40   : > { %v2864_v16 = vsel %vm4661_vm6, %v2862_v25, %v2863_v59  ;;  %v3445_v56 = vld [vmem:[#allocation5 + $0x44] ss:$8 sps:$4 sm:$0xff]  }
 0xd41   : > { %v2856_v50 = vsel %vm4662_vm11, %v2854_v13, %v2855_v51  ;;  %v3443_v52 = vld [vmem:[#allocation5 + $0x40] ss:$8 sps:$4 sm:$0xff]   ;;  %2866 = vst [vmem:[#allocation5 + $0x3c] sm:$0xf] %v2864_v16  ;;  %v2814_v58 = vpop.permute.xlu1 %2813  ;;  %3001 = vmatprep.subr.bf16.mxu0 %v3445_v56 }
 0xd42   : > { %2858 = vst [vmem:[#allocation5 + $0x38] sm:$0xf] %v2856_v50  ;;  %v2806_v55 = vpop.permute.xlu0 %2805  ;;  %v2815_v35 = vrot.slane %v2814_v58, 4  ;;  %3002 = vmatpush1.bf16.msra.mxu0 %v3443_v52 }
 0xd43   : > { %v2807_v2 = vrot.slane %v2806_v55, 4 }
 0xd44   : > { %v2816_v63 = vsel %vm4663_vm7, %v2814_v58, %v2815_v35 }
 0xd45   : > { %v2808_v0 = vsel %vm4664_vm9, %v2806_v55, %v2807_v2  ;;  %2818 = vst [vmem:[#allocation5 + $0x24] sm:$0xf] %v2816_v63  ;;  %v2830_v24 = vpop.permute.xlu1 %2829 }
 0xd46   : > { %2810 = vst [vmem:[#allocation5 + $0x20] sm:$0xf] %v2808_v0  ;;  %v2822_v19 = vpop.permute.xlu0 %2821  ;;  %v2831_v57 = vrot.slane %v2830_v24, 4 }
 0xd47   : > { %v2823_v8 = vrot.slane %v2822_v19, 4 }
 0xd48   : > { %v2832_v14 = vsel %vm4665_vm10, %v2830_v24, %v2831_v57  ;;  %v3448_v23 = vld [vmem:[#allocation5 + $0x34] ss:$8 sps:$4 sm:$0xff]  }
 0xd49   : > { %v2824_v60 = vsel %vm4666_vm5, %v2822_v19, %v2823_v8  ;;  %v3446_v31 = vld [vmem:[#allocation5 + $0x30] ss:$8 sps:$4 sm:$0xff]   ;;  %2834 = vst [vmem:[#allocation5 + $0x2c] sm:$0xf] %v2832_v14  ;;  %v2782_v45 = vpop.permute.xlu1 %2781  ;;  %3003 = vmatprep.subr.bf16.mxu0 %v3448_v23 }
 0xd4a   : > { %2826 = vst [vmem:[#allocation5 + $0x28] sm:$0xf] %v2824_v60  ;;  %v2774_v28 = vpop.permute.xlu0 %2773  ;;  %v2783_v6 = vrot.slane %v2782_v45, 4  ;;  %3004 = vmatpush1.bf16.msra.mxu0 %v3446_v31 }
 0xd4b   : > { %v2775_v18 = vrot.slane %v2774_v28, 4 }
 0xd4c   : > { %v2784_v40 = vsel %vm1654_vm8, %v2782_v45, %v2783_v6 }
 0xd4d   : > { %v2776_v21 = vsel %vm1645_vm15, %v2774_v28, %v2775_v18  ;;  %2786 = vst [vmem:[#allocation5 + $0x14] sm:$0xf] %v2784_v40  ;;  %v2798_v12 = vpop.permute.xlu1 %2797  ;;  %vm2767_vm15 = vcmask 596992  }
 0xd4e   : > { %2778 = vst [vmem:[#allocation5 + $0x10] sm:$0xf] %v2776_v21  ;;  %v2790_v44 = vpop.permute.xlu0 %2789  ;;  %v2799_v4 = vrot.slane %v2798_v12, 4 }
 0xd4f   : > { %v2791_v27 = vrot.slane %v2790_v44, 4 }
 0xd50   : > { %v2800_v41 = vsel %vm4667_vm4, %v2798_v12, %v2799_v4  ;;  %v3451_v30 = vld [vmem:[#allocation5 + $0x24] ss:$8 sps:$4 sm:$0xff]  }
 0xd51   : > { %v2792_v15 = vsel %vm4668_vm13, %v2790_v44, %v2791_v27  ;;  %v3449_v20 = vld [vmem:[#allocation5 + $0x20] ss:$8 sps:$4 sm:$0xff]   ;;  %2802 = vst [vmem:[#allocation5 + $0x1c] sm:$0xf] %v2800_v41  ;;  %v2756_v37 = vpop.permute.xlu1 %2755  ;;  %3005 = vmatprep.subr.bf16.mxu0 %v3451_v30 }
 0xd52   : > { %2794 = vst [vmem:[#allocation5 + $0x18] sm:$0xf] %v2792_v15  ;;  %v2747_v46 = vpop.permute.xlu0 %2746  ;;  %v2757_v10 = vrot.slane %v2756_v37, 4  ;;  %3006 = vmatpush1.bf16.msra.mxu0 %v3449_v20 }
 0xd53   : > { %v2748_v5 = vrot.slane %v2747_v46, 4 }
 0xd54   : > { %v2759_v29 = vsel %vm2758_vm1, %v2756_v37, %v2757_v10 }
 0xd55   : > { %v2750_v48 = vsel %vm2749_vm14, %v2747_v46, %v2748_v5  ;;  %2761 = vst [vmem:[#allocation5 + $0x8] sm:$0xf] %v2759_v29 }
 0xd56   : > { %2752 = vst [vmem:[#allocation5 + $0x4] sm:$0xf] %v2750_v48  ;;  %v2765_v7 = vpop.permute.xlu0 %2764 }
 0xd57   : > { %v2766_v32 = vrot.slane %v2765_v7, 4 }
 0xd58   : > { %v3454_v9 = vld [vmem:[#allocation5 + $0x14] ss:$8 sps:$4 sm:$0xff]  }
 0xd59   : > { %v2768_v39 = vsel %vm2767_vm15, %v2765_v7, %v2766_v32  ;;  %v3452_v54 = vld [vmem:[#allocation5 + $0x10] ss:$8 sps:$4 sm:$0xff]   ;;  %3007 = vmatprep.subr.bf16.mxu0 %v3454_v9 }
 0xd5a   : > { %2770 = vst [vmem:[#allocation5 + $0xc] sm:$0xf] %v2768_v39  ;;  %3008 = vmatpush1.bf16.msra.mxu0 %v3452_v54 }
 0xd5c   : > { %v3455_v1 = vld [vmem:[#allocation5] ss:$8 sps:$4 sm:$0xff]  }
 0xd61   : > { %v3457_v62 = vld [vmem:[#allocation5 + $0x4] ss:$8 sps:$4 sm:$0xff]  }
 0xd62   : > { %3009 = vmatprep.subr.bf16.mxu0 %v3457_v62 }
 0xd63   : > { %3010 = vmatpush1.bf16.msra.mxu0 %v3455_v1 }
 0xd66   : > { %3245 = vmatmul.mubr.msk.bf16.vlgmr.msra.gmra.mxu0 %vm1747_vm0, %v3231_v34 }
 0xe26   : > { %v3029_v38 = vpop.f32.mrf.mxu0 }
 0xe27   : > { %v3030_v33 = vadd.f32 %v3029_v38, %v4462_v3 }
 0xe28   : > { %v3031_v36 = vpop.f32.mrf.mxu0 }
 0xe29   : > { %v3036_v26 = vadd.f32 %v3030_v33, %v4456_v17  ;;  %v3032_v42 = vadd.f32 %v3031_v36, %v4467_v49 }
 0xe2a   : > { %v3033_v43 = vpop.f32.mrf.mxu0 }
 0xe2b   : > { %3038 = vst [vmem:[%s251_s28] sm:$0xff] %v3036_v26  ;;  %v3037_v22 = vadd.f32 %v3032_v42, %v4459_v61 }
 0xe2c   : > { %v3034_v47 = vpop.f32.mrf.mxu0 }
 0xe2d   : > { %3039 = vst [vmem:[%s251_s28 + $0x8] sm:$0xff] %v3037_v22 }
 0xe2e PF: > { %s16_s21 = sadd.s32 1, %s3488_s21  }
 0xe2f   : > { %p13_p4 = scmp.ge.s32.totalorder %s16_s21, 4  }
 0xe31   :  { %15 = sbr.rel (!%p13_p4) target bundleno = 1 (0x1), region = 84 }

</bundles_post_ra>
